<compile_context>
chip_gen: v5e
topology: v5e:2x2
jax: 0.10.0
libtpu: 0.0.40
codegen_flags: <defaults>
</compile_context>

<pallas_src>
import numpy as np
import jax
import jax.numpy as jnp
from jax.experimental import pallas as pl
from jax.experimental.pallas import tpu as pltpu

LANE = 128


def _round_up(x, m):
    return ((x + m - 1) // m) * m


def _vmem_budget_bytes():
    """Generation-aware VMEM budget (v5e/v6e: 128 MiB physical, v7x: 64 MiB)."""
    try:
        info = pltpu.get_tpu_info()
        cap = int(getattr(info, "vmem_capacity_bytes", 64 * 1024 * 1024))
    except Exception:
        cap = 64 * 1024 * 1024          # conservative fallback (works on v7x too)
    return min(int(cap * 0.6), 80 * 1024 * 1024)


def _pick_nb(nblocks, M, Bp, Wp, NOUTp, budget, cap):
    """Blocks per grid step: <= cap, multiple of 8, >=2 grid steps when possible,
    shrunk until the rough VMEM footprint fits the budget."""
    nb = min(int(cap), _round_up(nblocks, 8))
    if nblocks > 8:                                  # force >= 2 grid steps
        nb = min(nb, _round_up(-(-nblocks // 2), 8))
    nb = max(8, (nb // 8) * 8)

    def est(n):
        io = (2 * n * 4 * Wp * 2          # Xf bf16 (double-buffered)
              + 2 * n * 4 * NOUTp * 4     # Yv f32
              + 2 * n * 4 * Bp * 4        # ys out
              + 2 * M * n * 2 * Bp * 4    # q out
              + 2 * n * LANE * 4)         # stats out
        consts = 2 * 2 * (4 * Wp * 4 * Bp + 4 * Bp * 4 * NOUTp + 2 * Bp * 2 * NOUTp)
        live = 6 * M * n * Bp * 4         # demapper intermediates (rough)
        return io + consts + live

    while nb > 8 and est(nb) > budget:
        nb -= 8
    return nb


def _make_kernel(cfg):
    B = cfg["B"]
    Bp = cfg["Bp"]
    NOUTp = cfg["NOUTp"]
    NOUT = cfg["NOUT"]
    M = cfg["M"]
    LOFF_B = cfg["loff_b"]
    INV_SIG2 = float(cfg["inv_sig2"])
    BIAS = 1e-14
    NOUT_F = float(NOUT)
    INV_NOUT = 1.0 / float(NOUT)

    def kernel(xf_ref, yv_ref, gf_ref, gb_ref, ga_ref, cc_ref,
               ys_ref, q_ref, stats_ref):
        Nb = xf_ref.shape[0]

        # -------- forward 2x2 complex butterfly FIR as ONE bf16 matmul (MXU) -----
        Ys = jnp.dot(xf_ref[...], gf_ref[...],
                     preferred_element_type=jnp.float32)             # (Nb, 4*Bp)
        ys_ref[...] = Ys

        # constellation constants, passed as input (no captured array constants)
        cre = cc_ref[0 * M:1 * M]                                    # (M, 1, 1)
        cim = cc_ref[1 * M:2 * M]
        cabs2 = cc_ref[2 * M:3 * M]
        logp = cc_ref[3 * M:4 * M]

        y0r = Ys[:, 0 * Bp:1 * Bp]
        y0i = Ys[:, 1 * Bp:2 * Bp]
        y1r = Ys[:, 2 * Bp:3 * Bp]
        y1i = Ys[:, 3 * Bp:4 * Bp]

        def demap(yr, yi):
            d2 = (yr[None, :, :] - cre) ** 2 + (yi[None, :, :] - cim) ** 2  # (M,Nb,Bp)
            g = logp - d2 * INV_SIG2
            mx = jnp.max(g, axis=0, keepdims=True)
            e = jnp.exp(g - mx)
            z = jnp.sum(e, axis=0, keepdims=True)
            q = e * pl.reciprocal(z, approx=True)                    # (M, Nb, Bp)
            e_re = jnp.sum(q * cre, axis=0)                          # (Nb, Bp)
            e_im = jnp.sum(q * cim, axis=0)
            e_a2 = jnp.sum(q * cabs2, axis=0)
            var_sym = e_a2 - (e_re * e_re + e_im * e_im)
            # sum_m q_m log(q_m/p_m) reusing the softmax stats (no extra logs/bias)
            kl = -INV_SIG2 * jnp.sum(q * d2, axis=0) - (mx[0] + jnp.log(z[0]))
            return q, e_re, e_im, var_sym, kl

        q0, e0r, e0i, v0, kl0 = demap(y0r, y0i)
        q_ref[:, :, 0:Bp] = q0.astype(q_ref.dtype)                   # aligned store
        q1, e1r, e1i, v1, kl1 = demap(y1r, y1i)
        q_ref[:, :, Bp:2 * Bp] = q1.astype(q_ref.dtype)

        # -------- backward butterfly + |h|^2 variance path (bf16 matmuls) --------
        bf16 = jnp.bfloat16
        E = jnp.concatenate([e0r.astype(bf16), e0i.astype(bf16),
                             e1r.astype(bf16), e1i.astype(bf16)], axis=1)  # (Nb,4Bp)
        Hc = jnp.dot(E, gb_ref[...], preferred_element_type=jnp.float32)   # (Nb,4NOUTp)
        V = jnp.concatenate([v0.astype(bf16), v1.astype(bf16)], axis=1)    # (Nb,2Bp)
        Ac = jnp.dot(V, ga_ref[...], preferred_element_type=jnp.float32)   # (Nb,2NOUTp)

        Yv = yv_ref[...]                                             # (Nb, 4*NOUTp)
        yv0r = Yv[:, 0 * NOUTp:1 * NOUTp]
        yv0i = Yv[:, 1 * NOUTp:2 * NOUTp]
        yv1r = Yv[:, 2 * NOUTp:3 * NOUTp]
        yv1i = Yv[:, 3 * NOUTp:4 * NOUTp]
        hc0r = Hc[:, 0 * NOUTp:1 * NOUTp]
        hc0i = Hc[:, 1 * NOUTp:2 * NOUTp]
        hc1r = Hc[:, 2 * NOUTp:3 * NOUTp]
        hc1i = Hc[:, 3 * NOUTp:4 * NOUTp]
        ac0 = Ac[:, 0:NOUTp]
        ac1 = Ac[:, NOUTp:2 * NOUTp]

        # -------- ELBO terms (zero-padded columns contribute exactly zero) -------
        C0 = jnp.sum(yv0r * yv0r + yv0i * yv0i
                     - 2.0 * (yv0r * hc0r + yv0i * hc0i)
                     + hc0r * hc0r + hc0i * hc0i + ac0,
                     axis=1, keepdims=True)                          # (Nb, 1)
        C1 = jnp.sum(yv1r * yv1r + yv1i * yv1i
                     - 2.0 * (yv1r * hc1r + yv1i * hc1i)
                     + hc1r * hc1r + hc1i * hc1i + ac1,
                     axis=1, keepdims=True)

        if LOFF_B > 0:
            lane_b = jax.lax.broadcasted_iota(jnp.int32, (Nb, Bp), 1)
            kmask = (lane_b >= LOFF_B) & (lane_b < (B - LOFF_B))
            A = jnp.sum(jnp.where(kmask, kl0 + kl1, 0.0), axis=1, keepdims=True)
        else:
            # matches PyTorch q[:, 0:-0, :] (empty slice) behaviour
            A = 0.0

        loss_col = A + NOUT_F * (jnp.log(C0 + BIAS) + jnp.log(C1 + BIAS))  # (Nb,1)

        # lane-dense packed stats: col0 = loss, col1 = var_pol0, col2 = var_pol1
        lane = jax.lax.broadcasted_iota(jnp.int32, (Nb, LANE), 1)
        stats_ref[...] = (jnp.where(lane == 0, loss_col, 0.0)
                          + jnp.where(lane == 1, C0 * INV_NOUT, 0.0)
                          + jnp.where(lane == 2, C1 * INV_NOUT, 0.0))

    return kernel


def _butterfly_gen(R, I):
    # row blocks = [x0r; x0i; x1r; x1i], column blocks = [o0r, o0i, o1r, o1i]
    return jnp.concatenate([
        jnp.concatenate([R[0], I[0], R[2], I[2]], axis=1),
        jnp.concatenate([-I[0], R[0], -I[2], R[2]], axis=1),
        jnp.concatenate([R[1], I[1], R[3], I[3]], axis=1),
        jnp.concatenate([-I[1], R[1], -I[3], R[3]], axis=1),
    ], axis=0)


def make_forward(num_samps, sps, block_size, num_taps_fwd, num_taps_bwd,
                 constellation, p_symbols, noise_sigma,
                 max_blocks_per_step=64, q_dtype=jnp.float32):
    M = int(constellation.shape[0])
    B = int(block_size)
    TF = int(num_taps_fwd)
    TB = int(num_taps_bwd)
    sps = int(sps)
    pad_f = (TF - 1) // 2
    loff_b = (TB - 1) // 2
    step = sps * B                     # samples per equalizer block
    W = step + 2 * pad_f               # samples read per block ('valid' forward FIR)
    NOUT = step - TB + 1               # 'valid' backward FIR length
    nblocks = len(range(pad_f, num_samps - pad_f - step, step))
    assert nblocks >= 1, "input too short for one block"
    assert B > 2 * loff_b or loff_b == 0, "block_size too small for backward taps"
    assert NOUT >= 1

    # lane-aligned (128-multiple) segment widths -> aligned slices, unmasked stores
    Bp = _round_up(B, LANE)
    Wp = _round_up(W, LANE)
    NOUTp = _round_up(NOUT, LANE)

    budget = _vmem_budget_bytes()
    Nb = _pick_nb(nblocks, M, Bp, Wp, NOUTp, budget, max_blocks_per_step)
    nblocks_pad = _round_up(nblocks, Nb)
    grid = (nblocks_pad // Nb,)

    # constellation constants, packed as a (4*M, 1, 1) kernel input
    c_re = np.real(constellation).astype(np.float32)
    c_im = np.imag(constellation).astype(np.float32)
    cabs2 = c_re * c_re + c_im * c_im
    logp = np.log(np.asarray(p_symbols, np.float32))
    cc_np = np.concatenate([c_re, c_im, cabs2, logp]).reshape(4 * M, 1, 1)

    kernel = _make_kernel(dict(B=B, Bp=Bp, NOUT=NOUT, NOUTp=NOUTp, M=M,
                               loff_b=loff_b,
                               inv_sig2=1.0 / (float(noise_sigma) ** 2)))

    call = pl.pallas_call(
        kernel,
        out_shape=(
            jax.ShapeDtypeStruct((nblocks_pad, 4 * Bp), jnp.float32),     # ys
            jax.ShapeDtypeStruct((M, nblocks_pad, 2 * Bp), q_dtype),      # q
            jax.ShapeDtypeStruct((nblocks_pad, LANE), jnp.float32),       # stats
        ),
        grid=grid,
        in_specs=[
            pl.BlockSpec((Nb, 4 * Wp), lambda i: (i, 0)),                 # Xf (bf16)
            pl.BlockSpec((Nb, 4 * NOUTp), lambda i: (i, 0)),              # Yv (f32)
            pl.BlockSpec((4 * Wp, 4 * Bp), lambda i: (0, 0)),             # Gf const
            pl.BlockSpec((4 * Bp, 4 * NOUTp), lambda i: (0, 0)),          # Gb const
            pl.BlockSpec((2 * Bp, 2 * NOUTp), lambda i: (0, 0)),          # Ga const
            pl.BlockSpec((4 * M, 1, 1), lambda i: (0, 0, 0)),             # constellation
        ],
        out_specs=(
            pl.BlockSpec((Nb, 4 * Bp), lambda i: (i, 0)),
            pl.BlockSpec((M, Nb, 2 * Bp), lambda i: (0, i, 0)),
            pl.BlockSpec((Nb, LANE), lambda i: (i, 0)),
        ),
        compiler_params=pltpu.CompilerParams(
            dimension_semantics=("parallel",),        # blocks are independent
            vmem_limit_bytes=int(budget),
        ),
    )

    @jax.jit
    def forward(y_re, y_im, hf_re, hf_im, hb_re, hb_im):
        f32 = jnp.float32
        bf16 = jnp.bfloat16
        y_re = y_re.astype(f32)
        y_im = y_im.astype(f32)

        # ---- constant generator (scatter) matrices, built ONCE per call ---------
        # forward: Gf block[j][w, n] = hf[j, w - n*sps], tap index in [0, TF)
        w_idx = jnp.arange(W)[:, None]
        n_idx = jnp.arange(B)[None, :]
        tfi = w_idx - n_idx * sps
        mf = (tfi >= 0) & (tfi < TF)
        tfc = jnp.clip(tfi, 0, TF - 1)
        Rf = jnp.where(mf[None], hf_re.astype(f32)[:, tfc], 0.0)          # (4, W, B)
        If = jnp.where(mf[None], hf_im.astype(f32)[:, tfc], 0.0)
        padf = ((0, 0), (0, Wp - W), (0, Bp - B))
        Gf = _butterfly_gen(jnp.pad(Rf, padf), jnp.pad(If, padf)).astype(bf16)

        # backward: Gb block[j][n, m] = hb[j, n*sps - m], tap index in [0, TB)
        nn = jnp.arange(B)[:, None]
        mm = jnp.arange(NOUT)[None, :]
        tbi = nn * sps - mm
        mb = (tbi >= 0) & (tbi < TB)
        tbc = jnp.clip(tbi, 0, TB - 1)
        Rb = jnp.where(mb[None], hb_re.astype(f32)[:, tbc], 0.0)          # (4, B, NOUT)
        Ib = jnp.where(mb[None], hb_im.astype(f32)[:, tbc], 0.0)
        Ab = jnp.where(mb[None],
                       (hb_re * hb_re + hb_im * hb_im).astype(f32)[:, tbc], 0.0)
        padb = ((0, 0), (0, Bp - B), (0, NOUTp - NOUT))
        Rb = jnp.pad(Rb, padb)
        Ib = jnp.pad(Ib, padb)
        Ab = jnp.pad(Ab, padb)
        Gb = _butterfly_gen(Rb, Ib).astype(bf16)                          # (4Bp, 4NOUTp)
        Ga = jnp.concatenate([
            jnp.concatenate([Ab[0], Ab[2]], axis=1),
            jnp.concatenate([Ab[1], Ab[3]], axis=1),
        ], axis=0).astype(bf16)                                           # (2Bp, 2NOUTp)

        # ---- strided-reshape windowing (no advanced-index gather) ---------------
        def win(sig, start0, width, width_pad):
            npieces = -(-width // step)
            need = start0 + (npieces - 1) * step + nblocks * step
            sigp = jnp.pad(sig, (0, max(0, need - sig.shape[0])))
            pieces = [sigp[start0 + j * step: start0 + j * step + nblocks * step]
                      .reshape(nblocks, step) for j in range(npieces)]
            rows = pieces[0] if npieces == 1 else jnp.concatenate(pieces, axis=1)
            rows = rows[:, :width]
            if width_pad > width:
                rows = jnp.pad(rows, ((0, 0), (0, width_pad - width)))
            if nblocks_pad > nblocks:
                rows = jnp.pad(rows, ((0, nblocks_pad - nblocks), (0, 0)))
            return rows

        Xf = jnp.concatenate(
            [win(y_re[0], 0, W, Wp), win(y_im[0], 0, W, Wp),
             win(y_re[1], 0, W, Wp), win(y_im[1], 0, W, Wp)],
            axis=1).astype(bf16)                                          # (Npad, 4Wp)
        voff = pad_f + loff_b
        Yv = jnp.concatenate(
            [win(y_re[0], voff, NOUT, NOUTp), win(y_im[0], voff, NOUT, NOUTp),
             win(y_re[1], voff, NOUT, NOUTp), win(y_im[1], voff, NOUT, NOUTp)],
            axis=1)                                                       # (Npad, 4NOUTp)

        cc = jnp.asarray(cc_np)

        ys, qk, stats = call(Xf, Yv, Gf, Gb, Ga, cc)

        # ---- repack to the PyTorch layout (cheap, outside the kernel) -----------
        ys = ys[:nblocks]
        y0 = ys[:, 0:B] + 1j * ys[:, Bp:Bp + B]
        y1 = ys[:, 2 * Bp:2 * Bp + B] + 1j * ys[:, 3 * Bp:3 * Bp + B]
        y_out = jnp.stack([y0.reshape(-1), y1.reshape(-1)], axis=0)       # (2, nblocks*B)

        qk = qk[:, :nblocks, :].astype(f32)                               # (M, nb, 2Bp)
        q0 = jnp.transpose(qk[:, :, 0:B], (1, 2, 0)).reshape(nblocks * B, M)
        q1 = jnp.transpose(qk[:, :, Bp:Bp + B], (1, 2, 0)).reshape(nblocks * B, M)
        q = jnp.stack([q0, q1], axis=0)                                   # (2, nblocks*B, M)

        last = stats[nblocks - 1]                                         # last block
        loss = last[0]
        var = last[1:3]
        return y_out, q, var, loss

    return forward


if __name__ == "__main__":
    # small shapes consistent with the module
    sps, block_size = 2, 8
    num_taps_fwd, num_taps_bwd = 5, 3
    num_samps = 56                        # -> 3 equalizer blocks
    M = 4
    constellation = (np.array([1 + 1j, 1 - 1j, -1 + 1j, -1 - 1j],
                              dtype=np.complex64) / np.sqrt(2.0))
    p_symbols = np.full((M,), 1.0 / M, dtype=np.float32)
    noise_sigma = 0.5

    key = jax.random.PRNGKey(0)
    k_yr, k_yi, k_f, k_b = jax.random.split(key, 4)
    y_re = 0.7 * jax.random.normal(k_yr, (2, num_samps), dtype=jnp.float32)
    y_im = 0.7 * jax.random.normal(k_yi, (2, num_samps), dtype=jnp.float32)

    # Butterfly2x2 taps (4, T): rows [h_xx, h_xy, h_yx, h_yy] — dirac on the
    # diagonal center tap plus a small deterministic perturbation.
    cf, cb = (num_taps_fwd - 1) // 2, (num_taps_bwd - 1) // 2
    hf = 0.05 * jax.random.normal(k_f, (2, 4, num_taps_fwd), dtype=jnp.float32)
    hf_re = hf[0].at[0, cf].add(1.0).at[3, cf].add(1.0)
    hf_im = hf[1]
    hb = 0.05 * jax.random.normal(k_b, (2, 4, num_taps_bwd), dtype=jnp.float32)
    hb_re = hb[0].at[0, cb].add(1.0).at[3, cb].add(1.0)
    hb_im = hb[1]

    forward = make_forward(num_samps, sps, block_size, num_taps_fwd, num_taps_bwd,
                           constellation, p_symbols, noise_sigma)
    y_eq, q, var, loss = forward(y_re, y_im, hf_re, hf_im, hb_re, hb_im)
    jax.block_until_ready((y_eq, q, var, loss))

    nblocks = 3
    assert y_eq.shape == (2, nblocks * block_size) and y_eq.dtype == jnp.complex64
    assert q.shape == (2, nblocks * block_size, M)
    assert var.shape == (2,)
    assert bool(jnp.all(jnp.isfinite(q)))
    assert bool(jnp.all(jnp.isfinite(var))) and bool(jnp.isfinite(loss))
    # q rows are valid probability distributions (approx reciprocal in softmax)
    assert bool(jnp.allclose(jnp.sum(q, axis=-1), 1.0, atol=5e-3))
    print("KERNEL_OK")
</pallas_src>

<mosaic_0001>
module attributes {stable_mosaic.version = 11 : i64} {
  func.func @kernel(%arg0: i32, %arg1: memref<8x512xbf16, #tpu.memory_space<vmem>>, %arg2: memref<8x512xf32, #tpu.memory_space<vmem>>, %arg3: memref<512x512xbf16, #tpu.memory_space<vmem>>, %arg4: memref<512x512xbf16, #tpu.memory_space<vmem>>, %arg5: memref<256x256xbf16, #tpu.memory_space<vmem>>, %arg6: memref<16x1x1xf32, #tpu.memory_space<vmem>>, %arg7: memref<8x512xf32, #tpu.memory_space<vmem>>, %arg8: memref<4x8x256xf32, #tpu.memory_space<vmem>>, %arg9: memref<8x128xf32, #tpu.memory_space<vmem>>) attributes {dimension_semantics = [#tpu.dimension_semantics<parallel>], iteration_bounds = array<i64: 1>, scalar_prefetch = 0 : i64, scratch_operands = 0 : i64, tpu.core_type = #tpu.core_type<tc>, window_params = [{transform_indices = @transform_0, window_bounds = array<i64: 8, 512>}, {transform_indices = @transform_1, window_bounds = array<i64: 8, 512>}, {pipeline_mode = #tpu.pipeline_mode<synchronous>, transform_indices = @transform_2, window_bounds = array<i64: 512, 512>}, {pipeline_mode = #tpu.pipeline_mode<synchronous>, transform_indices = @transform_3, window_bounds = array<i64: 512, 512>}, {pipeline_mode = #tpu.pipeline_mode<synchronous>, transform_indices = @transform_4, window_bounds = array<i64: 256, 256>}, {pipeline_mode = #tpu.pipeline_mode<synchronous>, transform_indices = @transform_5, window_bounds = array<i64: 16, 1, 1>}, {transform_indices = @transform_6, window_bounds = array<i64: 8, 512>}, {transform_indices = @transform_7, window_bounds = array<i64: 4, 8, 256>}, {transform_indices = @transform_8, window_bounds = array<i64: 8, 128>}]} {
    %c0 = arith.constant 0 : index
    %c0_0 = arith.constant 0 : index
    %0 = vector.load %arg1[%c0, %c0_0] : memref<8x512xbf16, #tpu.memory_space<vmem>>, vector<8x512xbf16>
    %c0_1 = arith.constant 0 : index
    %c0_2 = arith.constant 0 : index
    %1 = vector.load %arg3[%c0_1, %c0_2] : memref<512x512xbf16, #tpu.memory_space<vmem>>, vector<512x512xbf16>
    %cst = arith.constant dense<0.000000e+00> : vector<8x512xf32>
    %2 = tpu.matmul %0, %1, %cst {dimension_numbers = #tpu.dot_dimension_numbers<[1], [0], [0], [1], [0, 0, 1, 1], [], []>} : vector<8x512xbf16>, vector<512x512xbf16>, vector<8x512xf32> -> vector<8x512xf32>
    %c0_3 = arith.constant 0 : index
    %c0_4 = arith.constant 0 : index
    %3 = vector.load %arg7[%c0_3, %c0_4] : memref<8x512xf32, #tpu.memory_space<vmem>>, vector<8x512xf32>
    tpu.vector_store %arg7[%c0_3, %c0_4], %2 {strides = array<i32>} : memref<8x512xf32, #tpu.memory_space<vmem>>, vector<8x512xf32>,
    %c0_5 = arith.constant 0 : index
    %c0_6 = arith.constant 0 : index
    %c0_7 = arith.constant 0 : index
    %4 = vector.load %arg6[%c0_5, %c0_6, %c0_7] : memref<16x1x1xf32, #tpu.memory_space<vmem>>, vector<4x1x1xf32>
    %c4 = arith.constant 4 : index
    %c0_8 = arith.constant 0 : index
    %c0_9 = arith.constant 0 : index
    %5 = vector.load %arg6[%c4, %c0_8, %c0_9] : memref<16x1x1xf32, #tpu.memory_space<vmem>>, vector<4x1x1xf32>
    %c8 = arith.constant 8 : index
    %c0_10 = arith.constant 0 : index
    %c0_11 = arith.constant 0 : index
    %6 = vector.load %arg6[%c8, %c0_10, %c0_11] : memref<16x1x1xf32, #tpu.memory_space<vmem>>, vector<4x1x1xf32>
    %c12 = arith.constant 12 : index
    %c0_12 = arith.constant 0 : index
    %c0_13 = arith.constant 0 : index
    %7 = vector.load %arg6[%c12, %c0_12, %c0_13] : memref<16x1x1xf32, #tpu.memory_space<vmem>>, vector<4x1x1xf32>
    %8 = vector.extract_strided_slice %2 {offsets = [0, 0], sizes = [8, 128], strides = [1, 1]} : vector<8x512xf32> to vector<8x128xf32>
    %9 = vector.extract_strided_slice %2 {offsets = [0, 128], sizes = [8, 128], strides = [1, 1]} : vector<8x512xf32> to vector<8x128xf32>
    %10 = vector.extract_strided_slice %2 {offsets = [0, 256], sizes = [8, 128], strides = [1, 1]} : vector<8x512xf32> to vector<8x128xf32>
    %11 = vector.extract_strided_slice %2 {offsets = [0, 384], sizes = [8, 128], strides = [1, 1]} : vector<8x512xf32> to vector<8x128xf32>
    %12 = vector.shape_cast %8 : vector<8x128xf32> to vector<1x8x128xf32>
    %13 = vector.broadcast %12 : vector<1x8x128xf32> to vector<4x8x128xf32>
    %14 = vector.broadcast %4 : vector<4x1x1xf32> to vector<4x8x128xf32>
    %15 = arith.subf %13, %14 : vector<4x8x128xf32>
    %16 = arith.mulf %15, %15 : vector<4x8x128xf32>
    %17 = vector.shape_cast %9 : vector<8x128xf32> to vector<1x8x128xf32>
    %18 = vector.broadcast %17 : vector<1x8x128xf32> to vector<4x8x128xf32>
    %19 = vector.broadcast %5 : vector<4x1x1xf32> to vector<4x8x128xf32>
    %20 = arith.subf %18, %19 : vector<4x8x128xf32>
    %21 = arith.mulf %20, %20 : vector<4x8x128xf32>
    %22 = arith.addf %16, %21 : vector<4x8x128xf32>
    %cst_14 = arith.constant 4.000000e+00 : f32
    %23 = vector.broadcast %cst_14 : f32 to vector<4x8x128xf32>
    %24 = arith.mulf %22, %23 : vector<4x8x128xf32>
    %25 = vector.broadcast %7 : vector<4x1x1xf32> to vector<4x8x128xf32>
    %26 = arith.subf %25, %24 : vector<4x8x128xf32>
    %cst_15 = arith.constant dense<0xFF800000> : vector<8x128xf32>
    %27 = vector.multi_reduction <maximumf>, %26, %cst_15 [0] : vector<4x8x128xf32> to vector<8x128xf32>
    %28 = vector.shape_cast %27 : vector<8x128xf32> to vector<1x8x128xf32>
    %29 = vector.broadcast %28 : vector<1x8x128xf32> to vector<4x8x128xf32>
    %30 = arith.subf %26, %29 : vector<4x8x128xf32>
    %31 = math.exp %30 : vector<4x8x128xf32>
    %cst_16 = arith.constant dense<0.000000e+00> : vector<8x128xf32>
    %32 = vector.multi_reduction <add>, %31, %cst_16 [0] : vector<4x8x128xf32> to vector<8x128xf32>
    %33 = vector.shape_cast %32 : vector<8x128xf32> to vector<1x8x128xf32>
    %34 = tpu.reciprocal %33 {approx = true} : vector<1x8x128xf32> -> vector<1x8x128xf32>
    %35 = vector.broadcast %34 : vector<1x8x128xf32> to vector<4x8x128xf32>
    %36 = arith.mulf %31, %35 : vector<4x8x128xf32>
    %37 = vector.broadcast %4 : vector<4x1x1xf32> to vector<4x8x128xf32>
    %38 = arith.mulf %36, %37 : vector<4x8x128xf32>
    %cst_17 = arith.constant dense<0.000000e+00> : vector<8x128xf32>
    %39 = vector.multi_reduction <add>, %38, %cst_17 [0] : vector<4x8x128xf32> to vector<8x128xf32>
    %40 = vector.broadcast %5 : vector<4x1x1xf32> to vector<4x8x128xf32>
    %41 = arith.mulf %36, %40 : vector<4x8x128xf32>
    %cst_18 = arith.constant dense<0.000000e+00> : vector<8x128xf32>
    %42 = vector.multi_reduction <add>, %41, %cst_18 [0] : vector<4x8x128xf32> to vector<8x128xf32>
    %43 = vector.broadcast %6 : vector<4x1x1xf32> to vector<4x8x128xf32>
    %44 = arith.mulf %36, %43 : vector<4x8x128xf32>
    %cst_19 = arith.constant dense<0.000000e+00> : vector<8x128xf32>
    %45 = vector.multi_reduction <add>, %44, %cst_19 [0] : vector<4x8x128xf32> to vector<8x128xf32>
    %46 = arith.mulf %39, %39 : vector<8x128xf32>
    %47 = arith.mulf %42, %42 : vector<8x128xf32>
    %48 = arith.addf %46, %47 : vector<8x128xf32>
    %49 = arith.subf %45, %48 : vector<8x128xf32>
    %50 = arith.mulf %36, %22 : vector<4x8x128xf32>
    %cst_20 = arith.constant dense<0.000000e+00> : vector<8x128xf32>
    %51 = vector.multi_reduction <add>, %50, %cst_20 [0] : vector<4x8x128xf32> to vector<8x128xf32>
    %cst_21 = arith.constant -4.000000e+00 : f32
    %52 = vector.broadcast %cst_21 : f32 to vector<8x128xf32>
    %53 = arith.mulf %52, %51 : vector<8x128xf32>
    %54 = vector.shape_cast %28 : vector<1x8x128xf32> to vector<8x128xf32>
    %55 = vector.shape_cast %33 : vector<1x8x128xf32> to vector<8x128xf32>
    %56 = math.log %55 : vector<8x128xf32>
    %57 = arith.addf %54, %56 : vector<8x128xf32>
    %58 = arith.subf %53, %57 : vector<8x128xf32>
    %c0_22 = arith.constant 0 : index
    %c0_23 = arith.constant 0 : index
    %c0_24 = arith.constant 0 : index
    %59 = vector.load %arg8[%c0_22, %c0_23, %c0_24] : memref<4x8x256xf32, #tpu.memory_space<vmem>>, vector<4x8x128xf32>
    tpu.vector_store %arg8[%c0_22, %c0_23, %c0_24], %36 {strides = array<i32>} : memref<4x8x256xf32, #tpu.memory_space<vmem>>, vector<4x8x128xf32>,
    %60 = vector.shape_cast %10 : vector<8x128xf32> to vector<1x8x128xf32>
    %61 = vector.broadcast %60 : vector<1x8x128xf32> to vector<4x8x128xf32>
    %62 = vector.broadcast %4 : vector<4x1x1xf32> to vector<4x8x128xf32>
    %63 = arith.subf %61, %62 : vector<4x8x128xf32>
    %64 = arith.mulf %63, %63 : vector<4x8x128xf32>
    %65 = vector.shape_cast %11 : vector<8x128xf32> to vector<1x8x128xf32>
    %66 = vector.broadcast %65 : vector<1x8x128xf32> to vector<4x8x128xf32>
    %67 = vector.broadcast %5 : vector<4x1x1xf32> to vector<4x8x128xf32>
    %68 = arith.subf %66, %67 : vector<4x8x128xf32>
    %69 = arith.mulf %68, %68 : vector<4x8x128xf32>
    %70 = arith.addf %64, %69 : vector<4x8x128xf32>
    %cst_25 = arith.constant 4.000000e+00 : f32
    %71 = vector.broadcast %cst_25 : f32 to vector<4x8x128xf32>
    %72 = arith.mulf %70, %71 : vector<4x8x128xf32>
    %73 = vector.broadcast %7 : vector<4x1x1xf32> to vector<4x8x128xf32>
    %74 = arith.subf %73, %72 : vector<4x8x128xf32>
    %cst_26 = arith.constant dense<0xFF800000> : vector<8x128xf32>
    %75 = vector.multi_reduction <maximumf>, %74, %cst_26 [0] : vector<4x8x128xf32> to vector<8x128xf32>
    %76 = vector.shape_cast %75 : vector<8x128xf32> to vector<1x8x128xf32>
    %77 = vector.broadcast %76 : vector<1x8x128xf32> to vector<4x8x128xf32>
    %78 = arith.subf %74, %77 : vector<4x8x128xf32>
    %79 = math.exp %78 : vector<4x8x128xf32>
    %cst_27 = arith.constant dense<0.000000e+00> : vector<8x128xf32>
    %80 = vector.multi_reduction <add>, %79, %cst_27 [0] : vector<4x8x128xf32> to vector<8x128xf32>
    %81 = vector.shape_cast %80 : vector<8x128xf32> to vector<1x8x128xf32>
    %82 = tpu.reciprocal %81 {approx = true} : vector<1x8x128xf32> -> vector<1x8x128xf32>
    %83 = vector.broadcast %82 : vector<1x8x128xf32> to vector<4x8x128xf32>
    %84 = arith.mulf %79, %83 : vector<4x8x128xf32>
    %85 = vector.broadcast %4 : vector<4x1x1xf32> to vector<4x8x128xf32>
    %86 = arith.mulf %84, %85 : vector<4x8x128xf32>
    %cst_28 = arith.constant dense<0.000000e+00> : vector<8x128xf32>
    %87 = vector.multi_reduction <add>, %86, %cst_28 [0] : vector<4x8x128xf32> to vector<8x128xf32>
    %88 = vector.broadcast %5 : vector<4x1x1xf32> to vector<4x8x128xf32>
    %89 = arith.mulf %84, %88 : vector<4x8x128xf32>
    %cst_29 = arith.constant dense<0.000000e+00> : vector<8x128xf32>
    %90 = vector.multi_reduction <add>, %89, %cst_29 [0] : vector<4x8x128xf32> to vector<8x128xf32>
    %91 = vector.broadcast %6 : vector<4x1x1xf32> to vector<4x8x128xf32>
    %92 = arith.mulf %84, %91 : vector<4x8x128xf32>
    %cst_30 = arith.constant dense<0.000000e+00> : vector<8x128xf32>
    %93 = vector.multi_reduction <add>, %92, %cst_30 [0] : vector<4x8x128xf32> to vector<8x128xf32>
    %94 = arith.mulf %87, %87 : vector<8x128xf32>
    %95 = arith.mulf %90, %90 : vector<8x128xf32>
    %96 = arith.addf %94, %95 : vector<8x128xf32>
    %97 = arith.subf %93, %96 : vector<8x128xf32>
    %98 = arith.mulf %84, %70 : vector<4x8x128xf32>
    %cst_31 = arith.constant dense<0.000000e+00> : vector<8x128xf32>
    %99 = vector.multi_reduction <add>, %98, %cst_31 [0] : vector<4x8x128xf32> to vector<8x128xf32>
    %cst_32 = arith.constant -4.000000e+00 : f32
    %100 = vector.broadcast %cst_32 : f32 to vector<8x128xf32>
    %101 = arith.mulf %100, %99 : vector<8x128xf32>
    %102 = vector.shape_cast %76 : vector<1x8x128xf32> to vector<8x128xf32>
    %103 = vector.shape_cast %81 : vector<1x8x128xf32> to vector<8x128xf32>
    %104 = math.log %103 : vector<8x128xf32>
    %105 = arith.addf %102, %104 : vector<8x128xf32>
    %106 = arith.subf %101, %105 : vector<8x128xf32>
    %c0_33 = arith.constant 0 : index
    %c0_34 = arith.constant 0 : index
    %c128 = arith.constant 128 : index
    %107 = vector.load %arg8[%c0_33, %c0_34, %c128] : memref<4x8x256xf32, #tpu.memory_space<vmem>>, vector<4x8x128xf32>
    tpu.vector_store %arg8[%c0_33, %c0_34, %c128], %84 {strides = array<i32>} : memref<4x8x256xf32, #tpu.memory_space<vmem>>, vector<4x8x128xf32>,
    %108 = arith.truncf %39 : vector<8x128xf32> to vector<8x128xbf16>
    %109 = arith.truncf %42 : vector<8x128xf32> to vector<8x128xbf16>
    %110 = arith.truncf %87 : vector<8x128xf32> to vector<8x128xbf16>
    %111 = arith.truncf %90 : vector<8x128xf32> to vector<8x128xbf16>
    %112 = tpu.concatenate %108, %109, %110, %111 in 1 : vector<8x128xbf16>, vector<8x128xbf16>, vector<8x128xbf16>, vector<8x128xbf16> -> vector<8x512xbf16>
    %c0_35 = arith.constant 0 : index
    %c0_36 = arith.constant 0 : index
    %113 = vector.load %arg4[%c0_35, %c0_36] : memref<512x512xbf16, #tpu.memory_space<vmem>>, vector<512x512xbf16>
    %cst_37 = arith.constant dense<0.000000e+00> : vector<8x512xf32>
    %114 = tpu.matmul %112, %113, %cst_37 {dimension_numbers = #tpu.dot_dimension_numbers<[1], [0], [0], [1], [0, 0, 1, 1], [], []>} : vector<8x512xbf16>, vector<512x512xbf16>, vector<8x512xf32> -> vector<8x512xf32>
    %115 = arith.truncf %49 : vector<8x128xf32> to vector<8x128xbf16>
    %116 = arith.truncf %97 : vector<8x128xf32> to vector<8x128xbf16>
    %117 = tpu.concatenate %115, %116 in 1 : vector<8x128xbf16>, vector<8x128xbf16> -> vector<8x256xbf16>
    %c0_38 = arith.constant 0 : index
    %c0_39 = arith.constant 0 : index
    %118 = vector.load %arg5[%c0_38, %c0_39] : memref<256x256xbf16, #tpu.memory_space<vmem>>, vector<256x256xbf16>
    %cst_40 = arith.constant dense<0.000000e+00> : vector<8x256xf32>
    %119 = tpu.matmul %117, %118, %cst_40 {dimension_numbers = #tpu.dot_dimension_numbers<[1], [0], [0], [1], [0, 0, 1, 1], [], []>} : vector<8x256xbf16>, vector<256x256xbf16>, vector<8x256xf32> -> vector<8x256xf32>
    %c0_41 = arith.constant 0 : index
    %c0_42 = arith.constant 0 : index
    %120 = vector.load %arg2[%c0_41, %c0_42] : memref<8x512xf32, #tpu.memory_space<vmem>>, vector<8x512xf32>
    %121 = vector.extract_strided_slice %120 {offsets = [0, 0], sizes = [8, 128], strides = [1, 1]} : vector<8x512xf32> to vector<8x128xf32>
    %122 = vector.extract_strided_slice %120 {offsets = [0, 128], sizes = [8, 128], strides = [1, 1]} : vector<8x512xf32> to vector<8x128xf32>
    %123 = vector.extract_strided_slice %120 {offsets = [0, 256], sizes = [8, 128], strides = [1, 1]} : vector<8x512xf32> to vector<8x128xf32>
    %124 = vector.extract_strided_slice %120 {offsets = [0, 384], sizes = [8, 128], strides = [1, 1]} : vector<8x512xf32> to vector<8x128xf32>
    %125 = vector.extract_strided_slice %114 {offsets = [0, 0], sizes = [8, 128], strides = [1, 1]} : vector<8x512xf32> to vector<8x128xf32>
    %126 = vector.extract_strided_slice %114 {offsets = [0, 128], sizes = [8, 128], strides = [1, 1]} : vector<8x512xf32> to vector<8x128xf32>
    %127 = vector.extract_strided_slice %114 {offsets = [0, 256], sizes = [8, 128], strides = [1, 1]} : vector<8x512xf32> to vector<8x128xf32>
    %128 = vector.extract_strided_slice %114 {offsets = [0, 384], sizes = [8, 128], strides = [1, 1]} : vector<8x512xf32> to vector<8x128xf32>
    %129 = vector.extract_strided_slice %119 {offsets = [0, 0], sizes = [8, 128], strides = [1, 1]} : vector<8x256xf32> to vector<8x128xf32>
    %130 = vector.extract_strided_slice %119 {offsets = [0, 128], sizes = [8, 128], strides = [1, 1]} : vector<8x256xf32> to vector<8x128xf32>
    %131 = arith.mulf %121, %121 : vector<8x128xf32>
    %132 = arith.mulf %122, %122 : vector<8x128xf32>
    %133 = arith.addf %131, %132 : vector<8x128xf32>
    %134 = arith.mulf %121, %125 : vector<8x128xf32>
    %135 = arith.mulf %122, %126 : vector<8x128xf32>
    %136 = arith.addf %134, %135 : vector<8x128xf32>
    %cst_43 = arith.constant 2.000000e+00 : f32
    %137 = vector.broadcast %cst_43 : f32 to vector<8x128xf32>
    %138 = arith.mulf %137, %136 : vector<8x128xf32>
    %139 = arith.subf %133, %138 : vector<8x128xf32>
    %140 = arith.mulf %125, %125 : vector<8x128xf32>
    %141 = arith.addf %139, %140 : vector<8x128xf32>
    %142 = arith.mulf %126, %126 : vector<8x128xf32>
    %143 = arith.addf %141, %142 : vector<8x128xf32>
    %144 = arith.addf %143, %129 : vector<8x128xf32>
    %cst_44 = arith.constant dense<0.000000e+00> : vector<8xf32>
    %145 = vector.multi_reduction <add>, %144, %cst_44 [1] : vector<8x128xf32> to vector<8xf32>
    %146 = vector.shape_cast %145 : vector<8xf32> to vector<8x1xf32>
    %147 = arith.mulf %123, %123 : vector<8x128xf32>
    %148 = arith.mulf %124, %124 : vector<8x128xf32>
    %149 = arith.addf %147, %148 : vector<8x128xf32>
    %150 = arith.mulf %123, %127 : vector<8x128xf32>
    %151 = arith.mulf %124, %128 : vector<8x128xf32>
    %152 = arith.addf %150, %151 : vector<8x128xf32>
    %cst_45 = arith.constant 2.000000e+00 : f32
    %153 = vector.broadcast %cst_45 : f32 to vector<8x128xf32>
    %154 = arith.mulf %153, %152 : vector<8x128xf32>
    %155 = arith.subf %149, %154 : vector<8x128xf32>
    %156 = arith.mulf %127, %127 : vector<8x128xf32>
    %157 = arith.addf %155, %156 : vector<8x128xf32>
    %158 = arith.mulf %128, %128 : vector<8x128xf32>
    %159 = arith.addf %157, %158 : vector<8x128xf32>
    %160 = arith.addf %159, %130 : vector<8x128xf32>
    %cst_46 = arith.constant dense<0.000000e+00> : vector<8xf32>
    %161 = vector.multi_reduction <add>, %160, %cst_46 [1] : vector<8x128xf32> to vector<8xf32>
    %162 = vector.shape_cast %161 : vector<8xf32> to vector<8x1xf32>
    %163 = tpu.iota {dimensions = array<i32: 1>} : vector<8x128xi32>
    %c1_i32 = arith.constant 1 : i32
    %164 = vector.broadcast %c1_i32 : i32 to vector<8x128xi32>
    %165 = arith.cmpi sge, %163, %164 : vector<8x128xi32>
    %c7_i32 = arith.constant 7 : i32
    %166 = vector.broadcast %c7_i32 : i32 to vector<8x128xi32>
    %167 = arith.cmpi slt, %163, %166 : vector<8x128xi32>
    %168 = arith.andi %165, %167 : vector<8x128xi1>
    %169 = arith.addf %58, %106 : vector<8x128xf32>
    %cst_47 = arith.constant 0.000000e+00 : f32
    %170 = vector.broadcast %cst_47 : f32 to vector<8x128xf32>
    %171 = arith.select %168, %169, %170 : vector<8x128xi1>, vector<8x128xf32>
    %cst_48 = arith.constant dense<0.000000e+00> : vector<8xf32>
    %172 = vector.multi_reduction <add>, %171, %cst_48 [1] : vector<8x128xf32> to vector<8xf32>
    %173 = vector.shape_cast %172 : vector<8xf32> to vector<8x1xf32>
    %cst_49 = arith.constant 9.99999982E-15 : f32
    %174 = vector.broadcast %cst_49 : f32 to vector<8x1xf32>
    %175 = arith.addf %146, %174 : vector<8x1xf32>
    %176 = math.log %175 : vector<8x1xf32>
    %cst_50 = arith.constant 9.99999982E-15 : f32
    %177 = vector.broadcast %cst_50 : f32 to vector<8x1xf32>
    %178 = arith.addf %162, %177 : vector<8x1xf32>
    %179 = math.log %178 : vector<8x1xf32>
    %180 = arith.addf %176, %179 : vector<8x1xf32>
    %cst_51 = arith.constant 1.400000e+01 : f32
    %181 = vector.broadcast %cst_51 : f32 to vector<8x1xf32>
    %182 = arith.mulf %181, %180 : vector<8x1xf32>
    %183 = arith.addf %173, %182 : vector<8x1xf32>
    %184 = tpu.iota {dimensions = array<i32: 1>} : vector<8x128xi32>
    %c0_i32 = arith.constant 0 : i32
    %185 = vector.broadcast %c0_i32 : i32 to vector<8x128xi32>
    %186 = arith.cmpi eq, %184, %185 : vector<8x128xi32>
    %cst_52 = arith.constant 0.000000e+00 : f32
    %187 = vector.shape_cast %183 : vector<8x1xf32> to vector<8x1xf32>
    %188 = vector.broadcast %187 : vector<8x1xf32> to vector<8x128xf32>
    %189 = vector.broadcast %cst_52 : f32 to vector<8x128xf32>
    %190 = arith.select %186, %188, %189 : vector<8x128xi1>, vector<8x128xf32>
    %c1_i32_53 = arith.constant 1 : i32
    %191 = vector.broadcast %c1_i32_53 : i32 to vector<8x128xi32>
    %192 = arith.cmpi eq, %184, %191 : vector<8x128xi32>
    %cst_54 = arith.constant 0.0714285746 : f32
    %193 = vector.broadcast %cst_54 : f32 to vector<8x1xf32>
    %194 = arith.mulf %146, %193 : vector<8x1xf32>
    %cst_55 = arith.constant 0.000000e+00 : f32
    %195 = vector.shape_cast %194 : vector<8x1xf32> to vector<8x1xf32>
    %196 = vector.broadcast %195 : vector<8x1xf32> to vector<8x128xf32>
    %197 = vector.broadcast %cst_55 : f32 to vector<8x128xf32>
    %198 = arith.select %192, %196, %197 : vector<8x128xi1>, vector<8x128xf32>
    %199 = arith.addf %190, %198 : vector<8x128xf32>
    %c2_i32 = arith.constant 2 : i32
    %200 = vector.broadcast %c2_i32 : i32 to vector<8x128xi32>
    %201 = arith.cmpi eq, %184, %200 : vector<8x128xi32>
    %cst_56 = arith.constant 0.0714285746 : f32
    %202 = vector.broadcast %cst_56 : f32 to vector<8x1xf32>
    %203 = arith.mulf %162, %202 : vector<8x1xf32>
    %cst_57 = arith.constant 0.000000e+00 : f32
    %204 = vector.shape_cast %203 : vector<8x1xf32> to vector<8x1xf32>
    %205 = vector.broadcast %204 : vector<8x1xf32> to vector<8x128xf32>
    %206 = vector.broadcast %cst_57 : f32 to vector<8x128xf32>
    %207 = arith.select %201, %205, %206 : vector<8x128xi1>, vector<8x128xf32>
    %208 = arith.addf %199, %207 : vector<8x128xf32>
    %c0_58 = arith.constant 0 : index
    %c0_59 = arith.constant 0 : index
    %209 = vector.load %arg9[%c0_58, %c0_59] : memref<8x128xf32, #tpu.memory_space<vmem>>, vector<8x128xf32>
    tpu.vector_store %arg9[%c0_58, %c0_59], %208 {strides = array<i32>} : memref<8x128xf32, #tpu.memory_space<vmem>>, vector<8x128xf32>,
    return
  }
  func.func @transform_0(%arg0: i32) -> (i32, i32) {
    %c0_i32 = arith.constant 0 : i32
    %c0_i32_0 = arith.constant 0 : i32
    return %arg0, %c0_i32 : i32, i32
  }
  func.func @transform_1(%arg0: i32) -> (i32, i32) {
    %c0_i32 = arith.constant 0 : i32
    %c0_i32_0 = arith.constant 0 : i32
    return %arg0, %c0_i32 : i32, i32
  }
  func.func @transform_2(%arg0: i32) -> (i32, i32) {
    %c0_i32 = arith.constant 0 : i32
    %c0_i32_0 = arith.constant 0 : i32
    %c0_i32_1 = arith.constant 0 : i32
    return %c0_i32, %c0_i32_0 : i32, i32
  }
  func.func @transform_3(%arg0: i32) -> (i32, i32) {
    %c0_i32 = arith.constant 0 : i32
    %c0_i32_0 = arith.constant 0 : i32
    %c0_i32_1 = arith.constant 0 : i32
    return %c0_i32, %c0_i32_0 : i32, i32
  }
  func.func @transform_4(%arg0: i32) -> (i32, i32) {
    %c0_i32 = arith.constant 0 : i32
    %c0_i32_0 = arith.constant 0 : i32
    %c0_i32_1 = arith.constant 0 : i32
    return %c0_i32, %c0_i32_0 : i32, i32
  }
  func.func @transform_5(%arg0: i32) -> (i32, i32, i32) {
    %c0_i32 = arith.constant 0 : i32
    %c0_i32_0 = arith.constant 0 : i32
    %c0_i32_1 = arith.constant 0 : i32
    %c0_i32_2 = arith.constant 0 : i32
    return %c0_i32, %c0_i32_0, %c0_i32_1 : i32, i32, i32
  }
  func.func @transform_6(%arg0: i32) -> (i32, i32) {
    %c0_i32 = arith.constant 0 : i32
    %c0_i32_0 = arith.constant 0 : i32
    return %arg0, %c0_i32 : i32, i32
  }
  func.func @transform_7(%arg0: i32) -> (i32, i32, i32) {
    %c0_i32 = arith.constant 0 : i32
    %c0_i32_0 = arith.constant 0 : i32
    %c0_i32_1 = arith.constant 0 : i32
    return %c0_i32, %arg0, %c0_i32_0 : i32, i32, i32
  }
  func.func @transform_8(%arg0: i32) -> (i32, i32) {
    %c0_i32 = arith.constant 0 : i32
    %c0_i32_0 = arith.constant 0 : i32
    return %arg0, %c0_i32 : i32, i32
  }
}

</mosaic_0001>

<bundles_post_ra>
// kernel: custom-call
= control target key start
LH: loop header
LB: loop body
LE: loop exit
PB: predicated region body
PF: predicated region fallthrough
CT: control target
= control target key end

     0   :  { %s105_s0 = inlined_call_operand.vmem [shape: f32[2,24], index: 0, kind: input, shape index: {}]   ;;  %s106_s1 = inlined_call_operand.vmem [shape: f32[2,24], index: 1, kind: input, shape index: {}]   ;;  %s107_s2 = inlined_call_operand.hbm [shape: c64[2,24], index: 2, kind: output, shape index: {}]  }
   0x1   :  { %s3_s11 = scalar_lea.hbm %s107_s2, 2 }
   0x2   :  { %4 = vsyncpa [#allocation0], 0  ;;  %s6_s14 = sshll.u32 %s105_s0, 4  ;;  %s8_s17 = sshll.u32 %s107_s2, 4  ;;  %s7_s14 = int_to_ptr.vmem [resolvable:$true] %s6_s14  ;;  %s9_s17 = int_to_ptr.hbm [resolvable:$true] %s8_s17 }
   0x3   :  { %11 = dma.vmem_to_hbm [thread:$0]  %s7_s14, 32, %s9_s17, [#allocation0] }
   0x4   :  { %74 = dma.done.wait [#allocation0], 32  }
   0x5   :  { %75 = vsyncadd [#allocation0], 4294967264 }
   0x6   :  { %14 = vsyncpa [#allocation0], 1 }
   0x7   :  { %15 = vsyncpa [#allocation1], 0  ;;  %s17_s20 = sshll.u32 %s106_s1, 4  ;;  %s19_s21 = sshll.u32 %s3_s11, 4  ;;  %s18_s20 = int_to_ptr.vmem [resolvable:$true] %s17_s20  ;;  %s20_s21 = int_to_ptr.hbm [resolvable:$true] %s19_s21 }
   0x8   :  { %22 = dma.vmem_to_hbm [thread:$0]  %s18_s20, 32, %s20_s21, [#allocation1] }
   0x9   :  { %76 = dma.done.wait [#allocation1], 32  }
   0xa   :  { %77 = vsyncadd [#allocation1], 4294967264 }
   0xb   :  { %25 = vsyncpa [#allocation1], 1 }

// kernel: forward.1
= control target key start
LH: loop header
LB: loop body
LE: loop exit
PB: predicated region body
PF: predicated region fallthrough
CT: control target
= control target key end

     0   :  { %s6289_s2 = inlined_call_operand.vmem [shape: bf16[512,512], index: 2, kind: input, shape index: {}]   ;;  %s6290_s0 = inlined_call_operand.vmem [shape: bf16[8,512], index: 0, kind: input, shape index: {}]   ;;  %s6291_s5 = inlined_call_operand.vmem [shape: f32[16,1,1], index: 5, kind: input, shape index: {}]   ;;  %s6292_s3 = inlined_call_operand.vmem [shape: bf16[512,512], index: 3, kind: input, shape index: {}]   ;;  %s6293_s6 = inlined_call_operand.vmem [shape: f32[8,512], index: 6, kind: output, shape index: {0}]   ;;  %s6294_s7 = inlined_call_operand.vmem [shape: f32[4,8,256], index: 7, kind: output, shape index: {1}]   ;;  %s6295_s4 = inlined_call_operand.vmem [shape: bf16[256,256], index: 4, kind: input, shape index: {}]   ;;  %s6296_s1 = inlined_call_operand.vmem [shape: f32[8,512], index: 1, kind: input, shape index: {}]   ;;  %s6297_s8 = inlined_call_operand.vmem [shape: f32[8,128], index: 8, kind: output, shape index: {2}]  }
   0x1   :  { %v2736_v0 = vld [vmem:[%s6289_s2 + $0xe0] sm:$0xf]  ;;  %v3816_v1 = vld [vmem:[%s6289_s2 + $0xec] sm:$0xf0] }
   0x2   :  { %v2864_v2 = vld [vmem:[%s6289_s2 + $0x1e0] sm:$0xf]  ;;  %v2737_v3 = vor.u32 %v3816_v1, %v2736_v0  ;;  %v3848_v4 = vld [vmem:[%s6289_s2 + $0x1ec] sm:$0xf0] }
   0x3   :  { %v2992_v5 = vld [vmem:[%s6289_s2 + $0x2e0] sm:$0xf]  ;;  %v3880_v6 = vld [vmem:[%s6289_s2 + $0x2ec] sm:$0xf0]  ;;  %v2865_v7 = vor.u32 %v3848_v4, %v2864_v2 }
   0x4   :  { %v2993_v8 = vor.u32 %v3880_v6, %v2992_v5  ;;  %v3120_v9 = vld [vmem:[%s6289_s2 + $0x3e0] sm:$0xf]  ;;  %v3912_v10 = vld [vmem:[%s6289_s2 + $0x3ec] sm:$0xf0]  ;;  %810 = vmatpush.bf16.msra.mxu0 %v2737_v3 }
   0x5   :  { %v2720_v11 = vld [vmem:[%s6289_s2 + $0xc0] sm:$0xf]  ;;  %v3121_v12 = vor.u32 %v3912_v10, %v3120_v9  ;;  %v3812_v13 = vld [vmem:[%s6289_s2 + $0xcc] sm:$0xf0]  ;;  %823 = vmatpush.bf16.msra.mxu1 %v2865_v7 }
   0x6   :  { %v2848_v14 = vld [vmem:[%s6289_s2 + $0x1c0] sm:$0xf]  ;;  %v3844_v15 = vld [vmem:[%s6289_s2 + $0x1cc] sm:$0xf0]  ;;  %836 = vmatpush.bf16.msra.mxu2 %v2993_v8  ;;  %v2721_v16 = vor.u32 %v3812_v13, %v2720_v11 }
   0x7   :  { %v2849_v17 = vor.u32 %v3844_v15, %v2848_v14  ;;  %v2976_v18 = vld [vmem:[%s6289_s2 + $0x2c0] sm:$0xf]  ;;  %v3876_v19 = vld [vmem:[%s6289_s2 + $0x2cc] sm:$0xf0]  ;;  %849 = vmatpush.bf16.msra.mxu3 %v3121_v12 }
   0x8   :  { %v3104_v20 = vld [vmem:[%s6289_s2 + $0x3c0] sm:$0xf]  ;;  %v2977_v21 = vor.u32 %v3876_v19, %v2976_v18  ;;  %v3908_v22 = vld [vmem:[%s6289_s2 + $0x3cc] sm:$0xf0]  ;;  %811 = vmatpush.bf16.msra.mxu0 %v2721_v16 }
   0x9   :  { %v2704_v23 = vld [vmem:[%s6289_s2 + $0xa0] sm:$0xf]  ;;  %v3808_v24 = vld [vmem:[%s6289_s2 + $0xac] sm:$0xf0]  ;;  %v3105_v25 = vor.u32 %v3908_v22, %v3104_v20  ;;  %824 = vmatpush.bf16.msra.mxu1 %v2849_v17 }
   0xa   :  { %v2832_v26 = vld [vmem:[%s6289_s2 + $0x1a0] sm:$0xf]  ;;  %v3840_v27 = vld [vmem:[%s6289_s2 + $0x1ac] sm:$0xf0]  ;;  %v2705_v29 = vor.u32 %v3808_v24, %v2704_v23  ;;  %837 = vmatpush.bf16.msra.mxu2 %v2977_v21 }
   0xb   :  { %v2960_v28 = vld [vmem:[%s6289_s2 + $0x2a0] sm:$0xf]  ;;  %v3872_v30 = vld [vmem:[%s6289_s2 + $0x2ac] sm:$0xf0]  ;;  %v2833_v33 = vor.u32 %v3840_v27, %v2832_v26  ;;  %850 = vmatpush.bf16.msra.mxu3 %v3105_v25 }
   0xc   :  { %v3088_v31 = vld [vmem:[%s6289_s2 + $0x3a0] sm:$0xf]  ;;  %v3904_v32 = vld [vmem:[%s6289_s2 + $0x3ac] sm:$0xf0]  ;;  %v2961_v34 = vor.u32 %v3872_v30, %v2960_v28  ;;  %812 = vmatpush.bf16.msra.mxu0 %v2705_v29  ;;  %v3814_v28 = vld [vmem:[%s6289_s2 + $0xe4] sm:$0xf] }
   0xd   :  { %v2688_v35 = vld [vmem:[%s6289_s2 + $0x80] sm:$0xf]  ;;  %v3804_v36 = vld [vmem:[%s6289_s2 + $0x8c] sm:$0xf0]  ;;  %v3089_v38 = vor.u32 %v3904_v32, %v3088_v31  ;;  %825 = vmatpush.bf16.msra.mxu1 %v2833_v33  ;;  %v2738_v29 = vld [vmem:[%s6289_s2 + $0xf0] sm:$0xf0] }
   0xe   :  { %v2816_v37 = vld [vmem:[%s6289_s2 + $0x180] sm:$0xf]  ;;  %v3836_v39 = vld [vmem:[%s6289_s2 + $0x18c] sm:$0xf0]  ;;  %v2689_v44 = vor.u32 %v3804_v36, %v2688_v35  ;;  %838 = vmatpush.bf16.msra.mxu2 %v2961_v34  ;;  %v3846_v30 = vld [vmem:[%s6289_s2 + $0x1e4] sm:$0xf] }
   0xf   :  { %v2944_v40 = vld [vmem:[%s6289_s2 + $0x280] sm:$0xf]  ;;  %v3868_v41 = vld [vmem:[%s6289_s2 + $0x28c] sm:$0xf0]  ;;  %v2817_v45 = vor.u32 %v3836_v39, %v2816_v37  ;;  %851 = vmatpush.bf16.msra.mxu3 %v3089_v38  ;;  %v2866_v32 = vld [vmem:[%s6289_s2 + $0x1f0] sm:$0xf0] }
  0x10   :  { %v3072_v42 = vld [vmem:[%s6289_s2 + $0x380] sm:$0xf]  ;;  %v3900_v43 = vld [vmem:[%s6289_s2 + $0x38c] sm:$0xf0]  ;;  %v2945_v46 = vor.u32 %v3868_v41, %v2944_v40  ;;  %813 = vmatpush.bf16.msra.mxu0 %v2689_v44  ;;  %v3878_v33 = vld [vmem:[%s6289_s2 + $0x2e4] sm:$0xf]  ;;  %v2741_v40 = vor.u32 %v3814_v28, %v2738_v29  ;;  %v2869_v41 = vor.u32 %v3846_v30, %v2866_v32 }
  0x11   :  { %v2672_v47 = vld [vmem:[%s6289_s2 + $0x60] sm:$0xf]  ;;  %v3800_v48 = vld [vmem:[%s6289_s2 + $0x6c] sm:$0xf0]  ;;  %v3073_v50 = vor.u32 %v3900_v43, %v3072_v42  ;;  %826 = vmatpush.bf16.msra.mxu1 %v2817_v45  ;;  %v2994_v34 = vld [vmem:[%s6289_s2 + $0x2f0] sm:$0xf0] }
  0x12   :  { %v2800_v49 = vld [vmem:[%s6289_s2 + $0x160] sm:$0xf]  ;;  %v3832_v51 = vld [vmem:[%s6289_s2 + $0x16c] sm:$0xf0]  ;;  %v2673_v56 = vor.u32 %v3800_v48, %v2672_v47  ;;  %839 = vmatpush.bf16.msra.mxu2 %v2945_v46  ;;  %v3910_v37 = vld [vmem:[%s6289_s2 + $0x3e4] sm:$0xf]  ;;  %v2997_v42 = vor.u32 %v3878_v33, %v2994_v34 }
  0x13   :  { %v2928_v52 = vld [vmem:[%s6289_s2 + $0x260] sm:$0xf]  ;;  %v3864_v53 = vld [vmem:[%s6289_s2 + $0x26c] sm:$0xf0]  ;;  %v2801_v57 = vor.u32 %v3832_v51, %v2800_v49  ;;  %852 = vmatpush.bf16.msra.mxu3 %v3073_v50  ;;  %v3122_v38 = vld [vmem:[%s6289_s2 + $0x3f0] sm:$0xf0] }
  0x14   :  { %v3056_v54 = vld [vmem:[%s6289_s2 + $0x360] sm:$0xf]  ;;  %v3896_v55 = vld [vmem:[%s6289_s2 + $0x36c] sm:$0xf0]  ;;  %v2929_v58 = vor.u32 %v3864_v53, %v2928_v52  ;;  %814 = vmatpush.bf16.msra.mxu0 %v2673_v56  ;;  %v3810_v43 = vld [vmem:[%s6289_s2 + $0xc4] sm:$0xf]  ;;  %v3125_v46 = vor.u32 %v3910_v37, %v3122_v38 }
  0x15   :  { %v2656_v59 = vld [vmem:[%s6289_s2 + $0x40] sm:$0xf]  ;;  %v3796_v60 = vld [vmem:[%s6289_s2 + $0x4c] sm:$0xf0]  ;;  %v3057_v62 = vor.u32 %v3896_v55, %v3056_v54  ;;  %827 = vmatpush.bf16.msra.mxu1 %v2801_v57  ;;  %v2722_v44 = vld [vmem:[%s6289_s2 + $0xd0] sm:$0xf0] }
  0x16   :  { %v2784_v61 = vld [vmem:[%s6289_s2 + $0x140] sm:$0xf]  ;;  %v3828_v63 = vld [vmem:[%s6289_s2 + $0x14c] sm:$0xf0]  ;;  %v2657_v4 = vor.u32 %v3796_v60, %v2656_v59  ;;  %840 = vmatpush.bf16.msra.mxu2 %v2929_v58  ;;  %v3842_v45 = vld [vmem:[%s6289_s2 + $0x1c4] sm:$0xf]  ;;  %v2725_v53 = vor.u32 %v3810_v43, %v2722_v44 }
  0x17   :  { %v2912_v0 = vld [vmem:[%s6289_s2 + $0x240] sm:$0xf]  ;;  %v3860_v1 = vld [vmem:[%s6289_s2 + $0x24c] sm:$0xf0]  ;;  %v2785_v5 = vor.u32 %v3828_v63, %v2784_v61  ;;  %853 = vmatpush.bf16.msra.mxu3 %v3057_v62  ;;  %v2850_v47 = vld [vmem:[%s6289_s2 + $0x1d0] sm:$0xf0] }
  0x18   :  { %v3040_v2 = vld [vmem:[%s6289_s2 + $0x340] sm:$0xf]  ;;  %v3892_v3 = vld [vmem:[%s6289_s2 + $0x34c] sm:$0xf0]  ;;  %v2913_v6 = vor.u32 %v3860_v1, %v2912_v0  ;;  %815 = vmatpush.bf16.msra.mxu0 %v2657_v4  ;;  %v3874_v48 = vld [vmem:[%s6289_s2 + $0x2c4] sm:$0xf]  ;;  %v2853_v57 = vor.u32 %v3842_v45, %v2850_v47 }
  0x19   :  { %v2640_v7 = vld [vmem:[%s6289_s2 + $0x20] sm:$0xf]  ;;  %v3792_v8 = vld [vmem:[%s6289_s2 + $0x2c] sm:$0xf0]  ;;  %v3041_v10 = vor.u32 %v3892_v3, %v3040_v2  ;;  %828 = vmatpush.bf16.msra.mxu1 %v2785_v5  ;;  %v2978_v49 = vld [vmem:[%s6289_s2 + $0x2d0] sm:$0xf0] }
  0x1a   :  { %v2768_v9 = vld [vmem:[%s6289_s2 + $0x120] sm:$0xf]  ;;  %v3824_v11 = vld [vmem:[%s6289_s2 + $0x12c] sm:$0xf0]  ;;  %v2641_v16 = vor.u32 %v3792_v8, %v2640_v7  ;;  %841 = vmatpush.bf16.msra.mxu2 %v2913_v6  ;;  %v3906_v50 = vld [vmem:[%s6289_s2 + $0x3c4] sm:$0xf]  ;;  %v2981_v58 = vor.u32 %v3874_v48, %v2978_v49 }
  0x1b   :  { %v2896_v12 = vld [vmem:[%s6289_s2 + $0x220] sm:$0xf]  ;;  %v3856_v13 = vld [vmem:[%s6289_s2 + $0x22c] sm:$0xf0]  ;;  %v2769_v19 = vor.u32 %v3824_v11, %v2768_v9  ;;  %854 = vmatpush.bf16.msra.mxu3 %v3041_v10  ;;  %v3106_v51 = vld [vmem:[%s6289_s2 + $0x3d0] sm:$0xf0] }
  0x1c   :  { %v3024_v14 = vld [vmem:[%s6289_s2 + $0x320] sm:$0xf]  ;;  %v3888_v15 = vld [vmem:[%s6289_s2 + $0x32c] sm:$0xf0]  ;;  %v2897_v20 = vor.u32 %v3856_v13, %v2896_v12  ;;  %816 = vmatpush.bf16.msra.mxu0 %v2641_v16  ;;  %v27_v52 = vld [vmem:[%s6290_s0 + $0x8] sm:$0xff]  ;;  %v3109_v62 = vor.u32 %v3906_v50, %v3106_v51  ;;  %v4122_v49 = vmov 0  }
  0x1d   :  { %v2624_v17 = vld [vmem:[%s6289_s2] sm:$0xf]  ;;  %v3788_v18 = vld [vmem:[%s6289_s2 + $0xc] sm:$0xf0]  ;;  %v3025_v24 = vor.u32 %v3888_v15, %v3024_v14  ;;  %829 = vmatpush.bf16.msra.mxu1 %v2769_v19  ;;  %v3806_v54 = vld [vmem:[%s6289_s2 + $0xa4] sm:$0xf]  ;;  %v160_v55 = vunpack.c.l.b16 %v27_v52  ;;  %v161_v56 = vunpack.c.h.b16 %v27_v52  ;;  %4076 = vset.pattern.permute.xlu1 %v4122_v49 }
  0x1e   :  { %v2752_v21 = vld [vmem:[%s6289_s2 + $0x100] sm:$0xf]  ;;  %v3820_v22 = vld [vmem:[%s6289_s2 + $0x10c] sm:$0xf0]  ;;  %v2625_v31 = vor.u32 %v3788_v18, %v2624_v17  ;;  %842 = vmatpush.bf16.msra.mxu2 %v2897_v20  ;;  %v2706_v59 = vld [vmem:[%s6289_s2 + $0xb0] sm:$0xf0]  ;;  %4075 = vset.pattern.permute.xlu0 %v4122_v49 }
  0x1f   :  { %v2880_v23 = vld [vmem:[%s6289_s2 + $0x200] sm:$0xf]  ;;  %v3852_v25 = vld [vmem:[%s6289_s2 + $0x20c] sm:$0xf0]  ;;  %v2753_v35 = vor.u32 %v3820_v22, %v2752_v21  ;;  %855 = vmatpush.bf16.msra.mxu3 %v3025_v24  ;;  %v3838_v60 = vld [vmem:[%s6289_s2 + $0x1a4] sm:$0xf]  ;;  %v4429_v1 = vpack.c.b16 %v160_v55, %v160_v55  ;;  %v4440_v5 = vpack.c.b16 %v161_v56, %v161_v56  ;;  %v2709_v8 = vor.u32 %v3806_v54, %v2706_v59 }
  0x20   :  { %v3008_v26 = vld [vmem:[%s6289_s2 + $0x300] sm:$0xf]  ;;  %v3884_v27 = vld [vmem:[%s6289_s2 + $0x30c] sm:$0xf0]  ;;  %v2881_v36 = vor.u32 %v3852_v25, %v2880_v23  ;;  %817 = vmatpush.bf16.msra.mxu0 %v2625_v31  ;;  %v2834_v61 = vld [vmem:[%s6289_s2 + $0x1b0] sm:$0xf0]  ;;  %4077 = vset.pattern.permute.xlu2 %v4122_v49 }
  0x21   :  { %v3009_v39 = vor.u32 %v3884_v27, %v3008_v26  ;;  %830 = vmatpush.bf16.msra.mxu1 %v2753_v35  ;;  %v3870_v63 = vld [vmem:[%s6289_s2 + $0x2a4] sm:$0xf]  ;;  %v2962_v0 = vld [vmem:[%s6289_s2 + $0x2b0] sm:$0xf0]  ;;  %v2837_v9 = vor.u32 %v3838_v60, %v2834_v61  ;;  %v4078_v50 = vld [vmem:[%s6291_s5 + $0x2] ss:$0 sm:$0xff] }
  0x22   :  { %843 = vmatpush.bf16.msra.mxu2 %v2881_v36  ;;  %v26_v2 = vld [vmem:[%s6290_s0] sm:$0xff]  ;;  %v3090_v4 = vld [vmem:[%s6289_s2 + $0x3b0] sm:$0xf0]  ;;  %v2965_v10 = vor.u32 %v3870_v63, %v2962_v0  ;;  %1058 = vperm.xlu1 %4076, %v4078_v50   ;;  %v3096_v50 = vld [vmem:[%s6289_s2 + $0x3a8] sm:$0xf] }
  0x23   :  { %856 = vmatpush.bf16.msra.mxu3 %v3009_v39  ;;  %v3902_v3 = vld [vmem:[%s6289_s2 + $0x3a4] sm:$0xf]  ;;  %v158_v6 = vunpack.c.l.b16 %v26_v2  ;;  %v159_v7 = vunpack.c.h.b16 %v26_v2  ;;  %v2690_v12 = vld [vmem:[%s6289_s2 + $0x90] sm:$0xf0]  ;;  %v4079_v55 = vld [vmem:[%s6291_s5] ss:$0 sm:$0xff] }
  0x24   :  { %862 = vmatpush.bf16.msrb.mxu0 %v2741_v40  ;;  %v3802_v11 = vld [vmem:[%s6289_s2 + $0x84] sm:$0xf]  ;;  %v3093_v16 = vor.u32 %v3902_v3, %v3090_v4  ;;  %v2818_v17 = vld [vmem:[%s6289_s2 + $0x190] sm:$0xf0]  ;;  %1050 = vperm.xlu0 %4075, %v4079_v55  }
  0x25   :  { %875 = vmatpush.bf16.msrb.mxu1 %v2869_v41  ;;  %844 = vmatmul.bf16.vlgmr.msra.gmra.mxu2 %v4429_v1  ;;  %v3834_v13 = vld [vmem:[%s6289_s2 + $0x184] sm:$0xf]  ;;  %v4452_v14 = vpack.c.b16 %v158_v6, %v158_v6  ;;  %v4454_v15 = vpack.c.b16 %v159_v7, %v159_v7  ;;  %v2946_v19 = vld [vmem:[%s6289_s2 + $0x290] sm:$0xf0]  ;;  %v2693_v22 = vor.u32 %v3802_v11, %v2690_v12  ;;  %v3817_v12 = vld [vmem:[%s6289_s2 + $0xf4] sm:$0xf0] }
  0x26   :  { %888 = vmatpush.bf16.msrb.mxu2 %v2997_v42  ;;  %v3866_v18 = vld [vmem:[%s6289_s2 + $0x284] sm:$0xf]  ;;  %v3074_v21 = vld [vmem:[%s6289_s2 + $0x390] sm:$0xf0]  ;;  %857 = vmatmul.bf16.vlgmr.msra.gmra.mxu3 %v4440_v5  ;;  %v2821_v23 = vor.u32 %v3834_v13, %v2818_v17  ;;  %v2872_v13 = vld [vmem:[%s6289_s2 + $0x1e8] sm:$0xf] }
  0x27   :  { %901 = vmatpush.bf16.msrb.mxu3 %v3125_v46  ;;  %v3898_v20 = vld [vmem:[%s6289_s2 + $0x384] sm:$0xf]  ;;  %818 = vmatmul.bf16.vlgmr.msra.gmra.mxu0 %v4452_v14  ;;  %v2949_v24 = vor.u32 %v3866_v18, %v2946_v19  ;;  %v2674_v26 = vld [vmem:[%s6289_s2 + $0x70] sm:$0xf0]  ;;  %v4081_v17 = vld [vmem:[%s6291_s5 + $0x1] ss:$0 sm:$0xff] }
  0x28   :  { %863 = vmatpush.bf16.msrb.mxu0 %v2725_v53  ;;  %831 = vmatmul.bf16.vlgmr.msra.gmra.mxu1 %v4454_v15  ;;  %v3798_v25 = vld [vmem:[%s6289_s2 + $0x64] sm:$0xf]  ;;  %v3077_v28 = vor.u32 %v3898_v20, %v3074_v21  ;;  %v2802_v29 = vld [vmem:[%s6289_s2 + $0x170] sm:$0xf0]  ;;  %v3849_v19 = vld [vmem:[%s6289_s2 + $0x1f4] sm:$0xf0] }
  0x29   :  { %876 = vmatpush.bf16.msrb.mxu1 %v2853_v57  ;;  %v3830_v27 = vld [vmem:[%s6289_s2 + $0x164] sm:$0xf]  ;;  %v2930_v31 = vld [vmem:[%s6289_s2 + $0x270] sm:$0xf0]  ;;  %v2677_v34 = vor.u32 %v3798_v25, %v2674_v26  ;;  %v3000_v20 = vld [vmem:[%s6289_s2 + $0x2e8] sm:$0xf] }
  0x2a   :  { %889 = vmatpush.bf16.msrb.mxu2 %v2981_v58  ;;  %v3862_v30 = vld [vmem:[%s6289_s2 + $0x264] sm:$0xf]  ;;  %v3058_v33 = vld [vmem:[%s6289_s2 + $0x370] sm:$0xf0]  ;;  %v2805_v37 = vor.u32 %v3830_v27, %v2802_v29  ;;  %v3881_v21 = vld [vmem:[%s6289_s2 + $0x2f4] sm:$0xf0] }
  0x2b   :  { %902 = vmatpush.bf16.msrb.mxu3 %v3109_v62  ;;  %v3894_v32 = vld [vmem:[%s6289_s2 + $0x364] sm:$0xf]  ;;  %v2658_v36 = vld [vmem:[%s6289_s2 + $0x50] sm:$0xf0]  ;;  %v2933_v38 = vor.u32 %v3862_v30, %v2930_v31  ;;  %v3913_v25 = vld [vmem:[%s6289_s2 + $0x3f4] sm:$0xf0]  ;;  %v3001_v29 = vor.u32 %v3881_v21, %v3000_v20 }
  0x2c   :  { %864 = vmatpush.bf16.msrb.mxu0 %v2709_v8  ;;  %v3794_v35 = vld [vmem:[%s6289_s2 + $0x44] sm:$0xf]  ;;  %v2786_v40 = vld [vmem:[%s6289_s2 + $0x150] sm:$0xf0]  ;;  %v3061_v42 = vor.u32 %v3894_v32, %v3058_v33  ;;  %v2728_v30 = vld [vmem:[%s6289_s2 + $0xc8] sm:$0xf]  ;;  %1054 = vperm.xlu0 %4075, %v4081_v17  }
  0x2d   :  { %877 = vmatpush.bf16.msrb.mxu1 %v2837_v9  ;;  %v3826_v39 = vld [vmem:[%s6289_s2 + $0x144] sm:$0xf]  ;;  %v2914_v43 = vld [vmem:[%s6289_s2 + $0x250] sm:$0xf0]  ;;  %v2661_v48 = vor.u32 %v3794_v35, %v2658_v36  ;;  %v3813_v31 = vld [vmem:[%s6289_s2 + $0xd4] sm:$0xf0] }
  0x2e   :  { %890 = vmatpush.bf16.msrb.mxu2 %v2965_v10  ;;  %v3858_v41 = vld [vmem:[%s6289_s2 + $0x244] sm:$0xf]  ;;  %v3042_v45 = vld [vmem:[%s6289_s2 + $0x350] sm:$0xf0]  ;;  %v2789_v51 = vor.u32 %v3826_v39, %v2786_v40  ;;  %v2744_v10 = vld [vmem:[%s6289_s2 + $0xe8] sm:$0xf]  ;;  %v2729_v39 = vor.u32 %v3813_v31, %v2728_v30 }
  0x2f   :  { %903 = vmatpush.bf16.msrb.mxu3 %v3093_v16  ;;  %v3890_v44 = vld [vmem:[%s6289_s2 + $0x344] sm:$0xf]  ;;  %v2642_v47 = vld [vmem:[%s6289_s2 + $0x30] sm:$0xf0]  ;;  %v2917_v52 = vor.u32 %v3858_v41, %v2914_v43  ;;  %v4080_v16 = vld [vmem:[%s6291_s5 + $0x3] ss:$0 sm:$0xff]  ;;  %v2745_v27 = vor.u32 %v3817_v12, %v2744_v10 }
  0x30   :  { %865 = vmatpush.bf16.msrb.mxu0 %v2693_v22  ;;  %v3790_v46 = vld [vmem:[%s6289_s2 + $0x24] sm:$0xf]  ;;  %v2770_v54 = vld [vmem:[%s6289_s2 + $0x130] sm:$0xf0]  ;;  %v3045_v56 = vor.u32 %v3890_v44, %v3042_v45  ;;  %v2856_v32 = vld [vmem:[%s6289_s2 + $0x1c8] sm:$0xf]  ;;  %1062 = vperm.xlu1 %4076, %v4080_v16  }
  0x31   :  { %878 = vmatpush.bf16.msrb.mxu1 %v2821_v23  ;;  %v3822_v53 = vld [vmem:[%s6289_s2 + $0x124] sm:$0xf]  ;;  %v2898_v58 = vld [vmem:[%s6289_s2 + $0x230] sm:$0xf0]  ;;  %v2645_v63 = vor.u32 %v3790_v46, %v2642_v47  ;;  %v2984_v35 = vld [vmem:[%s6289_s2 + $0x2c8] sm:$0xf] }
  0x32   :  { %891 = vmatpush.bf16.msrb.mxu2 %v2949_v24  ;;  %v3854_v57 = vld [vmem:[%s6289_s2 + $0x224] sm:$0xf]  ;;  %v3026_v60 = vld [vmem:[%s6289_s2 + $0x330] sm:$0xf0]  ;;  %v2773_v6 = vor.u32 %v3822_v53, %v2770_v54  ;;  %v3128_v24 = vld [vmem:[%s6289_s2 + $0x3e8] sm:$0xf] }
  0x33   :  { %904 = vmatpush.bf16.msrb.mxu3 %v3077_v28  ;;  %v3886_v59 = vld [vmem:[%s6289_s2 + $0x324] sm:$0xf]  ;;  %v2626_v62 = vld [vmem:[%s6289_s2 + $0x10] sm:$0xf0]  ;;  %v2901_v7 = vor.u32 %v3854_v57, %v2898_v58  ;;  %v2873_v28 = vor.u32 %v3849_v19, %v2872_v13  ;;  %v3129_v33 = vor.u32 %v3913_v25, %v3128_v24  ;;  %v3877_v36 = vld [vmem:[%s6289_s2 + $0x2d4] sm:$0xf0] }
  0x34   :  { %866 = vmatpush.bf16.msrb.mxu0 %v2677_v34  ;;  %v3786_v61 = vld [vmem:[%s6289_s2 + $0x4] sm:$0xf]  ;;  %v2754_v2 = vld [vmem:[%s6289_s2 + $0x110] sm:$0xf0]  ;;  %v3029_v11 = vor.u32 %v3886_v59, %v3026_v60  ;;  %v3845_v34 = vld [vmem:[%s6289_s2 + $0x1d4] sm:$0xf0] }
  0x35   :  { %879 = vmatpush.bf16.msrb.mxu1 %v2805_v37  ;;  %v3818_v0 = vld [vmem:[%s6289_s2 + $0x104] sm:$0xf]  ;;  %v2882_v4 = vld [vmem:[%s6289_s2 + $0x210] sm:$0xf0]  ;;  %v2629_v18 = vor.u32 %v3786_v61, %v2626_v62  ;;  %v3112_v37 = vld [vmem:[%s6289_s2 + $0x3c8] sm:$0xf]  ;;  %v2857_v41 = vor.u32 %v3845_v34, %v2856_v32 }
  0x36   :  { %892 = vmatpush.bf16.msrb.mxu2 %v2933_v38  ;;  %v3850_v3 = vld [vmem:[%s6289_s2 + $0x204] sm:$0xf]  ;;  %v3010_v9 = vld [vmem:[%s6289_s2 + $0x310] sm:$0xf0]  ;;  %v2757_v22 = vor.u32 %v3818_v0, %v2754_v2  ;;  %v3909_v38 = vld [vmem:[%s6289_s2 + $0x3d4] sm:$0xf0] }
  0x37   :  { %905 = vmatpush.bf16.msrb.mxu3 %v3061_v42  ;;  %v3882_v8 = vld [vmem:[%s6289_s2 + $0x304] sm:$0xf]  ;;  %v2885_v23 = vor.u32 %v3850_v3, %v2882_v4  ;;  %v2712_v40 = vld [vmem:[%s6289_s2 + $0xa8] sm:$0xf]  ;;  %v2985_v42 = vor.u32 %v3877_v36, %v2984_v35  ;;  %v3809_v43 = vld [vmem:[%s6289_s2 + $0xb4] sm:$0xf0]  ;;  %v3113_v46 = vor.u32 %v3909_v38, %v3112_v37 }
  0x38   :  { %867 = vmatpush.bf16.msrb.mxu0 %v2661_v48  ;;  %v3013_v26 = vor.u32 %v3882_v8, %v3010_v9  ;;  %v2840_v44 = vld [vmem:[%s6289_s2 + $0x1a8] sm:$0xf]  ;;  %v3841_v45 = vld [vmem:[%s6289_s2 + $0x1b4] sm:$0xf0]  ;;  %v4082_v49 = vld [vmem:[%s6291_s5 + $0x7] ss:$0 sm:$0xff]  ;;  %v2713_v53 = vor.u32 %v3809_v43, %v2712_v40 }
  0x39   :  { %880 = vmatpush.bf16.msrb.mxu1 %v2789_v51  ;;  %v2968_v47 = vld [vmem:[%s6289_s2 + $0x2a8] sm:$0xf]  ;;  %v3873_v48 = vld [vmem:[%s6289_s2 + $0x2b4] sm:$0xf0]  ;;  %v2841_v55 = vor.u32 %v3841_v45, %v2840_v44  ;;  %1094 = vperm.xlu1 %4076, %v4082_v49   ;;  %v4085_v16 = vld [vmem:[%s6291_s5 + $0xe] ss:$0 sm:$0xff] }
  0x3a   :  { %893 = vmatpush.bf16.msrb.mxu2 %v2917_v52  ;;  %v3905_v51 = vld [vmem:[%s6289_s2 + $0x3b4] sm:$0xf0]  ;;  %v4083_v52 = vld [vmem:[%s6291_s5 + $0x6] ss:$0 sm:$0xff]  ;;  %v2696_v54 = vld [vmem:[%s6289_s2 + $0x88] sm:$0xf] }
  0x3b   :  { %906 = vmatpush.bf16.msrb.mxu3 %v3045_v56  ;;  %v2969_v56 = vor.u32 %v3873_v48, %v2968_v47  ;;  %v3805_v57 = vld [vmem:[%s6289_s2 + $0x94] sm:$0xf0]  ;;  %v2824_v58 = vld [vmem:[%s6289_s2 + $0x188] sm:$0xf]  ;;  %v3097_v60 = vor.u32 %v3905_v51, %v3096_v50  ;;  %1090 = vperm.xlu0 %4075, %v4083_v52   ;;  %v4086_v19 = vld [vmem:[%s6291_s5 + $0xd] ss:$0 sm:$0xff] }
  0x3c   :  { %868 = vmatpush.bf16.msrb.mxu0 %v2645_v63  ;;  %v3837_v59 = vld [vmem:[%s6289_s2 + $0x194] sm:$0xf0]  ;;  %v2952_v61 = vld [vmem:[%s6289_s2 + $0x288] sm:$0xf]  ;;  %v2697_v4 = vor.u32 %v3805_v57, %v2696_v54  ;;  %v3815_v57 = vld [vmem:[%s6289_s2 + $0xec] sm:$0xf] }
  0x3d   :  { %881 = vmatpush.bf16.msrb.mxu1 %v2773_v6  ;;  %v3869_v62 = vld [vmem:[%s6289_s2 + $0x294] sm:$0xf0]  ;;  %v3080_v63 = vld [vmem:[%s6289_s2 + $0x388] sm:$0xf]  ;;  %v2825_v8 = vor.u32 %v3837_v59, %v2824_v58  ;;  %v2746_v58 = vld [vmem:[%s6289_s2 + $0xf8] sm:$0xf0] }
  0x3e   :  { %894 = vmatpush.bf16.msrb.mxu2 %v2901_v7  ;;  %v3901_v0 = vld [vmem:[%s6289_s2 + $0x394] sm:$0xf0]  ;;  %v2680_v2 = vld [vmem:[%s6289_s2 + $0x68] sm:$0xf]  ;;  %v2953_v9 = vor.u32 %v3869_v62, %v2952_v61  ;;  %v3847_v59 = vld [vmem:[%s6289_s2 + $0x1ec] sm:$0xf] }
  0x3f   :  { %907 = vmatpush.bf16.msrb.mxu3 %v3029_v11  ;;  %v3801_v3 = vld [vmem:[%s6289_s2 + $0x74] sm:$0xf0]  ;;  %v2808_v6 = vld [vmem:[%s6289_s2 + $0x168] sm:$0xf]  ;;  %v4084_v11 = vld [vmem:[%s6291_s5 + $0x4] ss:$0 sm:$0xff]  ;;  %v3081_v12 = vor.u32 %v3901_v0, %v3080_v63 }
  0x40   :  { %869 = vmatpush.bf16.msrb.mxu0 %v2629_v18  ;;  %v3833_v7 = vld [vmem:[%s6289_s2 + $0x174] sm:$0xf0]  ;;  %v2936_v10 = vld [vmem:[%s6289_s2 + $0x268] sm:$0xf]  ;;  %1082 = vperm.xlu2 %4077, %v4084_v11   ;;  %v2681_v20 = vor.u32 %v3801_v3, %v2680_v2  ;;  %v2874_v62 = vld [vmem:[%s6289_s2 + $0x1f8] sm:$0xf0] }
  0x41   :  { %882 = vmatpush.bf16.msrb.mxu1 %v2757_v22  ;;  %v3865_v13 = vld [vmem:[%s6289_s2 + $0x274] sm:$0xf0]  ;;  %v3064_v17 = vld [vmem:[%s6289_s2 + $0x368] sm:$0xf]  ;;  %v2809_v21 = vor.u32 %v3833_v7, %v2808_v6  ;;  %1130 = vperm.xlu1 %4076, %v4085_v16   ;;  %v3879_v63 = vld [vmem:[%s6289_s2 + $0x2ec] sm:$0xf] }
  0x42   :  { %895 = vmatpush.bf16.msrb.mxu2 %v2885_v23  ;;  %v3897_v18 = vld [vmem:[%s6289_s2 + $0x374] sm:$0xf0]  ;;  %v2937_v22 = vor.u32 %v3865_v13, %v2936_v10  ;;  %v2664_v23 = vld [vmem:[%s6289_s2 + $0x48] sm:$0xf]  ;;  %v3002_v0 = vld [vmem:[%s6289_s2 + $0x2f8] sm:$0xf0] }
  0x43   :  { %908 = vmatpush.bf16.msrb.mxu3 %v3013_v26  ;;  %870 = vmatmul.bf16.vlgmr.msrb.gmra.mxu0 %v4452_v14  ;;  %v3797_v24 = vld [vmem:[%s6289_s2 + $0x54] sm:$0xf0]  ;;  %v2792_v25 = vld [vmem:[%s6289_s2 + $0x148] sm:$0xf]  ;;  %v3065_v26 = vor.u32 %v3897_v18, %v3064_v17  ;;  %v3130_v6 = vld [vmem:[%s6289_s2 + $0x3f8] sm:$0xf0]  ;;  %v3005_v13 = vor.u32 %v3879_v63, %v3002_v0 }
  0x44   :  { %914 = vmatpush.bf16.msra.mxu0 %v2745_v27  ;;  %883 = vmatmul.bf16.vlgmr.msrb.gmra.mxu1 %v4454_v15  ;;  %v3829_v27 = vld [vmem:[%s6289_s2 + $0x154] sm:$0xf0]  ;;  %v3048_v30 = vld [vmem:[%s6289_s2 + $0x348] sm:$0xf]  ;;  %v2665_v32 = vor.u32 %v3797_v24, %v2664_v23  ;;  %v2730_v10 = vld [vmem:[%s6289_s2 + $0xd8] sm:$0xf0] }
  0x45   :  { %927 = vmatpush.bf16.msra.mxu1 %v2873_v28  ;;  %896 = vmatmul.bf16.vlgmr.msrb.gmra.mxu2 %v4429_v1  ;;  %v2920_v28 = vld [vmem:[%s6289_s2 + $0x248] sm:$0xf]  ;;  %v3893_v31 = vld [vmem:[%s6289_s2 + $0x354] sm:$0xf0]  ;;  %v2793_v34 = vor.u32 %v3829_v27, %v2792_v25  ;;  %v3843_v11 = vld [vmem:[%s6289_s2 + $0x1cc] sm:$0xf] }
  0x46   :  { %940 = vmatpush.bf16.msra.mxu2 %v3001_v29  ;;  %909 = vmatmul.bf16.vlgmr.msrb.gmra.mxu3 %v4440_v5  ;;  %v3861_v29 = vld [vmem:[%s6289_s2 + $0x254] sm:$0xf0]  ;;  %v2648_v36 = vld [vmem:[%s6289_s2 + $0x28] sm:$0xf]  ;;  %v2858_v16 = vld [vmem:[%s6289_s2 + $0x1d8] sm:$0xf0] }
  0x47   :  { %953 = vmatpush.bf16.msra.mxu3 %v3129_v33  ;;  %1126 = vperm.xlu0 %4075, %v4086_v19   ;;  %v4087_v33 = vld [vmem:[%s6291_s5 + $0x5] ss:$0 sm:$0xff]  ;;  %v2921_v35 = vor.u32 %v3861_v29, %v2920_v28  ;;  %v3793_v37 = vld [vmem:[%s6289_s2 + $0x34] sm:$0xf0]  ;;  %v2776_v38 = vld [vmem:[%s6289_s2 + $0x128] sm:$0xf]  ;;  %v2861_v28 = vor.u32 %v3843_v11, %v2858_v16 }
  0x48   :  { %915 = vmatpush.bf16.msra.mxu0 %v2729_v39  ;;  %v3049_v39 = vor.u32 %v3893_v31, %v3048_v30  ;;  %v3825_v40 = vld [vmem:[%s6289_s2 + $0x134] sm:$0xf0]  ;;  %v3032_v43 = vld [vmem:[%s6289_s2 + $0x328] sm:$0xf]  ;;  %1086 = vperm.xlu2 %4077, %v4087_v33   ;;  %v3875_v17 = vld [vmem:[%s6289_s2 + $0x2cc] sm:$0xf] }
  0x49   :  { %928 = vmatpush.bf16.msra.mxu1 %v2857_v41  ;;  %v2904_v41 = vld [vmem:[%s6289_s2 + $0x228] sm:$0xf]  ;;  %v3889_v44 = vld [vmem:[%s6289_s2 + $0x334] sm:$0xf0]  ;;  %v2777_v50 = vor.u32 %v3825_v40, %v2776_v38  ;;  %v2986_v18 = vld [vmem:[%s6289_s2 + $0x2d8] sm:$0xf0] }
  0x4a   :  { %941 = vmatpush.bf16.msra.mxu2 %v2985_v42  ;;  %v3857_v42 = vld [vmem:[%s6289_s2 + $0x234] sm:$0xf0]  ;;  %v2632_v45 = vld [vmem:[%s6289_s2 + $0x8] sm:$0xf]  ;;  %v2714_v23 = vld [vmem:[%s6289_s2 + $0xb8] sm:$0xf0]  ;;  %v2989_v29 = vor.u32 %v3875_v17, %v2986_v18 }
  0x4b   :  { %954 = vmatpush.bf16.msra.mxu3 %v3113_v46  ;;  %v2649_v46 = vor.u32 %v3793_v37, %v2648_v36  ;;  %v3789_v47 = vld [vmem:[%s6289_s2 + $0x14] sm:$0xf0]  ;;  %v2760_v48 = vld [vmem:[%s6289_s2 + $0x108] sm:$0xf]  ;;  %v2905_v51 = vor.u32 %v3857_v42, %v2904_v41  ;;  %v3839_v25 = vld [vmem:[%s6289_s2 + $0x1ac] sm:$0xf] }
  0x4c   :  { %916 = vmatpush.bf16.msra.mxu0 %v2713_v53  ;;  %v3821_v49 = vld [vmem:[%s6289_s2 + $0x114] sm:$0xf0]  ;;  %v2888_v52 = vld [vmem:[%s6289_s2 + $0x208] sm:$0xf]  ;;  %v2633_v61 = vor.u32 %v3789_v47, %v2632_v45  ;;  %v3871_v27 = vld [vmem:[%s6289_s2 + $0x2ac] sm:$0xf] }
  0x4d   :  { %929 = vmatpush.bf16.msra.mxu1 %v2841_v55  ;;  %v3853_v53 = vld [vmem:[%s6289_s2 + $0x214] sm:$0xf0]  ;;  %v3016_v54 = vld [vmem:[%s6289_s2 + $0x308] sm:$0xf]  ;;  %v3033_v55 = vor.u32 %v3889_v44, %v3032_v43  ;;  %v2761_v2 = vor.u32 %v3821_v49, %v2760_v48  ;;  %v2970_v30 = vld [vmem:[%s6289_s2 + $0x2b8] sm:$0xf0] }
  0x4e   :  { %942 = vmatpush.bf16.msra.mxu2 %v2969_v56  ;;  %v3885_v56 = vld [vmem:[%s6289_s2 + $0x314] sm:$0xf0]  ;;  %v2889_v3 = vor.u32 %v3853_v53, %v2888_v52  ;;  %v3903_v31 = vld [vmem:[%s6289_s2 + $0x3ac] sm:$0xf]  ;;  %v4091_v36 = vld [vmem:[%s6291_s5 + $0x9] ss:$0 sm:$0xff] }
  0x4f   :  { %955 = vmatpush.bf16.msra.mxu3 %v3097_v60  ;;  %v4088_v60 = vld [vmem:[%s6291_s5 + $0xc] ss:$0 sm:$0xff]  ;;  %v3017_v7 = vor.u32 %v3885_v56, %v3016_v54  ;;  %v2698_v41 = vld [vmem:[%s6289_s2 + $0x98] sm:$0xf0]  ;;  %1191 = vperm.xlu1 %4076, %v4091_v36  }
  0x50   :  { %917 = vmatpush.bf16.msra.mxu0 %v2697_v4  ;;  %v3911_v4 = vld [vmem:[%s6289_s2 + $0x3ec] sm:$0xf]  ;;  %1122 = vperm.xlu2 %4077, %v4088_v60   ;;  %v2826_v44 = vld [vmem:[%s6289_s2 + $0x198] sm:$0xf0] }
  0x51   :  { %930 = vmatpush.bf16.msra.mxu1 %v2825_v8  ;;  %v2749_v8 = vor.u32 %v3815_v57, %v2746_v58  ;;  %v3133_v19 = vor.u32 %v3911_v4, %v3130_v6  ;;  %v3803_v40 = vld [vmem:[%s6289_s2 + $0x8c] sm:$0xf]  ;;  %v3082_v48 = vld [vmem:[%s6289_s2 + $0x398] sm:$0xf0] }
  0x52   :  { %943 = vmatpush.bf16.msra.mxu2 %v2953_v9  ;;  %v3811_v9 = vld [vmem:[%s6289_s2 + $0xcc] sm:$0xf]  ;;  %v2701_v49 = vor.u32 %v3803_v40, %v2698_v41  ;;  %v2682_v53 = vld [vmem:[%s6289_s2 + $0x78] sm:$0xf0] }
  0x53   :  { %956 = vmatpush.bf16.msra.mxu3 %v3081_v12  ;;  %v2877_v12 = vor.u32 %v3847_v59, %v2874_v62  ;;  %v2733_v24 = vor.u32 %v3811_v9, %v2730_v10  ;;  %v3835_v42 = vld [vmem:[%s6289_s2 + $0x18c] sm:$0xf]  ;;  %v2938_v58 = vld [vmem:[%s6289_s2 + $0x278] sm:$0xf0]  ;;  %v4093_v59 = vld [vmem:[%s6291_s5 + $0xa] ss:$0 sm:$0xff] }
  0x54   :  { %918 = vmatpush.bf16.msra.mxu0 %v2681_v20  ;;  %v3907_v20 = vld [vmem:[%s6289_s2 + $0x3cc] sm:$0xf]  ;;  %v4092_v62 = vld [vmem:[%s6291_s5 + $0xb] ss:$0 sm:$0xff]  ;;  %v2666_v4 = vld [vmem:[%s6289_s2 + $0x58] sm:$0xf0] }
  0x55   :  { %931 = vmatpush.bf16.msra.mxu1 %v2809_v21  ;;  %v3114_v21 = vld [vmem:[%s6289_s2 + $0x3d8] sm:$0xf0]  ;;  %v3867_v45 = vld [vmem:[%s6289_s2 + $0x28c] sm:$0xf] }
  0x56   :  { %944 = vmatpush.bf16.msra.mxu2 %v2937_v22  ;;  %v3807_v22 = vld [vmem:[%s6289_s2 + $0xac] sm:$0xf]  ;;  %v3117_v33 = vor.u32 %v3907_v20, %v3114_v21  ;;  %v2922_v10 = vld [vmem:[%s6289_s2 + $0x258] sm:$0xf0] }
  0x57   :  { %957 = vmatpush.bf16.msra.mxu3 %v3065_v26  ;;  %v2842_v26 = vld [vmem:[%s6289_s2 + $0x1b8] sm:$0xf0]  ;;  %v2717_v37 = vor.u32 %v3807_v22, %v2714_v23  ;;  %v3899_v47 = vld [vmem:[%s6289_s2 + $0x38c] sm:$0xf] }
  0x58   :  { %919 = vmatpush.bf16.msra.mxu0 %v2665_v32  ;;  %v3098_v32 = vld [vmem:[%s6289_s2 + $0x3b8] sm:$0xf0]  ;;  %v2845_v38 = vor.u32 %v3839_v25, %v2842_v26  ;;  %v3831_v54 = vld [vmem:[%s6289_s2 + $0x16c] sm:$0xf]  ;;  %v3085_v56 = vor.u32 %v3899_v47, %v3082_v48  ;;  %v3940_v47 = vld [vmem:[%s6292_s3 + $0xcc] sm:$0xf0] }
  0x59   :  { %932 = vmatpush.bf16.msra.mxu1 %v2793_v34  ;;  %v4089_v34 = vld [vmem:[%s6291_s5 + $0xf] ss:$0 sm:$0xff]  ;;  %v3101_v43 = vor.u32 %v3903_v31, %v3098_v32  ;;  %v2778_v22 = vld [vmem:[%s6289_s2 + $0x138] sm:$0xf0]  ;;  %v3372_v48 = vld [vmem:[%s6292_s3 + $0x1c0] sm:$0xf] }
  0x5a   :  { %945 = vmatpush.bf16.msra.mxu2 %v2921_v35  ;;  %v4090_v35 = vld [vmem:[%s6291_s5 + $0x8] ss:$0 sm:$0xff]  ;;  %1134 = vperm.xlu2 %4077, %v4089_v34   ;;  %v3863_v57 = vld [vmem:[%s6289_s2 + $0x26c] sm:$0xf]  ;;  %v3034_v26 = vld [vmem:[%s6289_s2 + $0x338] sm:$0xf0] }
  0x5b   :  { %958 = vmatpush.bf16.msra.mxu3 %v3049_v39  ;;  %v2973_v39 = vor.u32 %v3871_v27, %v2970_v30  ;;  %1187 = vperm.xlu0 %4075, %v4090_v35   ;;  %v3895_v60 = vld [vmem:[%s6289_s2 + $0x36c] sm:$0xf]  ;;  %v2634_v31 = vld [vmem:[%s6289_s2 + $0x18] sm:$0xf0] }
  0x5c   :  { %920 = vmatpush.bf16.msra.mxu0 %v2649_v46  ;;  %v2954_v46 = vld [vmem:[%s6289_s2 + $0x298] sm:$0xf0]  ;;  %v3827_v6 = vld [vmem:[%s6289_s2 + $0x14c] sm:$0xf] }
  0x5d   :  { %933 = vmatpush.bf16.msra.mxu1 %v2777_v50  ;;  %v3799_v50 = vld [vmem:[%s6289_s2 + $0x6c] sm:$0xf]  ;;  %v2957_v52 = vor.u32 %v3867_v45, %v2954_v46  ;;  %v2762_v34 = vld [vmem:[%s6289_s2 + $0x118] sm:$0xf0]  ;;  %v3388_v45 = vld [vmem:[%s6292_s3 + $0x1e0] sm:$0xf] }
  0x5e   :  { %946 = vmatpush.bf16.msra.mxu2 %v2905_v51  ;;  %v2829_v51 = vor.u32 %v3835_v42, %v2826_v44  ;;  %v2685_v63 = vor.u32 %v3799_v50, %v2682_v53  ;;  %v3859_v9 = vld [vmem:[%s6289_s2 + $0x24c] sm:$0xf]  ;;  %v2890_v36 = vld [vmem:[%s6289_s2 + $0x218] sm:$0xf0]  ;;  %v3944_v44 = vld [vmem:[%s6292_s3 + $0xec] sm:$0xf0] }
  0x5f   :  { %959 = vmatpush.bf16.msra.mxu3 %v3033_v55  ;;  %v2810_v55 = vld [vmem:[%s6289_s2 + $0x178] sm:$0xf0]  ;;  %v3891_v11 = vld [vmem:[%s6289_s2 + $0x34c] sm:$0xf]  ;;  %v2925_v17 = vor.u32 %v3859_v9, %v2922_v10 }
  0x60   :  { %921 = vmatpush.bf16.msra.mxu0 %v2633_v61  ;;  %v3066_v61 = vld [vmem:[%s6289_s2 + $0x378] sm:$0xf0]  ;;  %v2813_v0 = vor.u32 %v3831_v54, %v2810_v55  ;;  %v3791_v18 = vld [vmem:[%s6289_s2 + $0x2c] sm:$0xf] }
  0x61   :  { %934 = vmatpush.bf16.msra.mxu1 %v2761_v2  ;;  %v2941_v2 = vor.u32 %v3863_v57, %v2938_v58  ;;  %v3823_v20 = vld [vmem:[%s6289_s2 + $0x12c] sm:$0xf]  ;;  %v3936_v57 = vld [vmem:[%s6292_s3 + $0xac] sm:$0xf0]  ;;  %v3356_v58 = vld [vmem:[%s6292_s3 + $0x1a0] sm:$0xf] }
  0x62   :  { %947 = vmatpush.bf16.msra.mxu2 %v2889_v3  ;;  %v3795_v3 = vld [vmem:[%s6289_s2 + $0x4c] sm:$0xf]  ;;  %1195 = vperm.xlu2 %4077, %v4093_v59  }
  0x63   :  { %960 = vmatpush.bf16.msra.mxu3 %v3017_v7  ;;  %922 = vmatmul.bf16.vlgmr.msra.gmra.mxu0 %v4452_v14  ;;  %v3069_v7 = vor.u32 %v3895_v60, %v3066_v61  ;;  %v3855_v23 = vld [vmem:[%s6289_s2 + $0x22c] sm:$0xf]  ;;  %v3968_v60 = vld [vmem:[%s6292_s3 + $0x1ac] sm:$0xf0] }
  0x64   :  { %966 = vmatpush.bf16.msrb.mxu0 %v2749_v8  ;;  %935 = vmatmul.bf16.vlgmr.msra.gmra.mxu1 %v4454_v15  ;;  %v2794_v8 = vld [vmem:[%s6289_s2 + $0x158] sm:$0xf0]  ;;  %v3887_v25 = vld [vmem:[%s6289_s2 + $0x32c] sm:$0xf] }
  0x65   :  { %979 = vmatpush.bf16.msrb.mxu1 %v2877_v12  ;;  %948 = vmatmul.bf16.vlgmr.msra.gmra.mxu2 %v4429_v1  ;;  %v3050_v12 = vld [vmem:[%s6289_s2 + $0x358] sm:$0xf0]  ;;  %v2797_v16 = vor.u32 %v3827_v6, %v2794_v8  ;;  %v3787_v30 = vld [vmem:[%s6289_s2 + $0xc] sm:$0xf]  ;;  %v3964_v8 = vld [vmem:[%s6292_s3 + $0x18c] sm:$0xf0] }
  0x66   :  { %992 = vmatpush.bf16.msrb.mxu2 %v3005_v13  ;;  %961 = vmatmul.bf16.vlgmr.msra.gmra.mxu3 %v4440_v5  ;;  %v2669_v13 = vor.u32 %v3795_v3, %v2666_v4  ;;  %v3053_v21 = vor.u32 %v3891_v11, %v3050_v12  ;;  %v3819_v32 = vld [vmem:[%s6289_s2 + $0x10c] sm:$0xf]  ;;  %v3932_v3 = vld [vmem:[%s6292_s3 + $0x8c] sm:$0xf0]  ;;  %v3340_v4 = vld [vmem:[%s6292_s3 + $0x180] sm:$0xf] }
  0x67   :  { %1005 = vmatpush.bf16.msrb.mxu3 %v3133_v19  ;;  %1199 = vperm.xlu0 %4075, %v4092_v62   ;;  %v2650_v19 = vld [vmem:[%s6289_s2 + $0x38] sm:$0xf0]  ;;  %v3851_v35 = vld [vmem:[%s6289_s2 + $0x20c] sm:$0xf]  ;;  %v2765_v40 = vor.u32 %v3819_v32, %v2762_v34  ;;  %v3357_v62 = vor.u32 %v3968_v60, %v3356_v58  ;;  %v3341_v11 = vor.u32 %v3964_v8, %v3340_v4  ;;  %v3920_v32 = vld [vmem:[%s6292_s3 + $0x2c] sm:$0xf0] }
  0x68   :  { %967 = vmatpush.bf16.msrb.mxu0 %v2733_v24  ;;  %v2906_v24 = vld [vmem:[%s6289_s2 + $0x238] sm:$0xf0]  ;;  %v2653_v27 = vor.u32 %v3791_v18, %v2650_v19  ;;  %v2893_v41 = vor.u32 %v3851_v35, %v2890_v36  ;;  %v3324_v18 = vld [vmem:[%s6292_s3 + $0x160] sm:$0xf]  ;;  %v3952_v36 = vld [vmem:[%s6292_s3 + $0x12c] sm:$0xf0] }
  0x69   :  { %980 = vmatpush.bf16.msrb.mxu1 %v2861_v28  ;;  %v2781_v28 = vor.u32 %v3823_v20, %v2778_v22  ;;  %v3960_v20 = vld [vmem:[%s6292_s3 + $0x16c] sm:$0xf0]  ;;  %v3230_v4 = vld [vmem:[%s6292_s3 + $0xb0] sm:$0xf0] }
  0x6a   :  { %993 = vmatpush.bf16.msrb.mxu2 %v2989_v29  ;;  %v2909_v29 = vor.u32 %v3855_v23, %v2906_v24  ;;  %v3325_v22 = vor.u32 %v3960_v20, %v3324_v18  ;;  %v3180_v23 = vld [vmem:[%s6292_s3 + $0x40] sm:$0xf]  ;;  %v3924_v24 = vld [vmem:[%s6292_s3 + $0x4c] sm:$0xf0] }
  0x6b   :  { %1006 = vmatpush.bf16.msrb.mxu3 %v3117_v33  ;;  %v3037_v33 = vor.u32 %v3887_v25, %v3034_v26  ;;  %v3308_v25 = vld [vmem:[%s6292_s3 + $0x140] sm:$0xf]  ;;  %v3181_v26 = vor.u32 %v3924_v24, %v3180_v23 }
  0x6c   :  { %968 = vmatpush.bf16.msrb.mxu0 %v2717_v37  ;;  %v3883_v37 = vld [vmem:[%s6289_s2 + $0x30c] sm:$0xf] }
  0x6d   :  { %981 = vmatpush.bf16.msrb.mxu1 %v2845_v38  ;;  %v3018_v38 = vld [vmem:[%s6289_s2 + $0x318] sm:$0xf0] }
  0x6e   :  { %994 = vmatpush.bf16.msrb.mxu2 %v2973_v39  ;;  %v2637_v39 = vor.u32 %v3787_v30, %v2634_v31  ;;  %v3021_v42 = vor.u32 %v3883_v37, %v3018_v38  ;;  %v3164_v31 = vld [vmem:[%s6292_s3 + $0x20] sm:$0xf] }
  0x6f   :  { %1007 = vmatpush.bf16.msrb.mxu3 %v3101_v43  ;;  %v3260_v43 = vld [vmem:[%s6292_s3 + $0xe0] sm:$0xf]  ;;  %v3165_v35 = vor.u32 %v3920_v32, %v3164_v31 }
  0x70   :  { %969 = vmatpush.bf16.msrb.mxu0 %v2701_v49  ;;  %v3261_v46 = vor.u32 %v3944_v44, %v3260_v43  ;;  %v3148_v38 = vld [vmem:[%s6292_s3] sm:$0xf]  ;;  %v3942_v43 = vld [vmem:[%s6292_s3 + $0xe4] sm:$0xf]  ;;  %v3262_v44 = vld [vmem:[%s6292_s3 + $0xf0] sm:$0xf0] }
  0x71   :  { %982 = vmatpush.bf16.msrb.mxu1 %v2829_v51  ;;  %v3972_v51 = vld [vmem:[%s6292_s3 + $0x1cc] sm:$0xf0] }
  0x72   :  { %995 = vmatpush.bf16.msrb.mxu2 %v2957_v52  ;;  %v3373_v53 = vor.u32 %v3972_v51, %v3372_v48  ;;  %v3970_v51 = vld [vmem:[%s6292_s3 + $0x1c4] sm:$0xf] }
  0x73   :  { %1008 = vmatpush.bf16.msrb.mxu3 %v3085_v56  ;;  %v3228_v56 = vld [vmem:[%s6292_s3 + $0xa0] sm:$0xf] }
  0x74   :  { %970 = vmatpush.bf16.msrb.mxu0 %v2685_v63  ;;  %v3229_v59 = vor.u32 %v3936_v57, %v3228_v56 }
  0x75   :  { %983 = vmatpush.bf16.msrb.mxu1 %v2813_v0 }
  0x76   :  { %996 = vmatpush.bf16.msrb.mxu2 %v2941_v2  ;;  %v3212_v2 = vld [vmem:[%s6292_s3 + $0x80] sm:$0xf] }
  0x77   :  { %1009 = vmatpush.bf16.msrb.mxu3 %v3069_v7  ;;  %v3213_v7 = vor.u32 %v3932_v3, %v3212_v2  ;;  %v3934_v3 = vld [vmem:[%s6292_s3 + $0xa4] sm:$0xf] }
  0x78   :  { %971 = vmatpush.bf16.msrb.mxu0 %v2669_v13 }
  0x79   :  { %984 = vmatpush.bf16.msrb.mxu1 %v2797_v16  ;;  %v3196_v16 = vld [vmem:[%s6292_s3 + $0x60] sm:$0xf] }
  0x7a   :  { %997 = vmatpush.bf16.msrb.mxu2 %v2925_v17  ;;  %v3928_v17 = vld [vmem:[%s6292_s3 + $0x6c] sm:$0xf0] }
  0x7b   :  { %1010 = vmatpush.bf16.msrb.mxu3 %v3053_v21  ;;  %v3197_v19 = vor.u32 %v3928_v17, %v3196_v16 }
  0x7c   :  { %972 = vmatpush.bf16.msrb.mxu0 %v2653_v27  ;;  %v3956_v27 = vld [vmem:[%s6292_s3 + $0x14c] sm:$0xf0] }
  0x7d   :  { %985 = vmatpush.bf16.msrb.mxu1 %v2781_v28  ;;  %v3309_v28 = vor.u32 %v3956_v27, %v3308_v25  ;;  %v3930_v25 = vld [vmem:[%s6292_s3 + $0x84] sm:$0xf] }
  0x7e   :  { %998 = vmatpush.bf16.msrb.mxu2 %v2909_v29  ;;  %v3962_v27 = vld [vmem:[%s6292_s3 + $0x184] sm:$0xf] }
  0x7f   :  { %1011 = vmatpush.bf16.msrb.mxu3 %v3037_v33  ;;  %v3292_v33 = vld [vmem:[%s6292_s3 + $0x120] sm:$0xf] }
  0x80   :  { %973 = vmatpush.bf16.msrb.mxu0 %v2637_v39  ;;  %v3293_v37 = vor.u32 %v3952_v36, %v3292_v33  ;;  %v3916_v39 = vld [vmem:[%s6292_s3 + $0xc] sm:$0xf0] }
  0x81   :  { %986 = vmatpush.bf16.msrb.mxu1 %v2765_v40  ;;  %v3276_v40 = vld [vmem:[%s6292_s3 + $0x100] sm:$0xf] }
  0x82   :  { %999 = vmatpush.bf16.msrb.mxu2 %v2893_v41  ;;  %v3149_v41 = vor.u32 %v3916_v39, %v3148_v38 }
  0x83   :  { %1012 = vmatpush.bf16.msrb.mxu3 %v3021_v42  ;;  %974 = vmatmul.bf16.vlgmr.msrb.gmra.mxu0 %v4452_v14  ;;  %v3976_v14 = vld [vmem:[%s6292_s3 + $0x1ec] sm:$0xf0] }
  0x84   :  { %987 = vmatmul.bf16.vlgmr.msrb.gmra.mxu1 %v4454_v15  ;;  %2093 = vmatpush.bf16.msra.mxu0 %v3261_v46  ;;  %v3244_v15 = vld [vmem:[%s6292_s3 + $0xc0] sm:$0xf]  ;;  %v3948_v42 = vld [vmem:[%s6292_s3 + $0x10c] sm:$0xf0] }
  0x85   :  { %1000 = vmatmul.bf16.vlgmr.msrb.gmra.mxu2 %v4429_v1  ;;  %v3389_v1 = vor.u32 %v3976_v14, %v3388_v45  ;;  %v3245_v50 = vor.u32 %v3940_v47, %v3244_v15  ;;  %v3277_v46 = vor.u32 %v3948_v42, %v3276_v40  ;;  %v3265_v14 = vor.u32 %v3942_v43, %v3262_v44 }
  0x86   :  { %1013 = vmatmul.bf16.vlgmr.msrb.gmra.mxu3 %v4440_v5 }
  0x87   :  { %2106 = vmatpush.bf16.msra.mxu1 %v3389_v1  ;;  %v3974_v1 = vld [vmem:[%s6292_s3 + $0x1e4] sm:$0xf] }
  0x88   :  { %2094 = vmatpush.bf16.msra.mxu0 %v3245_v50  ;;  %v3246_v50 = vld [vmem:[%s6292_s3 + $0xd0] sm:$0xf0] }
  0x8b   :  { %2107 = vmatpush.bf16.msra.mxu1 %v3373_v53 }
  0x8c   :  { %2095 = vmatpush.bf16.msra.mxu0 %v3229_v59 }
  0x8f   :  { %2108 = vmatpush.bf16.msra.mxu1 %v3357_v62 }
  0x90   :  { %2096 = vmatpush.bf16.msra.mxu0 %v3213_v7 }
  0x93   :  { %2109 = vmatpush.bf16.msra.mxu1 %v3341_v11  ;;  %v3233_v11 = vor.u32 %v3934_v3, %v3230_v4 }
  0x94   :  { %v5070_v10 = vpop.permute.xlu1 %1058  ;;  %2097 = vmatpush.bf16.msra.mxu0 %v3197_v19 }
  0x96   :  { %v5072_v12 = vpop.permute.xlu0 %1050 }
  0x97   :  { %2110 = vmatpush.bf16.msra.mxu1 %v3325_v22 }
  0x98   :  { %2098 = vmatpush.bf16.msra.mxu0 %v3181_v26  ;;  %v3214_v26 = vld [vmem:[%s6292_s3 + $0x90] sm:$0xf0] }
  0x9a   :  { %v5068_v9 = vpop.permute.xlu2 %1082 }
  0x9b   :  { %2111 = vmatpush.bf16.msra.mxu1 %v3309_v28 }
  0x9c   :  { %2099 = vmatpush.bf16.msra.mxu0 %v3165_v35  ;;  %v3342_v35 = vld [vmem:[%s6292_s3 + $0x190] sm:$0xf0] }
  0x9d   :  { %v3345_v38 = vor.u32 %v3962_v27, %v3342_v35  ;;  %v3150_v27 = vld [vmem:[%s6292_s3 + $0x10] sm:$0xf0]  ;;  %v3516_v35 = vld [vmem:[%s6292_s3 + $0x2e0] sm:$0xf] }
  0x9e   :  { %v5111_v34 = vpop.permute.xlu0 %1054 }
  0x9f   :  { %2112 = vmatpush.bf16.msra.mxu1 %v3293_v37  ;;  %v3217_v37 = vor.u32 %v3930_v25, %v3214_v26  ;;  %v3914_v26 = vld [vmem:[%s6292_s3 + $0x4] sm:$0xf] }
  0xa0   :  { %2100 = vmatpush.bf16.msra.mxu0 %v3149_v41 }
  0xa2   :  { %v5098_v29 = vpop.permute.xlu2 %1086  ;;  %v5100_v30 = vpop.permute.xlu1 %1062 }
  0xa3   :  { %2113 = vmatpush.bf16.msra.mxu1 %v3277_v46 }
  0xa4   :  { %v819_v5 = vpop.f32.mrf.mxu0  ;;  %2145 = vmatpush.bf16.msrb.mxu0 %v3265_v14  ;;  %v3926_v14 = vld [vmem:[%s6292_s3 + $0x64] sm:$0xf] }
  0xa5   :  { %v832_v49 = vpop.f32.mrf.mxu1 }
  0xa6   :  { %v833_v52 = vadd.f32 %v832_v49, %v819_v5  ;;  %v3390_v5 = vld [vmem:[%s6292_s3 + $0x1f0] sm:$0xf0]  ;;  %v3938_v49 = vld [vmem:[%s6292_s3 + $0xc4] sm:$0xf] }
  0xa7   :  { %v3393_v47 = vor.u32 %v3974_v1, %v3390_v5  ;;  %v3198_v1 = vld [vmem:[%s6292_s3 + $0x70] sm:$0xf0]  ;;  %v3958_v5 = vld [vmem:[%s6292_s3 + $0x164] sm:$0xf] }
  0xa8   :  { %v845_v54 = vpop.f32.mrf.mxu2 }
  0xa9   :  { %v846_v55 = vadd.f32 %v845_v54, %v833_v52  ;;  %v858_v61 = vpop.f32.mrf.mxu3  ;;  %2158 = vmatpush.bf16.msrb.mxu1 %v3393_v47  ;;  %v3249_v54 = vor.u32 %v3938_v49, %v3246_v50  ;;  %v3326_v50 = vld [vmem:[%s6292_s3 + $0x170] sm:$0xf0] }
  0xaa   :  { %v5149_v52 = vpop.permute.xlu2 %1122 }
  0xab   :  { %v5050_v63 = vadd.f32 %v858_v61, %v846_v55  ;;  %v5151_v53 = vpop.permute.xlu1 %1094  ;;  %v3374_v55 = vld [vmem:[%s6292_s3 + $0x1d0] sm:$0xf0]  ;;  %2146 = vmatpush.bf16.msrb.mxu0 %v3249_v54  ;;  %v3329_v54 = vor.u32 %v3958_v5, %v3326_v50  ;;  %v3628_v50 = vld [vmem:[%s6292_s3 + $0x3c0] sm:$0xf] }
  0xac   :  { %v821_v0 = vpop.f32.mrf.mxu0  ;;  %v3377_v59 = vor.u32 %v3970_v51, %v3374_v55  ;;  %v3201_v51 = vor.u32 %v3926_v14, %v3198_v1  ;;  %v3644_v14 = vld [vmem:[%s6292_s3 + $0x3e0] sm:$0xf]  ;;  %v4040_v1 = vld [vmem:[%s6292_s3 + $0x3ec] sm:$0xf0] }
  0xad   :  { %1018 = vst [vmem:[%s6293_s6] sm:$0xff] %v5050_v63  ;;  %v834_v6 = vpop.f32.mrf.mxu1  ;;  %v1067_v56 = vsub.f32 %v5050_v63, %v5070_v10  ;;  %v5158_v58 = vpop.permute.xlu0 %1090  ;;  %v1065_v62 = vsub.f32 %v5050_v63, %v5072_v12  ;;  %v1068_v0 = vsub.f32 %v5050_v63, %v5100_v30  ;;  %v1066_v2 = vsub.f32 %v5050_v63, %v5111_v34  ;;  %v3358_v63 = vld [vmem:[%s6292_s3 + $0x1b0] sm:$0xf0] }
  0xae   :  { %2159 = vmatpush.bf16.msrb.mxu1 %v3377_v59  ;;  %v3966_v6 = vld [vmem:[%s6292_s3 + $0x1a4] sm:$0xf] }
  0xaf   :  { %v3361_v17 = vor.u32 %v3966_v6, %v3358_v63  ;;  %v1069_v22 = vmul.f32 %v1065_v62, %v1065_v62  ;;  %v1072_v23 = vmul.f32 %v1068_v0, %v1068_v0  ;;  %v1070_v24 = vmul.f32 %v1066_v2, %v1066_v2  ;;  %2147 = vmatpush.bf16.msrb.mxu0 %v3233_v11  ;;  %v3922_v62 = vld [vmem:[%s6292_s3 + $0x44] sm:$0xf]  ;;  %v3182_v0 = vld [vmem:[%s6292_s3 + $0x50] sm:$0xf0] }
  0xb0   :  { %v847_v13 = vpop.f32.mrf.mxu2  ;;  %v3954_v2 = vld [vmem:[%s6292_s3 + $0x144] sm:$0xf]  ;;  %v3185_v4 = vor.u32 %v3922_v62, %v3182_v0  ;;  %v3310_v6 = vld [vmem:[%s6292_s3 + $0x150] sm:$0xf0] }
  0xb1   :  { %v860_v21 = vpop.f32.mrf.mxu3  ;;  %v1071_v13 = vmul.f32 %v1067_v56, %v1067_v56 }
  0xb2   :  { %2160 = vmatpush.bf16.msrb.mxu1 %v3361_v17  ;;  %v3166_v17 = vld [vmem:[%s6292_s3 + $0x30] sm:$0xf0] }
  0xb3   :  { %2148 = vmatpush.bf16.msrb.mxu0 %v3217_v37 }
  0xb4   :  { %v5199_v40 = vpop.permute.xlu2 %1134 }
  0xb6   :  { %2161 = vmatpush.bf16.msrb.mxu1 %v3345_v38 }
  0xb7   :  { %2149 = vmatpush.bf16.msrb.mxu0 %v3201_v51 }
  0xb9   :  { %v5209_v46 = vpop.permute.xlu0 %1126 }
  0xba   :  { %2162 = vmatpush.bf16.msrb.mxu1 %v3329_v54 }
  0xbb   :  { %2150 = vmatpush.bf16.msrb.mxu0 %v3185_v4 }
  0xc0   :  { %v871_v45 = vpop.f32.mrf.mxu0 }
  0xc1   :  { %v884_v15 = vpop.f32.mrf.mxu1 }
  0xc2   :  { %v885_v48 = vadd.f32 %v884_v15, %v871_v45  ;;  %v5207_v45 = vpop.permute.xlu1 %1130 }
  0xc8   :  { %v897_v57 = vpop.f32.mrf.mxu2  ;;  %v873_v8 = vpop.f32.mrf.mxu0 }
  0xc9   :  { %v898_v60 = vadd.f32 %v897_v57, %v885_v48  ;;  %v910_v61 = vpop.f32.mrf.mxu3  ;;  %v886_v16 = vpop.f32.mrf.mxu1 }
  0xca   :  { %v3918_v16 = vld [vmem:[%s6292_s3 + $0x24] sm:$0xf] }
  0xcb   :  { %v911_v7 = vadd.f32 %v910_v61, %v898_v60 }
  0xcd   :  { %1019 = vst [vmem:[%s6293_s6 + $0x8] sm:$0xff] %v911_v7  ;;  %v1097_v18 = vsub.f32 %v911_v7, %v5068_v9  ;;  %v1100_v19 = vsub.f32 %v911_v7, %v5151_v53  ;;  %v1099_v20 = vsub.f32 %v911_v7, %v5158_v58  ;;  %v1098_v21 = vsub.f32 %v911_v7, %v5098_v29 }
  0xce   :  { %v3313_v7 = vor.u32 %v3954_v2, %v3310_v6  ;;  %v3484_v6 = vld [vmem:[%s6292_s3 + $0x2a0] sm:$0xf] }
  0xcf   :  { %v1101_v28 = vmul.f32 %v1097_v18, %v1097_v18  ;;  %v1104_v31 = vmul.f32 %v1100_v19, %v1100_v19  ;;  %v1103_v32 = vmul.f32 %v1099_v20, %v1099_v20  ;;  %v1102_v33 = vmul.f32 %v1098_v21, %v1098_v21  ;;  %v3950_v18 = vld [vmem:[%s6292_s3 + $0x124] sm:$0xf] }
  0xd0   :  { %v899_v36 = vpop.f32.mrf.mxu2  ;;  %2163 = vmatpush.bf16.msrb.mxu1 %v3313_v7  ;;  %v3169_v21 = vor.u32 %v3918_v16, %v3166_v17  ;;  %v4000_v7 = vld [vmem:[%s6292_s3 + $0x2ac] sm:$0xf0] }
  0xd1   :  { %v5197_v39 = vadd.f32 %v1101_v28, %v1069_v22  ;;  %v5201_v41 = vadd.f32 %v1104_v31, %v1072_v23  ;;  %v5203_v42 = vadd.f32 %v1103_v32, %v1071_v13  ;;  %v5205_v43 = vadd.f32 %v1102_v33, %v1070_v24  ;;  %v912_v44 = vpop.f32.mrf.mxu3  ;;  %v3294_v23 = vld [vmem:[%s6292_s3 + $0x130] sm:$0xf0]  ;;  %v3946_v28 = vld [vmem:[%s6292_s3 + $0x104] sm:$0xf]  ;;  %v4008_v36 = vld [vmem:[%s6292_s3 + $0x2ec] sm:$0xf0] }
  0xd2   :  { %2151 = vmatpush.bf16.msrb.mxu0 %v3169_v21  ;;  %v3297_v25 = vor.u32 %v3950_v18, %v3294_v23  ;;  %v3153_v32 = vor.u32 %v3914_v26, %v3150_v27  ;;  %v3278_v33 = vld [vmem:[%s6292_s3 + $0x110] sm:$0xf0]  ;;  %v3517_v44 = vor.u32 %v4008_v36, %v3516_v35  ;;  %v4032_v16 = vld [vmem:[%s6292_s3 + $0x3ac] sm:$0xf0]  ;;  %v3596_v21 = vld [vmem:[%s6292_s3 + $0x380] sm:$0xf] }
  0xd3   :  { %v1109_v15 = vmul.f32 4.0, %v5197_v39  ;;  %v1112_v47 = vmul.f32 4.0, %v5201_v41  ;;  %v1111_v48 = vmul.f32 4.0, %v5203_v42  ;;  %v1110_v49 = vmul.f32 4.0, %v5205_v43  ;;  %v3580_v35 = vld [vmem:[%s6292_s3 + $0x360] sm:$0xf] }
  0xd4   :  { %2164 = vmatpush.bf16.msrb.mxu1 %v3297_v25  ;;  %v3281_v38 = vor.u32 %v3946_v28, %v3278_v33  ;;  %2119 = vmatpush.bf16.msra.mxu2 %v3517_v44  ;;  %v4028_v25 = vld [vmem:[%s6292_s3 + $0x38c] sm:$0xf0]  ;;  %v3452_v28 = vld [vmem:[%s6292_s3 + $0x260] sm:$0xf] }
  0xd5   :  { %v1137_v55 = vsub.f32 %v5149_v52, %v1109_v15  ;;  %v1140_v56 = vsub.f32 %v5199_v40, %v1112_v47  ;;  %v1139_v57 = vsub.f32 %v5207_v45, %v1111_v48  ;;  %v1138_v59 = vsub.f32 %v5209_v46, %v1110_v49  ;;  %v3500_v48 = vld [vmem:[%s6292_s3 + $0x2c0] sm:$0xf]  ;;  %v4004_v49 = vld [vmem:[%s6292_s3 + $0x2cc] sm:$0xf0] }
  0xd6   :  { %2152 = vmatpush.bf16.msrb.mxu0 %v3153_v32  ;;  %v3645_v15 = vor.u32 %v4040_v1, %v3644_v14  ;;  %v3597_v27 = vor.u32 %v4028_v25, %v3596_v21  ;;  %v4024_v36 = vld [vmem:[%s6292_s3 + $0x36c] sm:$0xf0]  ;;  %v5344_v14 = vpop.permute.xlu1 %1191 }
  0xd7   :  { %v1142_v60 = vmax.f32 %v1139_v57, %v1140_v56  ;;  %v1141_v61 = vmax.f32 %v1137_v55, %v1138_v59 }
  0xd8   :  { %2165 = vmatpush.bf16.msrb.mxu1 %v3281_v38  ;;  %2132 = vmatpush.bf16.msra.mxu3 %v3645_v15 }
  0xd9   :  { %v5240_v3 = vmax.f32 %v1141_v61, %v1142_v60 }
  0xdb   :  { %v1144_v8 = vsub.f32 %v1137_v55, %v5240_v3  ;;  %v1145_v11 = vsub.f32 %v1138_v59, %v5240_v3  ;;  %v1146_v63 = vsub.f32 %v1139_v57, %v5240_v3  ;;  %v1147_v13 = vsub.f32 %v1140_v56, %v5240_v3  ;;  %v4036_v56 = vld [vmem:[%s6292_s3 + $0x3cc] sm:$0xf0] }
  0xdc   :  { %v3501_v55 = vor.u32 %v4004_v49, %v3500_v48  ;;  %v3629_v61 = vor.u32 %v4036_v56, %v3628_v50  ;;  %v5352_v49 = vpop.permute.xlu2 %1195  ;;  %v3581_v50 = vor.u32 %v4024_v36, %v3580_v35  ;;  %v4020_v56 = vld [vmem:[%s6292_s3 + $0x34c] sm:$0xf0]  ;;  %v3548_v36 = vld [vmem:[%s6292_s3 + $0x320] sm:$0xf] }
  0xdd   :  { %v1148_v19 = vmul.f32 1.442695, %v1144_v8  ;;  %v1150_v20 = vmul.f32 1.442695, %v1145_v11  ;;  %v1152_v22 = vmul.f32 1.442695, %v1146_v63 }
  0xde   :  { %v1154_v24 = vmul.f32 1.442695, %v1147_v13  ;;  %2120 = vmatpush.bf16.msra.mxu2 %v3501_v55  ;;  %2133 = vmatpush.bf16.msra.mxu3 %v3629_v61  ;;  %v3612_v8 = vld [vmem:[%s6292_s3 + $0x3a0] sm:$0xf]  ;;  %v3485_v13 = vor.u32 %v4000_v7, %v3484_v6 }
  0xdf   :  { %4094 = vpow2.f32 %v1148_v19  ;;  %v3613_v18 = vor.u32 %v4032_v16, %v3612_v8  ;;  %v3468_v19 = vld [vmem:[%s6292_s3 + $0x280] sm:$0xf]  ;;  %v3984_v8 = vld [vmem:[%s6292_s3 + $0x22c] sm:$0xf0]  ;;  %v3945_v16 = vld [vmem:[%s6292_s3 + $0xf4] sm:$0xf0] }
  0xe0   :  { %4096 = vpow2.f32 %v1150_v20  ;;  %v923_v31 = vpop.f32.mrf.mxu0  ;;  %v3996_v20 = vld [vmem:[%s6292_s3 + $0x28c] sm:$0xf0]  ;;  %v3564_v55 = vld [vmem:[%s6292_s3 + $0x340] sm:$0xf] }
  0xe1   :  { %4098 = vpow2.f32 %v1152_v22  ;;  %v936_v37 = vpop.f32.mrf.mxu1  ;;  %v5327_v22 = vpop.permute.xlu0 %1187  ;;  %v3420_v7 = vld [vmem:[%s6292_s3 + $0x220] sm:$0xf] }
  0xe2   :  { %v937_v5 = vadd.f32 %v936_v37, %v923_v31  ;;  %4100 = vpow2.f32 %v1154_v24  ;;  %2121 = vmatpush.bf16.msra.mxu2 %v3485_v13  ;;  %2134 = vmatpush.bf16.msra.mxu3 %v3613_v18  ;;  %v3469_v24 = vor.u32 %v3996_v20, %v3468_v19  ;;  %v3992_v31 = vld [vmem:[%s6292_s3 + $0x26c] sm:$0xf0]  ;;  %v3268_v13 = vld [vmem:[%s6292_s3 + $0xe8] sm:$0xf]  ;;  %v3565_v20 = vor.u32 %v4020_v56, %v3564_v55 }
  0xe3   :  { %v3453_v32 = vor.u32 %v3992_v31, %v3452_v28  ;;  %v3396_v18 = vld [vmem:[%s6292_s3 + $0x1e8] sm:$0xf]  ;;  %v5415_v28 = vld [vmem:[%s6292_s3 + $0xd4] sm:$0xf0]  ;;  %v3421_v35 = vor.u32 %v3984_v8, %v3420_v7 }
  0xe5   :  { %v4095_v47 = vpop.eup %4094 }
  0xe6   :  { %v4097_v51 = vpop.eup %4096  ;;  %2122 = vmatpush.bf16.msra.mxu2 %v3469_v24  ;;  %2135 = vmatpush.bf16.msra.mxu3 %v3597_v27  ;;  %v5410_v27 = vld [vmem:[%s6292_s3 + $0xc8] sm:$0xf] }
  0xe7   :  { %v1156_v57 = vadd.f32 %v4097_v51, %v4095_v47  ;;  %v4099_v62 = vpop.eup %4098  ;;  %v3253_v56 = vor.u32 %v5415_v28, %v5410_v27  ;;  %v4002_v28 = vld [vmem:[%s6292_s3 + $0x2c4] sm:$0xf] }
  0xe8   :  { %v949_v54 = vpop.f32.mrf.mxu2  ;;  %v925_v4 = vpop.f32.mrf.mxu0 }
  0xe9   :  { %v950_v59 = vadd.f32 %v949_v54, %v937_v5  ;;  %v962_v60 = vpop.f32.mrf.mxu3  ;;  %v1157_v0 = vadd.f32 %v4099_v62, %v1156_v57  ;;  %v4101_v11 = vpop.eup %4100 }
  0xea   :  { %v938_v63 = vpop.f32.mrf.mxu1  ;;  %2123 = vmatpush.bf16.msra.mxu2 %v3453_v32  ;;  %2136 = vmatpush.bf16.msra.mxu3 %v3581_v50  ;;  %v5432_v50 = vld [vmem:[%s6292_s3 + $0x1d4] sm:$0xf0] }
  0xeb   :  { %v5297_v2 = vadd.f32 %v962_v60, %v950_v59  ;;  %v5311_v17 = vadd.f32 %v4101_v11, %v1157_v0  ;;  %v5377_v59 = vpop.permute.xlu0 %1199 }
  0xed   :  { %1020 = vst [vmem:[%s6293_s6 + $0x10] sm:$0xff] %v5297_v2  ;;  %4102 = vrcp.f32 %v5311_v17  ;;  %v1229_v8 = vsub.f32 %v5297_v2, %v5072_v12 }
  0xee   :  { %2137 = vmatpush.bf16.msra.mxu3 %v3565_v20  ;;  %4104 = vlog2.f32 %v5311_v17  ;;  %v3518_v17 = vld [vmem:[%s6292_s3 + $0x2f0] sm:$0xf0]  ;;  %v1231_v20 = vsub.f32 %v5297_v2, %v5070_v10 }
  0xf0   :  { %v951_v23 = vpop.f32.mrf.mxu2 }
  0xf1   :  { %v964_v26 = vpop.f32.mrf.mxu3 }
  0xf2   :  { %v3977_v26 = vld [vmem:[%s6292_s3 + $0x1f4] sm:$0xf0] }
  0xf3   :  { %v4103_v33 = vpop.eup %4102  ;;  %v3397_v55 = vor.u32 %v3977_v26, %v3396_v18  ;;  %v3969_v26 = vld [vmem:[%s6292_s3 + $0x1b4] sm:$0xf0] }
  0xf4   :  { %v1160_v37 = vmul.f32 %v4103_v33, %v4095_v47  ;;  %v1161_v38 = vmul.f32 %v4103_v33, %v4097_v51  ;;  %v1162_v44 = vmul.f32 %v4103_v33, %v4099_v62  ;;  %v1163_v1 = vmul.f32 %v4103_v33, %v4101_v11  ;;  %v3436_v47 = vld [vmem:[%s6292_s3 + $0x240] sm:$0xf]  ;;  %v3988_v51 = vld [vmem:[%s6292_s3 + $0x24c] sm:$0xf0]  ;;  %v5421_v33 = vld [vmem:[%s6292_s3 + $0x1c8] sm:$0xf] }
  0xf5   :  { %v3437_v19 = vor.u32 %v3988_v51, %v3436_v47  ;;  %v3404_v47 = vld [vmem:[%s6292_s3 + $0x200] sm:$0xf]  ;;  %v3980_v51 = vld [vmem:[%s6292_s3 + $0x20c] sm:$0xf0] }
  0xf6   :  { %v1213_v5 = vmul.f32 %v1160_v37, %v5197_v39  ;;  %v1214_v15 = vmul.f32 %v1161_v38, %v5205_v43  ;;  %1225 = vst [vmem:[%s6294_s7] sm:$0xff] %v1160_v37  ;;  %v1202_v48 = vmul.f32 %v5327_v22, %v1160_v37  ;;  %v1203_v39 = vmul.f32 %v5344_v14, %v1161_v38 }
  0xf7   :  { %1226 = vst [vmem:[%s6294_s7 + $0x10] sm:$0xff] %v1161_v38  ;;  %v1164_v43 = vmul.f32 %v1160_v37, %v5072_v12  ;;  %v1165_v54 = vmul.f32 %v1161_v38, %v5111_v34  ;;  %v1171_v60 = vmul.f32 %v1160_v37, %v5068_v9  ;;  %v1172_v61 = vmul.f32 %v1161_v38, %v5098_v29  ;;  %v4016_v37 = vld [vmem:[%s6292_s3 + $0x32c] sm:$0xf0] }
  0xf8   :  { %v5372_v57 = vadd.f32 %v1214_v15, %v1213_v5  ;;  %1227 = vst [vmem:[%s6294_s7 + $0x20] sm:$0xff] %v1162_v44  ;;  %v1204_v62 = vmul.f32 %v5352_v49, %v1162_v44  ;;  %v1206_v0 = vadd.f32 %v1203_v39, %v1202_v48  ;;  %v1166_v4 = vmul.f32 %v1162_v44, %v5070_v10 }
  0xf9   :  { %v1168_v6 = vadd.f32 %v1165_v54, %v1164_v43  ;;  %1228 = vst [vmem:[%s6294_s7 + $0x30] sm:$0xff] %v1163_v1  ;;  %v1173_v11 = vmul.f32 %v1162_v44, %v5158_v58  ;;  %v1175_v63 = vadd.f32 %v1172_v61, %v1171_v60  ;;  %v1167_v21 = vmul.f32 %v1163_v1, %v5100_v30 }
  0xfa   :  { %v1205_v24 = vmul.f32 %v5377_v59, %v1163_v1  ;;  %v1207_v25 = vadd.f32 %v1206_v0, %v1204_v62  ;;  %v1174_v31 = vmul.f32 %v1163_v1, %v5151_v53  ;;  %2124 = vmatpush.bf16.msra.mxu2 %v3437_v19  ;;  %v3269_v48 = vor.u32 %v3945_v16, %v3268_v13  ;;  %v4038_v13 = vld [vmem:[%s6292_s3 + $0x3e4] sm:$0xf]  ;;  %v3646_v16 = vld [vmem:[%s6292_s3 + $0x3f0] sm:$0xf0] }
  0xfb   :  { %v1169_v23 = vadd.f32 %v1168_v6, %v1166_v4  ;;  %v1176_v32 = vadd.f32 %v1175_v63, %v1173_v11  ;;  %v1215_v39 = vmul.f32 %v1162_v44, %v5203_v42  ;;  %v1216_v60 = vmul.f32 %v1163_v1, %v5201_v41  ;;  %v4006_v4 = vld [vmem:[%s6292_s3 + $0x2e4] sm:$0xf]  ;;  %v3532_v41 = vld [vmem:[%s6292_s3 + $0x300] sm:$0xf]  ;;  %v4012_v1 = vld [vmem:[%s6292_s3 + $0x30c] sm:$0xf0] }
  0xfc   :  { %v1208_v5 = vadd.f32 %v1207_v25, %v1205_v24  ;;  %v3549_v0 = vor.u32 %v4016_v37, %v3548_v36  ;;  %v3381_v6 = vor.u32 %v5432_v50, %v5421_v33  ;;  %v3405_v7 = vor.u32 %v3980_v51, %v3404_v47  ;;  %v3937_v24 = vld [vmem:[%s6292_s3 + $0xb4] sm:$0xf0]  ;;  %v4105_v37 = vpop.eup %4104  ;;  %v3630_v51 = vld [vmem:[%s6292_s3 + $0x3d0] sm:$0xf0] }
  0xfd   :  { %v1170_v38 = vadd.f32 %v1169_v23, %v1167_v21  ;;  %v1177_v43 = vadd.f32 %v1176_v32, %v1174_v31  ;;  %v3521_v63 = vor.u32 %v4006_v4, %v3518_v17  ;;  %v1218_v18 = vadd.f32 %v5372_v57, %v1215_v39  ;;  %v3236_v23 = vld [vmem:[%s6292_s3 + $0xa8] sm:$0xf]  ;;  %v3502_v31 = vld [vmem:[%s6292_s3 + $0x2d0] sm:$0xf0]  ;;  %v3933_v47 = vld [vmem:[%s6292_s3 + $0x94] sm:$0xf0] }
  0xfe   :  { %2125 = vmatpush.bf16.msra.mxu2 %v3421_v35  ;;  %v1230_v19 = vsub.f32 %v5297_v2, %v5111_v34  ;;  %v3364_v57 = vld [vmem:[%s6292_s3 + $0x1a8] sm:$0xf]  ;;  %v1232_v25 = vsub.f32 %v5297_v2, %v5100_v30  ;;  %2138 = vmatpush.bf16.msra.mxu3 %v3549_v0  ;;  %v3533_v27 = vor.u32 %v4012_v1, %v3532_v41  ;;  %v3486_v41 = vld [vmem:[%s6292_s3 + $0x2b0] sm:$0xf0] }
  0xff   :  { %v1209_v61 = vmul.f32 %v1170_v38, %v1170_v38  ;;  %v5444_v62 = vpack.c.bf16 %v1170_v38, %v1170_v38  ;;  %v1210_v42 = vmul.f32 %v1177_v43, %v1177_v43  ;;  %v5450_v44 = vpack.c.bf16 %v1177_v43, %v1177_v43  ;;  %v5503_v2 = vld [vmem:[%s6292_s3 + $0x88] sm:$0xf] }
 0x100   :  { %v975_v15 = vpop.f32.mrf.mxu0  ;;  %v1219_v32 = vadd.f32 %v1218_v18, %v1216_v60  ;;  %v3649_v36 = vor.u32 %v4038_v13, %v3646_v16  ;;  %v3237_v50 = vor.u32 %v3937_v24, %v3236_v23  ;;  %v1233_v39 = vmul.f32 %v1229_v8, %v1229_v8  ;;  %v3348_v60 = vld [vmem:[%s6292_s3 + $0x188] sm:$0xf]  ;;  %v4030_v18 = vld [vmem:[%s6292_s3 + $0x3a4] sm:$0xf]  ;;  %v3929_v23 = vld [vmem:[%s6292_s3 + $0x74] sm:$0xf0] }
 0x101   :  { %v988_v54 = vpop.f32.mrf.mxu1  ;;  %2101 = vmatmul.bf16.vlgmr.msra.gmra.mxu0 %v5444_v62  ;;  %v1211_v21 = vadd.f32 %v1210_v42, %v1209_v61  ;;  %2114 = vmatmul.bf16.vlgmr.msra.gmra.mxu1 %v5450_v44  ;;  %v1234_v43 = vmul.f32 %v1230_v19, %v1230_v19  ;;  %v3505_v61 = vor.u32 %v4002_v28, %v3502_v31  ;;  %v3614_v19 = vld [vmem:[%s6292_s3 + $0x3b0] sm:$0xf0]  ;;  %v3332_v24 = vld [vmem:[%s6292_s3 + $0x168] sm:$0xf] }
 0x102   :  { %v989_v11 = vadd.f32 %v988_v54, %v975_v15  ;;  %2197 = vmatpush.bf16.msra.mxu0 %v3269_v48  ;;  %2210 = vmatpush.bf16.msra.mxu1 %v3397_v55  ;;  %v3365_v55 = vor.u32 %v3969_v26, %v3364_v57  ;;  %v1235_v0 = vmul.f32 %v1231_v20, %v1231_v20  ;;  %v5527_v8 = vmul.f32 -4.0, %v1219_v32  ;;  %v3961_v32 = vld [vmem:[%s6292_s3 + $0x174] sm:$0xf0] }
 0x103   :  { %v5498_v33 = vsub.f32 %v1208_v5, %v1211_v21  ;;  %2126 = vmatpush.bf16.msra.mxu2 %v3405_v7  ;;  %v4034_v5 = vld [vmem:[%s6292_s3 + $0x3c4] sm:$0xf]  ;;  %v1236_v4 = vmul.f32 %v1232_v25, %v1232_v25  ;;  %v3965_v7 = vld [vmem:[%s6292_s3 + $0x194] sm:$0xf0]  ;;  %2139 = vmatpush.bf16.msra.mxu3 %v3533_v27  ;;  %v3221_v1 = vor.u32 %v3933_v47, %v5503_v2  ;;  %v3204_v21 = vld [vmem:[%s6292_s3 + $0x68] sm:$0xf] }
 0x104   :  { %v3633_v17 = vor.u32 %v4034_v5, %v3630_v51  ;;  %v3349_v20 = vor.u32 %v3965_v7, %v3348_v60  ;;  %v3470_v2 = vld [vmem:[%s6292_s3 + $0x290] sm:$0xf0]  ;;  %v4026_v5 = vld [vmem:[%s6292_s3 + $0x384] sm:$0xf]  ;;  %v3316_v7 = vld [vmem:[%s6292_s3 + $0x148] sm:$0xf] }
 0x105   :  { %v3598_v51 = vld [vmem:[%s6292_s3 + $0x390] sm:$0xf0] }
 0x106   :  { %2198 = vmatpush.bf16.msra.mxu0 %v3253_v56  ;;  %2211 = vmatpush.bf16.msra.mxu1 %v3381_v6  ;;  %v3998_v56 = vld [vmem:[%s6292_s3 + $0x2a4] sm:$0xf]  ;;  %v1222_v6 = vmul.f32 0.6931472, %v4105_v37 }
 0x107   :  { %2171 = vmatpush.bf16.msrb.mxu2 %v3521_v63  ;;  %2184 = vmatpush.bf16.msrb.mxu3 %v3649_v36  ;;  %v3489_v57 = vor.u32 %v3998_v56, %v3486_v41  ;;  %v3957_v56 = vld [vmem:[%s6292_s3 + $0x154] sm:$0xf0]  ;;  %v3601_v41 = vor.u32 %v4026_v5, %v3598_v51 }
 0x108   :  { %v1001_v35 = vpop.f32.mrf.mxu2  ;;  %v977_v48 = vpop.f32.mrf.mxu0  ;;  %v5552_v25 = vadd.f32 %v1222_v6, %v5240_v3  ;;  %v3617_v3 = vor.u32 %v4030_v18, %v3614_v19  ;;  %v3317_v18 = vor.u32 %v3957_v56, %v3316_v7  ;;  %v3172_v19 = vld [vmem:[%s6292_s3 + $0x28] sm:$0xf]  ;;  %v3982_v7 = vld [vmem:[%s6292_s3 + $0x224] sm:$0xf] }
 0x109   :  { %v1002_v38 = vadd.f32 %v1001_v35, %v989_v11  ;;  %v1014_v15 = vpop.f32.mrf.mxu3  ;;  %v990_v54 = vpop.f32.mrf.mxu1  ;;  %v3994_v35 = vld [vmem:[%s6292_s3 + $0x284] sm:$0xf] }
 0x10a   :  { %2199 = vmatpush.bf16.msra.mxu0 %v3237_v50  ;;  %2212 = vmatpush.bf16.msra.mxu1 %v3365_v55  ;;  %v1224_v37 = vsub.f32 %v5527_v8, %v5552_v25  ;;  %v3205_v54 = vor.u32 %v3929_v23, %v3204_v21  ;;  %v3333_v55 = vor.u32 %v3961_v32, %v3332_v24  ;;  %v3300_v21 = vld [vmem:[%s6292_s3 + $0x128] sm:$0xf]  ;;  %v3953_v23 = vld [vmem:[%s6292_s3 + $0x134] sm:$0xf0]  ;;  %v3566_v32 = vld [vmem:[%s6292_s3 + $0x350] sm:$0xf0] }
 0x10b   :  { %v1015_v42 = vadd.f32 %v1014_v15, %v1002_v38  ;;  %2172 = vmatpush.bf16.msrb.mxu2 %v3505_v61  ;;  %2185 = vmatpush.bf16.msrb.mxu3 %v3633_v17  ;;  %v4029_v8 = vld [vmem:[%s6292_s3 + $0x394] sm:$0xf0] }
 0x10d   :  { %1021 = vst [vmem:[%s6293_s6 + $0x18] sm:$0xff] %v1015_v42  ;;  %v1237_v11 = vsub.f32 %v1015_v42, %v5068_v9  ;;  %v1238_v63 = vsub.f32 %v1015_v42, %v5098_v29  ;;  %v1239_v13 = vsub.f32 %v1015_v42, %v5158_v58  ;;  %v1240_v16 = vsub.f32 %v1015_v42, %v5151_v53  ;;  %v3925_v42 = vld [vmem:[%s6292_s3 + $0x54] sm:$0xf0] }
 0x10e   :  { %2200 = vmatpush.bf16.msra.mxu0 %v3221_v1  ;;  %2213 = vmatpush.bf16.msra.mxu1 %v3349_v20  ;;  %v3990_v1 = vld [vmem:[%s6292_s3 + $0x264] sm:$0xf]  ;;  %v3921_v20 = vld [vmem:[%s6292_s3 + $0x34] sm:$0xf0] }
 0x10f   :  { %v1241_v26 = vmul.f32 %v1237_v11, %v1237_v11  ;;  %v1242_v27 = vmul.f32 %v1238_v63, %v1238_v63  ;;  %v1243_v28 = vmul.f32 %v1239_v13, %v1239_v13  ;;  %v1244_v31 = vmul.f32 %v1240_v16, %v1240_v16  ;;  %2173 = vmatpush.bf16.msrb.mxu2 %v3489_v57  ;;  %v3454_v13 = vld [vmem:[%s6292_s3 + $0x270] sm:$0xf0]  ;;  %v4022_v16 = vld [vmem:[%s6292_s3 + $0x364] sm:$0xf] }
 0x110   :  { %v1003_v36 = vpop.f32.mrf.mxu2  ;;  %2186 = vmatpush.bf16.msrb.mxu3 %v3617_v3  ;;  %v3457_v24 = vor.u32 %v3990_v1, %v3454_v13  ;;  %v3284_v3 = vld [vmem:[%s6292_s3 + $0x108] sm:$0xf]  ;;  %v3422_v1 = vld [vmem:[%s6292_s3 + $0x230] sm:$0xf0] }
 0x111   :  { %v5565_v38 = vadd.f32 %v1241_v26, %v1233_v39  ;;  %v5567_v15 = vadd.f32 %v1242_v27, %v1234_v43  ;;  %v5569_v48 = vadd.f32 %v1243_v28, %v1235_v0  ;;  %v5571_v50 = vadd.f32 %v1244_v31, %v1236_v4  ;;  %v1016_v47 = vpop.f32.mrf.mxu3  ;;  %v3188_v39 = vld [vmem:[%s6292_s3 + $0x48] sm:$0xf]  ;;  %2153 = vmatmul.bf16.vlgmr.msrb.gmra.mxu0 %v5444_v62  ;;  %v3986_v26 = vld [vmem:[%s6292_s3 + $0x244] sm:$0xf]  ;;  %v3438_v28 = vld [vmem:[%s6292_s3 + $0x250] sm:$0xf0] }
 0x112   :  { %v3473_v43 = vor.u32 %v3994_v35, %v3470_v2  ;;  %2166 = vmatmul.bf16.vlgmr.msrb.gmra.mxu1 %v5450_v44  ;;  %2201 = vmatpush.bf16.msra.mxu0 %v3205_v54  ;;  %v4018_v31 = vld [vmem:[%s6292_s3 + $0x344] sm:$0xf]  ;;  %v3173_v35 = vor.u32 %v3921_v20, %v3172_v19  ;;  %v3156_v2 = vld [vmem:[%s6292_s3 + $0x8] sm:$0xf]  ;;  %v3917_v36 = vld [vmem:[%s6292_s3 + $0x14] sm:$0xf0]  ;;  %v3301_v54 = vor.u32 %v3953_v23, %v3300_v21 }
 0x113   :  { %v1249_v60 = vmul.f32 4.0, %v5565_v38  ;;  %v1250_v61 = vmul.f32 4.0, %v5567_v15  ;;  %v1251_v0 = vmul.f32 4.0, %v5569_v48  ;;  %v1252_v4 = vmul.f32 4.0, %v5571_v50  ;;  %2214 = vmatpush.bf16.msra.mxu1 %v3333_v55  ;;  %v3949_v55 = vld [vmem:[%s6292_s3 + $0x114] sm:$0xf0] }
 0x114   :  { %2174 = vmatpush.bf16.msrb.mxu2 %v3473_v43  ;;  %2187 = vmatpush.bf16.msrb.mxu3 %v3601_v41  ;;  %v3270_v43 = vld [vmem:[%s6292_s3 + $0xf8] sm:$0xf0]  ;;  %v3285_v13 = vor.u32 %v3949_v55, %v3284_v3  ;;  %v3425_v19 = vor.u32 %v3982_v7, %v3422_v1  ;;  %v3978_v23 = vld [vmem:[%s6292_s3 + $0x204] sm:$0xf]  ;;  %v3967_v3 = vld [vmem:[%s6292_s3 + $0x1ac] sm:$0xf] }
 0x115   :  { %v1253_v17 = vsub.f32 %v5149_v52, %v1249_v60  ;;  %v1254_v6 = vsub.f32 %v5209_v46, %v1250_v61  ;;  %v1255_v11 = vsub.f32 %v5207_v45, %v1251_v0  ;;  %v1256_v63 = vsub.f32 %v5199_v40, %v1252_v4  ;;  %v3582_v52 = vld [vmem:[%s6292_s3 + $0x370] sm:$0xf0]  ;;  %v3975_v61 = vld [vmem:[%s6292_s3 + $0x1ec] sm:$0xf]  ;;  %v3398_v0 = vld [vmem:[%s6292_s3 + $0x1f8] sm:$0xf0] }
 0x116   :  { %v3189_v45 = vor.u32 %v3925_v42, %v3188_v39  ;;  %v3585_v57 = vor.u32 %v4022_v16, %v3582_v52  ;;  %v3943_v39 = vld [vmem:[%s6292_s3 + $0xec] sm:$0xf]  ;;  %v3441_v4 = vor.u32 %v3986_v26, %v3438_v28  ;;  %v3569_v42 = vor.u32 %v4018_v31, %v3566_v32  ;;  %v3382_v20 = vld [vmem:[%s6292_s3 + $0x1d8] sm:$0xf0]  ;;  %v3534_v26 = vld [vmem:[%s6292_s3 + $0x310] sm:$0xf0] }
 0x117   :  { %v1257_v46 = vmax.f32 %v1253_v17, %v1254_v6  ;;  %v1258_v40 = vmax.f32 %v1255_v11, %v1256_v63  ;;  %2215 = vmatpush.bf16.msra.mxu1 %v3317_v18  ;;  %v3273_v16 = vor.u32 %v3943_v39, %v3270_v43  ;;  %v3939_v52 = vld [vmem:[%s6292_s3 + $0xcc] sm:$0xf] }
 0x118   :  { %2202 = vmatpush.bf16.msra.mxu0 %v3189_v45  ;;  %2175 = vmatpush.bf16.msrb.mxu2 %v3457_v24  ;;  %v3971_v18 = vld [vmem:[%s6292_s3 + $0x1cc] sm:$0xf]  ;;  %v3406_v24 = vld [vmem:[%s6292_s3 + $0x210] sm:$0xf0] }
 0x119   :  { %v5628_v27 = vmax.f32 %v1257_v46, %v1258_v40  ;;  %2188 = vmatpush.bf16.msrb.mxu3 %v3585_v57  ;;  %v3401_v46 = vor.u32 %v3975_v61, %v3398_v0  ;;  %v3254_v40 = vld [vmem:[%s6292_s3 + $0xd8] sm:$0xf0]  ;;  %v4010_v57 = vld [vmem:[%s6292_s3 + $0x304] sm:$0xf]  ;;  %v3385_v31 = vor.u32 %v3971_v18, %v3382_v20  ;;  %v3935_v32 = vld [vmem:[%s6292_s3 + $0xac] sm:$0xf] }
 0x11a   :  { %v3257_v28 = vor.u32 %v3939_v52, %v3254_v40  ;;  %v3222_v61 = vld [vmem:[%s6292_s3 + $0x98] sm:$0xf0] }
 0x11b   :  { %v1260_v47 = vsub.f32 %v1253_v17, %v5628_v27  ;;  %v1261_v5 = vsub.f32 %v1254_v6, %v5628_v27  ;;  %v1262_v51 = vsub.f32 %v1255_v11, %v5628_v27  ;;  %v1263_v60 = vsub.f32 %v1256_v63, %v5628_v27  ;;  %v4014_v11 = vld [vmem:[%s6292_s3 + $0x324] sm:$0xf]  ;;  %v3550_v63 = vld [vmem:[%s6292_s3 + $0x330] sm:$0xf0]  ;;  %2216 = vmatpush.bf16.msra.mxu1 %v3301_v54  ;;  %v3318_v40 = vld [vmem:[%s6292_s3 + $0x158] sm:$0xf0] }
 0x11c   :  { %2203 = vmatpush.bf16.msra.mxu0 %v3173_v35  ;;  %v3157_v6 = vor.u32 %v3917_v36, %v3156_v2  ;;  %2176 = vmatpush.bf16.msrb.mxu2 %v3441_v4  ;;  %v3553_v21 = vor.u32 %v4014_v11, %v3550_v63  ;;  %v3238_v35 = vld [vmem:[%s6292_s3 + $0xb8] sm:$0xf0]  ;;  %v3409_v2 = vor.u32 %v3978_v23, %v3406_v24  ;;  %v3963_v4 = vld [vmem:[%s6292_s3 + $0x18c] sm:$0xf] }
 0x11d   :  { %v1264_v56 = vmul.f32 1.442695, %v1260_v47  ;;  %v1266_v41 = vmul.f32 1.442695, %v1261_v5  ;;  %v1268_v17 = vmul.f32 1.442695, %v1262_v51  ;;  %2189 = vmatpush.bf16.msrb.mxu3 %v3569_v42  ;;  %v3537_v5 = vor.u32 %v4010_v57, %v3534_v26 }
 0x11e   :  { %v1270_v45 = vmul.f32 1.442695, %v1263_v60  ;;  %v3366_v47 = vld [vmem:[%s6292_s3 + $0x1b8] sm:$0xf0]  ;;  %v3241_v55 = vor.u32 %v3935_v32, %v3238_v35  ;;  %v3931_v60 = vld [vmem:[%s6292_s3 + $0x8c] sm:$0xf] }
 0x11f   :  { %4106 = vpow2.f32 %v1264_v56  ;;  %2217 = vmatpush.bf16.msra.mxu1 %v3285_v13  ;;  %v3369_v43 = vor.u32 %v3967_v3, %v3366_v47  ;;  %v3350_v42 = vld [vmem:[%s6292_s3 + $0x198] sm:$0xf0]  ;;  %v3959_v11 = vld [vmem:[%s6292_s3 + $0x16c] sm:$0xf] }
 0x120   :  { %4108 = vpow2.f32 %v1266_v41  ;;  %2204 = vmatpush.bf16.msra.mxu0 %v3157_v6  ;;  %2177 = vmatpush.bf16.msrb.mxu2 %v3425_v19  ;;  %v3225_v41 = vor.u32 %v3931_v60, %v3222_v61  ;;  %v3353_v1 = vor.u32 %v3963_v4, %v3350_v42  ;;  %v3206_v6 = vld [vmem:[%s6292_s3 + $0x78] sm:$0xf0]  ;;  %v3951_v24 = vld [vmem:[%s6292_s3 + $0x12c] sm:$0xf]  ;;  %v4009_v61 = vld [vmem:[%s6292_s3 + $0x2f4] sm:$0xf0] }
 0x121   :  { %4110 = vpow2.f32 %v1268_v17  ;;  %2190 = vmatpush.bf16.msrb.mxu3 %v3553_v21  ;;  %v3927_v17 = vld [vmem:[%s6292_s3 + $0x6c] sm:$0xf]  ;;  %v3334_v63 = vld [vmem:[%s6292_s3 + $0x178] sm:$0xf0] }
 0x122   :  { %4112 = vpow2.f32 %v1270_v45  ;;  %2218 = vmatmul.bf16.vlgmr.msra.gmra.mxu1 %v5450_v44  ;;  %v3209_v13 = vor.u32 %v3927_v17, %v3206_v6  ;;  %v3337_v52 = vor.u32 %v3959_v11, %v3334_v63  ;;  %v3190_v45 = vld [vmem:[%s6292_s3 + $0x58] sm:$0xf0]  ;;  %v3919_v21 = vld [vmem:[%s6292_s3 + $0x2c] sm:$0xf] }
 0x123   :  { %2262 = vmatpush.bf16.msrb.mxu1 %v3401_v46  ;;  %2205 = vmatmul.bf16.vlgmr.msra.gmra.mxu0 %v5444_v62  ;;  %v3955_v46 = vld [vmem:[%s6292_s3 + $0x14c] sm:$0xf]  ;;  %v3174_v23 = vld [vmem:[%s6292_s3 + $0x38] sm:$0xf0] }
 0x124   :  { %2249 = vmatpush.bf16.msrb.mxu0 %v3273_v16  ;;  %2178 = vmatpush.bf16.msrb.mxu2 %v3409_v2  ;;  %v3923_v16 = vld [vmem:[%s6292_s3 + $0x4c] sm:$0xf]  ;;  %v3321_v20 = vor.u32 %v3955_v46, %v3318_v40  ;;  %v3302_v57 = vld [vmem:[%s6292_s3 + $0x138] sm:$0xf0]  ;;  %v3177_v35 = vor.u32 %v3919_v21, %v3174_v23  ;;  %v4005_v46 = vld [vmem:[%s6292_s3 + $0x2d4] sm:$0xf0] }
 0x125   :  { %v4107_v36 = vpop.eup %4106  ;;  %2191 = vmatpush.bf16.msrb.mxu3 %v3537_v5  ;;  %v3193_v19 = vor.u32 %v3923_v16, %v3190_v45  ;;  %v3915_v47 = vld [vmem:[%s6292_s3 + $0xc] sm:$0xf]  ;;  %v3158_v5 = vld [vmem:[%s6292_s3 + $0x18] sm:$0xf0]  ;;  %v4073_v16 = vld [vmem:[%s6295_s4 + $0xf4] sm:$0xf0] }
 0x126   :  { %v4109_v51 = vpop.eup %4108  ;;  %v3161_v4 = vor.u32 %v3915_v47, %v3158_v5  ;;  %v3772_v5 = vld [vmem:[%s6295_s4 + $0xe0] sm:$0xf] }
 0x127   :  { %v1272_v54 = vadd.f32 %v4109_v51, %v4107_v36  ;;  %v4111_v39 = vpop.eup %4110  ;;  %2263 = vmatpush.bf16.msrb.mxu1 %v3385_v31 }
 0x128   :  { %2250 = vmatpush.bf16.msrb.mxu0 %v3257_v28  ;;  %v4113_v7 = vpop.eup %4112 }
 0x129   :  { %v1273_v0 = vadd.f32 %v4111_v39, %v1272_v54  ;;  %v3286_v54 = vld [vmem:[%s6292_s3 + $0x118] sm:$0xf0] }
 0x12b   :  { %v1274_v56 = vadd.f32 %v4113_v7, %v1273_v0  ;;  %2264 = vmatpush.bf16.msrb.mxu1 %v3369_v43 }
 0x12c   :  { %2251 = vmatpush.bf16.msrb.mxu0 %v3241_v55 }
 0x12d   :  { %4114 = vrcp.f32 %v1274_v56 }
 0x12e   :  { %4116 = vlog2.f32 %v1274_v56 }
 0x12f   :  { %2265 = vmatpush.bf16.msrb.mxu1 %v3353_v1  ;;  %v4041_v1 = vld [vmem:[%s6292_s3 + $0x3f4] sm:$0xf0] }
 0x130   :  { %2252 = vmatpush.bf16.msrb.mxu0 %v3225_v41 }
 0x133   :  { %v4115_v18 = vpop.eup %4114  ;;  %2266 = vmatpush.bf16.msrb.mxu1 %v3337_v52 }
 0x134   :  { %2253 = vmatpush.bf16.msrb.mxu0 %v3209_v13  ;;  %v5765_v26 = vmul.f32 %v4115_v18, %v4107_v36  ;;  %v5767_v28 = vmul.f32 %v4115_v18, %v4109_v51  ;;  %v5769_v31 = vmul.f32 %v4115_v18, %v4111_v39  ;;  %v5771_v32 = vmul.f32 %v4115_v18, %v4113_v7  ;;  %v3947_v51 = vld [vmem:[%s6292_s3 + $0x10c] sm:$0xf]  ;;  %v4117_v0 = vpop.eup %4116  ;;  %v3780_v13 = vld [vmem:[%s6295_s4 + $0xf0] sm:$0xf] }
 0x135   :  { %v3305_v36 = vor.u32 %v3951_v24, %v3302_v57  ;;  %v3289_v11 = vor.u32 %v3947_v51, %v3286_v54  ;;  %v3636_v24 = vld [vmem:[%s6292_s3 + $0x3c8] sm:$0xf] }
 0x136   :  { %v1280_v2 = vmul.f32 %v5765_v26, %v5072_v12  ;;  %v1281_v3 = vmul.f32 %v5767_v28, %v5111_v34  ;;  %1317 = vst [vmem:[%s6294_s7 + $0x8] sm:$0xff] %v5765_v26  ;;  %v1287_v12 = vmul.f32 %v5765_v26, %v5068_v9  ;;  %v1288_v34 = vmul.f32 %v5767_v28, %v5098_v29 }
 0x137   :  { %1318 = vst [vmem:[%s6294_s7 + $0x18] sm:$0xff] %v5767_v28  ;;  %2267 = vmatpush.bf16.msrb.mxu1 %v3321_v20  ;;  %v1282_v55 = vmul.f32 %v5769_v31, %v5070_v10  ;;  %v1305_v9 = vmul.f32 %v5765_v26, %v5565_v38  ;;  %v2581_v29 = vlaneseq  ;;  %v1289_v43 = vmul.f32 %v5769_v31, %v5158_v58  ;;  %v3524_v10 = vld [vmem:[%s6292_s3 + $0x2e8] sm:$0xf] }
 0x138   :  { %2254 = vmatpush.bf16.msrb.mxu0 %v3193_v19  ;;  %v1284_v39 = vadd.f32 %v1281_v3, %v1280_v2  ;;  %1319 = vst [vmem:[%s6294_s7 + $0x28] sm:$0xff] %v5769_v31  ;;  %v1291_v60 = vadd.f32 %v1288_v34, %v1287_v12  ;;  %v1306_v38 = vmul.f32 %v5767_v28, %v5567_v15  ;;  %v3652_v58 = vld [vmem:[%s6292_s3 + $0x3e8] sm:$0xf]  ;;  %v3716_v15 = vld [vmem:[%s6295_s4 + $0x70] sm:$0xf] }
 0x139   :  { %1320 = vst [vmem:[%s6294_s7 + $0x38] sm:$0xff] %v5771_v32  ;;  %v1283_v42 = vmul.f32 %v5771_v32, %v5100_v30  ;;  %v1290_v56 = vmul.f32 %v5771_v32, %v5151_v53  ;;  %v4057_v30 = vld [vmem:[%s6295_s4 + $0x74] sm:$0xf0]  ;;  %v1307_v17 = vmul.f32 %v5769_v31, %v5569_v48  ;;  %v3525_v63 = vor.u32 %v4009_v61, %v3524_v10  ;;  %v3508_v48 = vld [vmem:[%s6292_s3 + $0x2c8] sm:$0xf] }
 0x13a   :  { %v1285_v7 = vadd.f32 %v1284_v39, %v1282_v55  ;;  %v1292_v41 = vadd.f32 %v1291_v60, %v1289_v43  ;;  %v1309_v6 = vadd.f32 %v1306_v38, %v1305_v9  ;;  %v5849_v52 = vand.u32 127, %v2581_v29  ;;  %v3708_v2 = vld [vmem:[%s6295_s4 + $0x60] sm:$0xf]  ;;  %v4055_v3 = vld [vmem:[%s6295_s4 + $0x64] sm:$0xf0] }
 0x13b   :  { %2268 = vmatpush.bf16.msrb.mxu1 %v3305_v36  ;;  %v1308_v40 = vmul.f32 %v5771_v32, %v5571_v50  ;;  %v1314_v19 = vmul.f32 0.6931472, %v4117_v0  ;;  %v3653_v21 = vor.u32 %v4041_v1, %v3652_v58  ;;  %v3717_v23 = vor.u32 %v4057_v30, %v3716_v15  ;;  %v4037_v50 = vld [vmem:[%s6292_s3 + $0x3d4] sm:$0xf0]  ;;  %v4071_v12 = vld [vmem:[%s6295_s4 + $0xe4] sm:$0xf0] }
 0x13c   :  { %2255 = vmatpush.bf16.msrb.mxu0 %v3177_v35  ;;  %v5841_v53 = vadd.f32 %v1285_v7, %v1283_v42  ;;  %v5851_v45 = vadd.f32 %v1292_v41, %v1290_v56  ;;  %v1310_v18 = vadd.f32 %v1309_v6, %v1307_v17  ;;  %v3781_v35 = vor.u32 %v4073_v16, %v3780_v13  ;;  %v3492_v39 = vld [vmem:[%s6292_s3 + $0x2a8] sm:$0xf]  ;;  %v4001_v9 = vld [vmem:[%s6292_s3 + $0x2b4] sm:$0xf0]  ;;  %v3700_v10 = vld [vmem:[%s6295_s4 + $0x50] sm:$0xf] }
 0x13d   :  { %v3509_v47 = vor.u32 %v4005_v46, %v3508_v48  ;;  %v1315_v51 = vadd.f32 %v1314_v19, %v5628_v27  ;;  %vm2583_vm0 = vcmp.ge.s32.totalorder %v5849_v52, 1  ;;  %vm2584_vm1 = vcmp.lt.s32.totalorder %v5849_v52, 7  ;;  %v3620_v27 = vld [vmem:[%s6292_s3 + $0x3a8] sm:$0xf]  ;;  %v4033_v60 = vld [vmem:[%s6292_s3 + $0x3b4] sm:$0xf0] }
 0x13e   :  { %v5863_v20 = vpack.c.bf16 %v5841_v53, %v5841_v53  ;;  %v5870_v57 = vpack.c.bf16 %v5851_v45, %v5851_v45  ;;  %v1311_v36 = vadd.f32 %v1310_v18, %v1308_v40  ;;  %v3637_v54 = vor.u32 %v4037_v50, %v3636_v24  ;;  %v4053_v61 = vld [vmem:[%s6295_s4 + $0x54] sm:$0xf0]  ;;  %vm5916_vm2 = vmand %vm2583_vm0, %vm2584_vm1  ;;  %v3764_v38 = vld [vmem:[%s6295_s4 + $0xd0] sm:$0xf] }
 0x13f   :  { %2269 = vmatpush.bf16.msrb.mxu1 %v3289_v11  ;;  %v3709_v55 = vor.u32 %v4055_v3, %v3708_v2  ;;  %v3773_v29 = vor.u32 %v4071_v12, %v3772_v5  ;;  %v4069_v0 = vld [vmem:[%s6295_s4 + $0xd4] sm:$0xf0]  ;;  %v3476_v42 = vld [vmem:[%s6292_s3 + $0x288] sm:$0xf]  ;;  %v3621_v7 = vor.u32 %v4033_v60, %v3620_v27  ;;  %v3701_v58 = vor.u32 %v4053_v61, %v3700_v10  ;;  %v3692_v1 = vld [vmem:[%s6295_s4 + $0x40] sm:$0xf] }
 0x140   :  { %2256 = vmatpush.bf16.msrb.mxu0 %v3161_v4  ;;  %2127 = vmatmul.bf16.vlgmr.msra.gmra.mxu2 %v5863_v20  ;;  %v1312_v34 = vmul.f32 -4.0, %v1311_v36  ;;  %v3493_v4 = vor.u32 %v4001_v9, %v3492_v39  ;;  %v3997_v56 = vld [vmem:[%s6292_s3 + $0x294] sm:$0xf0]  ;;  %v3604_v41 = vld [vmem:[%s6292_s3 + $0x388] sm:$0xf]  ;;  %v1295_v5 = vmul.f32 %v5767_v28, %v5344_v14  ;;  %vm2601_vm3 = vcmp.eq.s32.totalorder %v5849_v52, 1 }
 0x141   :  { %2140 = vmatmul.bf16.vlgmr.msra.gmra.mxu3 %v5870_v57  ;;  %2223 = vmatpush.bf16.msra.mxu2 %v3525_v63  ;;  %v4051_v15 = vld [vmem:[%s6295_s4 + $0x44] sm:$0xf0]  ;;  %v3756_v30 = vld [vmem:[%s6295_s4 + $0xc0] sm:$0xf]  ;;  %v3477_v6 = vor.u32 %v3997_v56, %v3476_v42  ;;  %v3605_v63 = vor.u32 %v4029_v8, %v3604_v41  ;;  %v3993_v16 = vld [vmem:[%s6292_s3 + $0x274] sm:$0xf0] }
 0x142   :  { %2236 = vmatpush.bf16.msra.mxu3 %v3653_v21  ;;  %v1316_v43 = vsub.f32 %v1312_v34, %v1315_v51  ;;  %2270 = vmatmul.bf16.vlgmr.msrb.gmra.mxu1 %v5450_v44  ;;  %v4067_v17 = vld [vmem:[%s6295_s4 + $0xc4] sm:$0xf0]  ;;  %v3693_v13 = vor.u32 %v4051_v15, %v3692_v1  ;;  %v4025_v46 = vld [vmem:[%s6292_s3 + $0x374] sm:$0xf0]  ;;  %v3684_v18 = vld [vmem:[%s6295_s4 + $0x30] sm:$0xf] }
 0x143   :  { %2508 = vmatpush.bf16.msra.mxu1 %v3781_v35  ;;  %2257 = vmatmul.bf16.vlgmr.msrb.gmra.mxu0 %v5444_v62  ;;  %v3460_v11 = vld [vmem:[%s6292_s3 + $0x268] sm:$0xf]  ;;  %v3757_v40 = vor.u32 %v4067_v17, %v3756_v30  ;;  %v4049_v19 = vld [vmem:[%s6295_s4 + $0x34] sm:$0xf0]  ;;  %v3748_v21 = vld [vmem:[%s6295_s4 + $0xb0] sm:$0xf]  ;;  %v1301_v62 = vmul.f32 %v5841_v53, %v5841_v53  ;;  %v1297_v17 = vmul.f32 %v5771_v32, %v5377_v59 }
 0x144   :  { %2495 = vmatpush.bf16.msra.mxu0 %v3717_v23  ;;  %v2586_v44 = vadd.f32 %v1316_v43, %v1224_v37  ;;  %v3765_v37 = vor.u32 %v4069_v0, %v3764_v38  ;;  %v3588_v48 = vld [vmem:[%s6292_s3 + $0x368] sm:$0xf]  ;;  %v4065_v23 = vld [vmem:[%s6295_s4 + $0xb4] sm:$0xf0]  ;;  %v3461_v24 = vor.u32 %v3993_v16, %v3460_v11  ;;  %v3685_v50 = vor.u32 %v4049_v19, %v3684_v18  ;;  %v3676_v51 = vld [vmem:[%s6295_s4 + $0x20] sm:$0xf] }
 0x145   :  { %2224 = vmatpush.bf16.msra.mxu2 %v3509_v47  ;;  %v3589_v35 = vor.u32 %v4025_v46, %v3588_v48  ;;  %v3444_v2 = vld [vmem:[%s6292_s3 + $0x248] sm:$0xf]  ;;  %v3989_v3 = vld [vmem:[%s6292_s3 + $0x254] sm:$0xf0]  ;;  %v1294_v47 = vmul.f32 %v5765_v26, %v5327_v22  ;;  %v3749_v12 = vor.u32 %v4065_v23, %v3748_v21  ;;  %v3740_v22 = vld [vmem:[%s6295_s4 + $0xa0] sm:$0xf]  ;;  %v1302_v38 = vmul.f32 %v5851_v45, %v5851_v45 }
 0x146   :  { %2237 = vmatpush.bf16.msra.mxu3 %v3637_v54  ;;  %v2587_v25 = vsel %vm5916_vm2, %v2586_v44, 0.0  ;;  %v3572_v36 = vld [vmem:[%s6292_s3 + $0x348] sm:$0xf]  ;;  %v4021_v34 = vld [vmem:[%s6292_s3 + $0x354] sm:$0xf0]  ;;  %v3445_v26 = vor.u32 %v3989_v3, %v3444_v2  ;;  %vm2599_vm4 = vcmp.eq.s32.totalorder %v5849_v52, 0 }
 0x147   :  { %2509 = vmatpush.bf16.msra.mxu1 %v3773_v29  ;;  %2588 = vadd.xlane.f32.xlu0 %v2587_v25  ;;  %v4047_v54 = vld [vmem:[%s6295_s4 + $0x24] sm:$0xf0]  ;;  %v3573_v28 = vor.u32 %v4021_v34, %v3572_v36  ;;  %v3985_v9 = vld [vmem:[%s6292_s3 + $0x234] sm:$0xf0]  ;;  %v1298_v29 = vadd.f32 %v1295_v5, %v1294_v47  ;;  %v3668_v10 = vld [vmem:[%s6295_s4 + $0x10] sm:$0xf] }
 0x148   :  { %2496 = vmatpush.bf16.msra.mxu0 %v3709_v55  ;;  %v4063_v14 = vld [vmem:[%s6295_s4 + $0xa4] sm:$0xf0]  ;;  %v3677_v55 = vor.u32 %v4047_v54, %v3676_v51  ;;  %v4017_v60 = vld [vmem:[%s6292_s3 + $0x334] sm:$0xf0]  ;;  %v3732_v0 = vld [vmem:[%s6295_s4 + $0x90] sm:$0xf] }
 0x149   :  { %2225 = vmatpush.bf16.msra.mxu2 %v3493_v4  ;;  %v3428_v39 = vld [vmem:[%s6292_s3 + $0x228] sm:$0xf]  ;;  %v3741_v43 = vor.u32 %v4063_v14, %v3740_v22  ;;  %v4045_v61 = vld [vmem:[%s6295_s4 + $0x14] sm:$0xf0]  ;;  %v1296_v4 = vmul.f32 %v5769_v31, %v5352_v49  ;;  %v3660_v8 = vld [vmem:[%s6295_s4] sm:$0xf] }
 0x14a   :  { %2238 = vmatpush.bf16.msra.mxu3 %v3621_v7  ;;  %v3556_v27 = vld [vmem:[%s6292_s3 + $0x328] sm:$0xf]  ;;  %v4061_v44 = vld [vmem:[%s6295_s4 + $0x94] sm:$0xf0]  ;;  %v3429_v42 = vor.u32 %v3985_v9, %v3428_v39  ;;  %v3669_v7 = vor.u32 %v4045_v61, %v3668_v10  ;;  %v4007_v15 = vld [vmem:[%s6292_s3 + $0x2ec] sm:$0xf] }
 0x14b   :  { %2510 = vmatpush.bf16.msra.mxu1 %v3765_v37  ;;  %v3412_v53 = vld [vmem:[%s6292_s3 + $0x208] sm:$0xf]  ;;  %v3557_v45 = vor.u32 %v4017_v60, %v3556_v27  ;;  %v4013_v49 = vld [vmem:[%s6292_s3 + $0x314] sm:$0xf0]  ;;  %v1299_v31 = vadd.f32 %v1298_v29, %v1296_v4  ;;  %v3733_v41 = vor.u32 %v4061_v44, %v3732_v0  ;;  %v3724_v37 = vld [vmem:[%s6295_s4 + $0x80] sm:$0xf] }
 0x14c   :  { %2497 = vmatpush.bf16.msra.mxu0 %v3701_v58  ;;  %v3981_v58 = vld [vmem:[%s6292_s3 + $0x214] sm:$0xf0]  ;;  %v3540_v56 = vld [vmem:[%s6292_s3 + $0x308] sm:$0xf]  ;;  %v3526_v30 = vld [vmem:[%s6292_s3 + $0x2f8] sm:$0xf0] }
 0x14d   :  { %2226 = vmatpush.bf16.msra.mxu2 %v3477_v6  ;;  %v4043_v25 = vld [vmem:[%s6295_s4 + $0x4] sm:$0xf0]  ;;  %v1303_v6 = vadd.f32 %v1302_v38, %v1301_v62  ;;  %v3413_v11 = vor.u32 %v3981_v58, %v3412_v53  ;;  %v3541_v16 = vor.u32 %v4013_v49, %v3540_v56  ;;  %v1300_v46 = vadd.f32 %v1299_v31, %v1297_v17  ;;  %v4003_v19 = vld [vmem:[%s6292_s3 + $0x2cc] sm:$0xf]  ;;  %v3510_v21 = vld [vmem:[%s6292_s3 + $0x2d8] sm:$0xf0] }
 0x14e   :  { %2239 = vmatpush.bf16.msra.mxu3 %v3605_v63  ;;  %v4059_v1 = vld [vmem:[%s6295_s4 + $0x84] sm:$0xf0]  ;;  %v4039_v63 = vld [vmem:[%s6292_s3 + $0x3ec] sm:$0xf]  ;;  %v3661_v48 = vor.u32 %v4043_v25, %v3660_v8  ;;  %v3529_v18 = vor.u32 %v4007_v15, %v3526_v30  ;;  %v3494_v47 = vld [vmem:[%s6292_s3 + $0x2b8] sm:$0xf0] }
 0x14f   :  { %2511 = vmatpush.bf16.msra.mxu1 %v3757_v40  ;;  %v3725_v40 = vor.u32 %v4059_v1, %v3724_v37  ;;  %v1304_v32 = vsub.f32 %v1300_v46, %v1303_v6  ;;  %v4035_v23 = vld [vmem:[%s6292_s3 + $0x3cc] sm:$0xf]  ;;  %v3622_v5 = vld [vmem:[%s6292_s3 + $0x3b8] sm:$0xf0]  ;;  %v4072_v25 = vld [vmem:[%s6295_s4 + $0xf4] sm:$0xf] }
 0x150   :  { %2498 = vmatpush.bf16.msra.mxu0 %v3693_v13  ;;  %2179 = vmatmul.bf16.vlgmr.msrb.gmra.mxu2 %v5863_v20  ;;  %v3654_v13 = vld [vmem:[%s6292_s3 + $0x3f8] sm:$0xf0]  ;;  %v3999_v36 = vld [vmem:[%s6292_s3 + $0x2ac] sm:$0xf]  ;;  %v4054_v6 = vld [vmem:[%s6295_s4 + $0x64] sm:$0xf] }
 0x151   :  { %2192 = vmatmul.bf16.vlgmr.msrb.gmra.mxu3 %v5870_v57  ;;  %2227 = vmatpush.bf16.msra.mxu2 %v3461_v24  ;;  %v3657_v59 = vor.u32 %v4039_v63, %v3654_v13  ;;  %v3638_v24 = vld [vmem:[%s6292_s3 + $0x3d8] sm:$0xf0]  ;;  %v6093_v2 = vpack.c.bf16 %v1304_v32, %v1304_v32  ;;  %v3995_v51 = vld [vmem:[%s6292_s3 + $0x28c] sm:$0xf]  ;;  %v4070_v63 = vld [vmem:[%s6295_s4 + $0xe4] sm:$0xf] }
 0x152   :  { %2240 = vmatpush.bf16.msra.mxu3 %v3589_v35  ;;  %v6091_v35 = vpack.c.bf16 %v5498_v33, %v5498_v33  ;;  %v3641_v3 = vor.u32 %v4035_v23, %v3638_v24  ;;  %v4031_v33 = vld [vmem:[%s6292_s3 + $0x3ac] sm:$0xf]  ;;  %v3478_v54 = vld [vmem:[%s6292_s3 + $0x298] sm:$0xf0]  ;;  %v4052_v46 = vld [vmem:[%s6295_s4 + $0x54] sm:$0xf] }
 0x153   :  { %2512 = vmatpush.bf16.msra.mxu1 %v3749_v12  ;;  %v3497_v12 = vor.u32 %v3999_v36, %v3494_v47  ;;  %v3625_v34 = vor.u32 %v4031_v33, %v3622_v5  ;;  %v4027_v22 = vld [vmem:[%s6292_s3 + $0x38c] sm:$0xf]  ;;  %v3606_v14 = vld [vmem:[%s6292_s3 + $0x398] sm:$0xf0]  ;;  %v4066_v24 = vld [vmem:[%s6295_s4 + $0xc4] sm:$0xf] }
 0x154   :  { %2499 = vmatpush.bf16.msra.mxu0 %v3685_v50  ;;  %v3513_v50 = vor.u32 %v4003_v19, %v3510_v21  ;;  %v3462_v39 = vld [vmem:[%s6292_s3 + $0x278] sm:$0xf0]  ;;  %v4023_v9 = vld [vmem:[%s6292_s3 + $0x36c] sm:$0xf]  ;;  %v4050_v21 = vld [vmem:[%s6295_s4 + $0x44] sm:$0xf] }
 0x155   :  { %2228 = vmatpush.bf16.msra.mxu2 %v3445_v26  ;;  %v3481_v26 = vor.u32 %v3995_v51, %v3478_v54  ;;  %v3590_v27 = vld [vmem:[%s6292_s3 + $0x378] sm:$0xf0]  ;;  %v3987_v60 = vld [vmem:[%s6292_s3 + $0x24c] sm:$0xf]  ;;  %v4048_v33 = vld [vmem:[%s6295_s4 + $0x34] sm:$0xf] }
 0x156   :  { %2241 = vmatpush.bf16.msra.mxu3 %v3573_v28  ;;  %v3609_v28 = vor.u32 %v4027_v22, %v3606_v14  ;;  %v3446_v10 = vld [vmem:[%s6292_s3 + $0x258] sm:$0xf0]  ;;  %v4019_v61 = vld [vmem:[%s6292_s3 + $0x34c] sm:$0xf]  ;;  %v4046_v22 = vld [vmem:[%s6295_s4 + $0x24] sm:$0xf] }
 0x157   :  { %2513 = vmatpush.bf16.msra.mxu1 %v3741_v43  ;;  %v3593_v43 = vor.u32 %v4023_v9, %v3590_v27  ;;  %v3574_v62 = vld [vmem:[%s6292_s3 + $0x358] sm:$0xf0]  ;;  %v3449_v38 = vor.u32 %v3987_v60, %v3446_v10  ;;  %v3983_v44 = vld [vmem:[%s6292_s3 + $0x22c] sm:$0xf]  ;;  %v4060_v60 = vld [vmem:[%s6295_s4 + $0x94] sm:$0xf] }
 0x158   :  { %2500 = vmatpush.bf16.msra.mxu0 %v3677_v55  ;;  %v3991_v55 = vld [vmem:[%s6292_s3 + $0x26c] sm:$0xf]  ;;  %v3577_v0 = vor.u32 %v4019_v61, %v3574_v62  ;;  %v3430_v4 = vld [vmem:[%s6292_s3 + $0x238] sm:$0xf0]  ;;  %vm2605_vm5 = vcmp.eq.s32.totalorder %v5849_v52, 2 }
 0x159   :  { %2229 = vmatpush.bf16.msra.mxu2 %v3429_v42  ;;  %v3465_v29 = vor.u32 %v3991_v55, %v3462_v39  ;;  %v4015_v42 = vld [vmem:[%s6292_s3 + $0x32c] sm:$0xf]  ;;  %v3558_v53 = vld [vmem:[%s6292_s3 + $0x338] sm:$0xf0] }
 0x15a   :  { %2242 = vmatpush.bf16.msra.mxu3 %v3557_v45  ;;  %v3433_v45 = vor.u32 %v3983_v44, %v3430_v4  ;;  %v3979_v58 = vld [vmem:[%s6292_s3 + $0x20c] sm:$0xf]  ;;  %v3414_v56 = vld [vmem:[%s6292_s3 + $0x218] sm:$0xf0]  ;;  %v4058_v4 = vld [vmem:[%s6295_s4 + $0x84] sm:$0xf] }
 0x15b   :  { %2514 = vmatpush.bf16.msra.mxu1 %v3733_v41  ;;  %v4011_v49 = vld [vmem:[%s6292_s3 + $0x30c] sm:$0xf]  ;;  %v3542_v31 = vld [vmem:[%s6292_s3 + $0x318] sm:$0xf0]  ;;  %v4056_v41 = vld [vmem:[%s6295_s4 + $0x74] sm:$0xf]  ;;  %v3417_v1 = vor.u32 %v3979_v58, %v3414_v56 }
 0x15c   :  { %2501 = vmatpush.bf16.msra.mxu0 %v3669_v7  ;;  %v3561_v7 = vor.u32 %v4015_v42, %v3558_v53  ;;  %v3718_v8 = vld [vmem:[%s6295_s4 + $0x78] sm:$0xf0]  ;;  %v3545_v15 = vor.u32 %v4011_v49, %v3542_v31  ;;  %v3774_v13 = vld [vmem:[%s6295_s4 + $0xe8] sm:$0xf0] }
 0x15d   :  { %2230 = vmatpush.bf16.msra.mxu2 %v3413_v11  ;;  %v3782_v37 = vld [vmem:[%s6295_s4 + $0xf8] sm:$0xf0]  ;;  %v3721_v30 = vor.u32 %v4056_v41, %v3718_v8  ;;  %v3710_v11 = vld [vmem:[%s6295_s4 + $0x68] sm:$0xf0] }
 0x15e   :  { %2243 = vmatpush.bf16.msra.mxu3 %v3541_v16  ;;  %v3785_v17 = vor.u32 %v4072_v25, %v3782_v37  ;;  %v3713_v16 = vor.u32 %v4054_v6, %v3710_v11  ;;  %v3686_v5 = vld [vmem:[%s6295_s4 + $0x38] sm:$0xf0]  ;;  %v3678_v14 = vld [vmem:[%s6295_s4 + $0x28] sm:$0xf0] }
 0x15f   :  { %2515 = vmatpush.bf16.msra.mxu1 %v3725_v40  ;;  %v3702_v40 = vld [vmem:[%s6295_s4 + $0x58] sm:$0xf0]  ;;  %v3689_v51 = vor.u32 %v4048_v33, %v3686_v5  ;;  %v3742_v55 = vld [vmem:[%s6295_s4 + $0xa8] sm:$0xf0]  ;;  %v3681_v9 = vor.u32 %v4046_v22, %v3678_v14 }
 0x160   :  { %2502 = vmatpush.bf16.msra.mxu0 %v3661_v48  ;;  %2231 = vmatmul.bf16.vlgmr.msra.gmra.mxu2 %v5863_v20  ;;  %v3777_v48 = vor.u32 %v4070_v63, %v3774_v13  ;;  %v3705_v32 = vor.u32 %v4052_v46, %v3702_v40  ;;  %v3734_v10 = vld [vmem:[%s6295_s4 + $0x98] sm:$0xf0]  ;;  %v3726_v42 = vld [vmem:[%s6295_s4 + $0x88] sm:$0xf0] }
 0x161   :  { %2275 = vmatpush.bf16.msrb.mxu2 %v3529_v18  ;;  %2244 = vmatmul.bf16.vlgmr.msra.gmra.mxu3 %v5870_v57  ;;  %v4068_v18 = vld [vmem:[%s6295_s4 + $0xd4] sm:$0xf]  ;;  %v3737_v62 = vor.u32 %v4060_v60, %v3734_v10 }
 0x162   :  { %2288 = vmatpush.bf16.msrb.mxu3 %v3657_v59  ;;  %2516 = vmatmul.bf16.vlgmr.msra.gmra.mxu1 %v6093_v2  ;;  %v3766_v59 = vld [vmem:[%s6295_s4 + $0xd8] sm:$0xf0] }
 0x163   :  { %2503 = vmatmul.bf16.vlgmr.msra.gmra.mxu0 %v6091_v35  ;;  %v3769_v19 = vor.u32 %v4068_v18, %v3766_v59  ;;  %v2547_v18 = vld [vmem:[%s6296_s1] sm:$0xff]  ;;  %v2548_v59 = vld [vmem:[%s6296_s1 + $0x8] sm:$0xff] }
 0x165   :  { %2276 = vmatpush.bf16.msrb.mxu2 %v3513_v50 }
 0x166   :  { %2289 = vmatpush.bf16.msrb.mxu3 %v3641_v3 }
 0x169   :  { %2277 = vmatpush.bf16.msrb.mxu2 %v3497_v12  ;;  %v4064_v12 = vld [vmem:[%s6295_s4 + $0xb4] sm:$0xf] }
 0x16a   :  { %2290 = vmatpush.bf16.msrb.mxu3 %v3625_v34  ;;  %v3750_v34 = vld [vmem:[%s6295_s4 + $0xb8] sm:$0xf0] }
 0x16b   :  { %v3753_v54 = vor.u32 %v4064_v12, %v3750_v34 }
 0x16d   :  { %2278 = vmatpush.bf16.msrb.mxu2 %v3481_v26 }
 0x16e   :  { %2291 = vmatpush.bf16.msrb.mxu3 %v3609_v28  ;;  %v4062_v28 = vld [vmem:[%s6295_s4 + $0xa4] sm:$0xf] }
 0x16f   :  { %v3745_v27 = vor.u32 %v4062_v28, %v3742_v55 }
 0x171   :  { %2279 = vmatpush.bf16.msrb.mxu2 %v3465_v29  ;;  %v4044_v29 = vld [vmem:[%s6295_s4 + $0x14] sm:$0xf] }
 0x172   :  { %2292 = vmatpush.bf16.msrb.mxu3 %v3593_v43  ;;  %v3670_v43 = vld [vmem:[%s6295_s4 + $0x18] sm:$0xf0] }
 0x173   :  { %v3673_v61 = vor.u32 %v4044_v29, %v3670_v43 }
 0x175   :  { %2280 = vmatpush.bf16.msrb.mxu2 %v3449_v38  ;;  %v4042_v38 = vld [vmem:[%s6295_s4 + $0x4] sm:$0xf] }
 0x176   :  { %2293 = vmatpush.bf16.msrb.mxu3 %v3577_v0  ;;  %v3662_v0 = vld [vmem:[%s6295_s4 + $0x8] sm:$0xf0] }
 0x179   :  { %2281 = vmatpush.bf16.msrb.mxu2 %v3433_v45  ;;  %v3665_v45 = vor.u32 %v4042_v38, %v3662_v0  ;;  %v2550_v38 = vld [vmem:[%s6296_s1 + $0x18] sm:$0xff] }
 0x17a   :  { %2294 = vmatpush.bf16.msrb.mxu3 %v3561_v7  ;;  %v3729_v7 = vor.u32 %v4058_v4, %v3726_v42  ;;  %v2567_v4 = vmul.f32 %v2550_v38, %v2550_v38 }
 0x17d   :  { %2282 = vmatpush.bf16.msrb.mxu2 %v3417_v1 }
 0x17e   :  { %2295 = vmatpush.bf16.msrb.mxu3 %v3545_v15  ;;  %v2102_v23 = vpop.f32.mrf.mxu0  ;;  %v2115_v50 = vpop.f32.mrf.mxu1 }
 0x17f   :  { %v2116_v3 = vadd.f32 %v2115_v50, %v2102_v23 }
 0x180   :  { %2283 = vmatmul.bf16.vlgmr.msrb.gmra.mxu2 %v5863_v20  ;;  %v3694_v20 = vld [vmem:[%s6295_s4 + $0x48] sm:$0xf0] }
 0x181   :  { %2521 = vmatpush.bf16.msra.mxu2 %v3721_v30  ;;  %2296 = vmatmul.bf16.vlgmr.msrb.gmra.mxu3 %v5870_v57  ;;  %v3758_v57 = vld [vmem:[%s6295_s4 + $0xc8] sm:$0xf0]  ;;  %v3697_v36 = vor.u32 %v4050_v21, %v3694_v20  ;;  %v2552_v21 = vmul.f32 %v2548_v59, %v2548_v59 }
 0x182   :  { %2534 = vmatpush.bf16.msra.mxu3 %v3785_v17  ;;  %v3761_v47 = vor.u32 %v4066_v24, %v3758_v57 }
 0x185   :  { %2522 = vmatpush.bf16.msra.mxu2 %v3713_v16 }
 0x186   :  { %2535 = vmatpush.bf16.msra.mxu3 %v3777_v48  ;;  %v2104_v26 = vpop.f32.mrf.mxu0  ;;  %v2117_v39 = vpop.f32.mrf.mxu1 }
 0x189   :  { %2523 = vmatpush.bf16.msra.mxu2 %v3705_v32  ;;  %v2551_v32 = vmul.f32 %v2547_v18, %v2547_v18 }
 0x18a   :  { %2536 = vmatpush.bf16.msra.mxu3 %v3769_v19 }
 0x18b   :  { %v2553_v24 = vadd.f32 %v2552_v21, %v2551_v32 }
 0x18d   :  { %2524 = vmatpush.bf16.msra.mxu2 %v3697_v36 }
 0x18e   :  { %2537 = vmatpush.bf16.msra.mxu3 %v3761_v47  ;;  %v2154_v44 = vpop.f32.mrf.mxu0 }
 0x18f   :  { %v2167_v53 = vpop.f32.mrf.mxu1 }
 0x190   :  { %v2168_v48 = vadd.f32 %v2167_v53, %v2154_v44 }
 0x191   :  { %2525 = vmatpush.bf16.msra.mxu2 %v3689_v51 }
 0x192   :  { %2538 = vmatpush.bf16.msra.mxu3 %v3753_v54 }
 0x195   :  { %2526 = vmatpush.bf16.msra.mxu2 %v3681_v9 }
 0x196   :  { %2539 = vmatpush.bf16.msra.mxu3 %v3745_v27  ;;  %v2156_v58 = vpop.f32.mrf.mxu0 }
 0x197   :  { %v2169_v56 = vpop.f32.mrf.mxu1 }
 0x199   :  { %2527 = vmatpush.bf16.msra.mxu2 %v3673_v61 }
 0x19a   :  { %2540 = vmatpush.bf16.msra.mxu3 %v3737_v62  ;;  %v2549_v62 = vld [vmem:[%s6296_s1 + $0x10] sm:$0xff] }
 0x19b   :  { %v2566_v0 = vmul.f32 %v2549_v62, %v2549_v62 }
 0x19d   :  { %2528 = vmatpush.bf16.msra.mxu2 %v3665_v45  ;;  %v2568_v45 = vadd.f32 %v2567_v4, %v2566_v0 }
 0x19e   :  { %2541 = vmatpush.bf16.msra.mxu3 %v3729_v7 }
 0x19f   :  { %v2219_v31 = vpop.f32.mrf.mxu1 }
 0x1a0   :  { %2529 = vmatmul.bf16.vlgmr.msra.gmra.mxu2 %v6091_v35  ;;  %v2206_v49 = vpop.f32.mrf.mxu0 }
 0x1a1   :  { %2542 = vmatmul.bf16.vlgmr.msra.gmra.mxu3 %v6093_v2  ;;  %v2220_v41 = vadd.f32 %v2219_v31, %v2206_v49 }
 0x1a7   :  { %v2221_v25 = vpop.f32.mrf.mxu1 }
 0x1a8   :  { %v2208_v8 = vpop.f32.mrf.mxu0 }
 0x1bf   :  { %v2271_v1 = vpop.f32.mrf.mxu1 }
 0x1c0   :  { %v2258_v37 = vpop.f32.mrf.mxu0 }
 0x1c1   :  { %v2272_v15 = vadd.f32 %v2271_v1, %v2258_v37 }
 0x1c3   :  { %v2128_v30 = vpop.f32.mrf.mxu2 }
 0x1c4   :  { %v2141_v17 = vpop.f32.mrf.mxu3  ;;  %v2129_v16 = vadd.f32 %v2128_v30, %v2116_v3 }
 0x1c6   :  { %v2142_v46 = vadd.f32 %v2141_v17, %v2129_v16 }
 0x1c7   :  { %v2273_v11 = vpop.f32.mrf.mxu1 }
 0x1c8   :  { %v2260_v6 = vpop.f32.mrf.mxu0  ;;  %v2554_v20 = vmul.f32 %v2547_v18, %v2142_v46  ;;  %v2559_v47 = vmul.f32 %v2142_v46, %v2142_v46 }
 0x1cb   :  { %v2130_v63 = vpop.f32.mrf.mxu2 }
 0x1cc   :  { %v2143_v13 = vpop.f32.mrf.mxu3 }
 0x1d3   :  { %v2180_v35 = vpop.f32.mrf.mxu2 }
 0x1d4   :  { %v2181_v40 = vadd.f32 %v2180_v35, %v2168_v48  ;;  %v2193_v2 = vpop.f32.mrf.mxu3 }
 0x1d6   :  { %v2194_v19 = vadd.f32 %v2193_v2, %v2181_v40 }
 0x1d8   :  { %v2555_v23 = vmul.f32 %v2548_v59, %v2194_v19  ;;  %v2561_v34 = vmul.f32 %v2194_v19, %v2194_v19  ;;  %v2589_v19 = vpop.xlane.xlu0 %2588 }
 0x1da   :  { %v2556_v57 = vadd.f32 %v2555_v23, %v2554_v20 }
 0x1db   :  { %v2182_v50 = vpop.f32.mrf.mxu2 }
 0x1dc   :  { %v2557_v3 = vmul.f32 2.0, %v2556_v57  ;;  %v2195_v36 = vpop.f32.mrf.mxu3 }
 0x1de   :  { %v2558_v33 = vsub.f32 %v2553_v24, %v2557_v3 }
 0x1df   :  { %v2517_v12 = vpop.f32.mrf.mxu1 }
 0x1e0   :  { %v2504_v5 = vpop.f32.mrf.mxu0  ;;  %v2560_v51 = vadd.f32 %v2559_v47, %v2558_v33 }
 0x1e1   :  { %v2518_v54 = vadd.f32 %v2517_v12, %v2504_v5 }
 0x1e2   :  { %v2562_v22 = vadd.f32 %v2561_v34, %v2560_v51 }
 0x1e3   :  { %v2232_v14 = vpop.f32.mrf.mxu2 }
 0x1e4   :  { %v2245_v26 = vpop.f32.mrf.mxu3  ;;  %v2563_v28 = vadd.f32 %v2562_v22, %v2518_v54  ;;  %v2233_v29 = vadd.f32 %v2232_v14, %v2220_v41 }
 0x1e6   :  { %2564 = vadd.xlane.f32.xlu1 %v2563_v28  ;;  %v2246_v60 = vadd.f32 %v2245_v26, %v2233_v29 }
 0x1e7   :  { %v2519_v39 = vpop.f32.mrf.mxu1 }
 0x1e8   :  { %v2506_v55 = vpop.f32.mrf.mxu0  ;;  %v2569_v42 = vmul.f32 %v2549_v62, %v2246_v60  ;;  %v2574_v31 = vmul.f32 %v2246_v60, %v2246_v60 }
 0x1eb   :  { %v2234_v9 = vpop.f32.mrf.mxu2 }
 0x1ec   :  { %v2247_v27 = vpop.f32.mrf.mxu3 }
 0x203   :  { %v2284_v43 = vpop.f32.mrf.mxu2 }
 0x204   :  { %v2285_v10 = vadd.f32 %v2284_v43, %v2272_v15  ;;  %v2297_v61 = vpop.f32.mrf.mxu3 }
 0x206   :  { %v2298_v44 = vadd.f32 %v2297_v61, %v2285_v10 }
 0x208   :  { %v2570_v53 = vmul.f32 %v2550_v38, %v2298_v44  ;;  %v2576_v8 = vmul.f32 %v2298_v44, %v2298_v44 }
 0x20a   :  { %v2571_v7 = vadd.f32 %v2570_v53, %v2569_v42 }
 0x20b   :  { %v2286_v58 = vpop.f32.mrf.mxu2 }
 0x20c   :  { %v2572_v56 = vmul.f32 2.0, %v2571_v7  ;;  %v2299_v49 = vpop.f32.mrf.mxu3 }
 0x20e   :  { %v2573_v41 = vsub.f32 %v2568_v45, %v2572_v56 }
 0x210   :  { %v2575_v25 = vadd.f32 %v2574_v31, %v2573_v41 }
 0x212   :  { %v2577_v37 = vadd.f32 %v2576_v8, %v2575_v25 }
 0x223   :  { %v2530_v1 = vpop.f32.mrf.mxu2 }
 0x224   :  { %v2543_v15 = vpop.f32.mrf.mxu3 }
 0x225   :  { %v2544_v30 = vadd.f32 %v2543_v15, %v2530_v1 }
 0x227   :  { %v2578_v17 = vadd.f32 %v2577_v37, %v2544_v30 }
 0x229   :  { %2579 = vadd.xlane.f32.xlu2 %v2578_v17 }
 0x22b   :  { %v2532_v6 = vpop.f32.mrf.mxu2 }
 0x22c   :  { %v2545_v11 = vpop.f32.mrf.mxu3 }
 0x259   :  { %v2565_v63 = vpop.xlane.xlu1 %2564 }
 0x25a   :  { %v2590_v13 = vadd.f32 1e-14, %v2565_v63  ;;  %v2602_v59 = vmul.f32 0.071428575, %v2565_v63 }
 0x25c   :  { %4118 = vlog2.f32 %v2590_v13  ;;  %v2603_v23 = vsel %vm2601_vm3, %v2602_v59, 0.0 }
 0x262   :  { %v4119_v35 = vpop.eup %4118 }
 0x263   :  { %v2592_v40 = vmul.f32 0.6931472, %v4119_v35 }
 0x29c   :  { %v2580_v16 = vpop.xlane.xlu2 %2579 }
 0x29d   :  { %v2593_v48 = vadd.f32 1e-14, %v2580_v16  ;;  %v2606_v20 = vmul.f32 0.071428575, %v2580_v16 }
 0x29f   :  { %4120 = vlog2.f32 %v2593_v48  ;;  %v2607_v50 = vsel %vm2605_vm5, %v2606_v20, 0.0 }
 0x2a5   :  { %v4121_v46 = vpop.eup %4120 }
 0x2a6   :  { %v2595_v2 = vmul.f32 0.6931472, %v4121_v46 }
 0x2a8   :  { %v2596_v18 = vadd.f32 %v2595_v2, %v2592_v40 }
 0x2aa   :  { %v2597_v32 = vmul.f32 14.0, %v2596_v18 }
 0x2ac   :  { %v2598_v21 = vadd.f32 %v2597_v32, %v2589_v19 }
 0x2ae   :  { %v2600_v24 = vsel %vm2599_vm4, %v2598_v21, 0.0 }
 0x2af   :  { %v2604_v57 = vadd.f32 %v2603_v23, %v2600_v24 }
 0x2b1   :  { %v2608_v3 = vadd.f32 %v2607_v50, %v2604_v57 }
 0x2b3   :  { %2609 = vst [vmem:[%s6297_s8] sm:$0xff] %v2608_v3 }

</bundles_post_ra>
